<compile_context>
chip_gen: v6e
topology: v6e:2x2x1
jax: 0.10.0
libtpu: 0.0.40
codegen_flags: <defaults>
</compile_context>

<pallas_src>
import numpy as np
import jax
import jax.numpy as jnp
from jax import lax
from jax.experimental import pallas as pl
from jax.experimental.pallas import tpu as pltpu


def attention_bilstm_kernel(
    # inputs ---------------------------------------------------------------
    xcat_ref,                                  # (T*Bp, 2*Dp) bf16  row s = [x_t=s | x_t=T-1-s]
    w0cat_ref, whh0_ref, b0_ref,               # layer0: (2Dp,8H) bf16, (2H,8H) bf16, (1,8H) f32
    w1cat_ref, whh1_ref, b1_ref,               # layer1: (4H,8H) bf16, (2H,8H) bf16, (1,8H) f32
    wa1_ref, ba1_ref, wa2_ref, ba2_ref,        # attention: (2H,H) bf16,(1,H) f32,(H,1) bf16,(1,1) f32
    wf1_ref, bf1_ref, wf2_ref, bf2_ref,        # head: (2H,H) bf16,(1,H) f32,(H,1) bf16,(1,1) f32
    # outputs --------------------------------------------------------------
    out_ref,                                   # (Bp, 1) f32
    attn_ref,                                  # (T*Bp, 1) f32  attention weights (row = t*Bp + b)
    # scratch --------------------------------------------------------------
    projsum_ref,                               # (T*Bp, 8H) f32  fused input projections + bias
):
    f32 = jnp.float32
    bf16 = jnp.bfloat16

    TB = attn_ref.shape[0]
    Bp = out_ref.shape[0]
    T = TB // Bp
    H2 = whh0_ref.shape[0]        # 2H (fwd|bwd hidden, 128 lanes)
    H = H2 // 2

    def bidir_lstm_layer(whh_ref):
        """Fused fwd+bwd recurrence for one layer; projSum read from scratch.

        h/c are (Bp, 2H): lanes [0:H] = forward dir, [H:2H] = backward dir.
        Gate layout of the (Bp, 8H) pre-activations: [i | f | o | g], each group
        2H wide, fwd in its first H lanes, bwd in its second H lanes.
        Returns the list of per-step h (f32); the fwd half of step s belongs to
        time s, the bwd half to time T-1-s.
        """
        whh = whh_ref[...]                              # (2H, 8H) bf16, block-structured
        h_bf = jnp.zeros((Bp, H2), bf16)
        c = jnp.zeros((Bp, H2), f32)
        hs = []
        for s in range(T):                              # fully unrolled (T small/static)
            psum = projsum_ref[pl.ds(s * Bp, Bp), :]    # aligned full-tile (Bp, 8H) load
            gates = jnp.dot(h_bf, whh, preferred_element_type=f32) + psum
            ifo = jax.nn.sigmoid(gates[:, 0:3 * H2])    # i, f, o  (one EUP region)
            g = jnp.tanh(gates[:, 3 * H2:4 * H2])       # g        (one EUP region)
            i = ifo[:, 0:H2]
            f = ifo[:, H2:2 * H2]
            o = ifo[:, 2 * H2:3 * H2]
            c = f * c + i * g
            h = o * jnp.tanh(c)
            h_bf = h.astype(bf16)                       # bf16 copy feeds next step's matmul
            hs.append(h)
        return hs

    def assemble_rows(hs):
        # out[time t] = [ fwd half of step t | bwd half of step T-1-t ]
        return [jnp.concatenate([hs[t][:, 0:H], hs[T - 1 - t][:, H:H2]], axis=1)
                for t in range(T)]

    # ---- layer 0: one fused input-projection matmul, then recurrence ------
    projsum_ref[...] = (jnp.dot(xcat_ref[...], w0cat_ref[...],
                                preferred_element_type=f32) + b0_ref[...])
    rows0 = assemble_rows(bidir_lstm_layer(whh0_ref))

    # ---- layer 1 (inter-layer dropout is identity in eval mode) -----------
    in1 = jnp.concatenate(
        [jnp.concatenate(rows0, axis=0),                # out0, time-major
         jnp.concatenate(rows0[::-1], axis=0)],         # out0, time-reversed
        axis=1).astype(bf16)                            # (T*Bp, 4H)
    projsum_ref[...] = (jnp.dot(in1, w1cat_ref[...],
                                preferred_element_type=f32) + b1_ref[...])
    rows1 = assemble_rows(bidir_lstm_layer(whh1_ref))
    out1 = jnp.concatenate(rows1, axis=0)               # (T*Bp, 2H) f32

    # ---- attention scores: Linear(2H,H) -> tanh -> Linear(H,1), batched ---
    z = jnp.tanh(jnp.dot(out1.astype(bf16), wa1_ref[...],
                         preferred_element_type=f32) + ba1_ref[...])           # (T*Bp, H)
    scores = (jnp.dot(z.astype(bf16), wa2_ref[...],
                      preferred_element_type=f32) + ba2_ref[...])              # (T*Bp, 1)

    # ---- softmax over time + context (static (Bp,1)/(Bp,2H) chunks) -------
    chunks = [scores[t * Bp:(t + 1) * Bp, :] for t in range(T)]  # each (Bp, 1)
    m = chunks[0]
    for t in range(1, T):
        m = jnp.maximum(m, chunks[t])
    exps = [jnp.exp(ch - m) for ch in chunks]
    den = exps[0]
    for t in range(1, T):
        den = den + exps[t]
    inv = pl.reciprocal(den, approx=True)                        # EUP divide

    w_list = [e * inv for e in exps]                             # (Bp, 1) each
    attn_ref[...] = jnp.concatenate(w_list, axis=0)              # single store
    ctx = w_list[0] * rows1[0]
    for t in range(1, T):
        ctx = ctx + w_list[t] * rows1[t]                         # (Bp, 2H)

    # ---- head: relu(fc1(context)) -> fc2 ----------------------------------
    h1 = jnp.maximum(
        jnp.dot(ctx.astype(bf16), wf1_ref[...], preferred_element_type=f32) + bf1_ref[...],
        0.0)                                                     # (Bp, H)
    out_ref[...] = (jnp.dot(h1.astype(bf16), wf2_ref[...],
                            preferred_element_type=f32) + bf2_ref[...])


def attention_bilstm_pallas(x, params, hidden_dim):
    """x: (B, T, D) float32.  Returns (out (B,1), attention_weights (B,T,1))."""
    f32 = jnp.float32
    bf16 = jnp.bfloat16
    H = hidden_dim
    H2 = 2 * H
    G = 8 * H                                   # fused fwd+bwd gate width
    B, T, D = x.shape
    Bp = max(8, ((B + 7) // 8) * 8)             # pad batch to sublane multiple
    Dp = ((D + 127) // 128) * 128               # pad input features to lane multiple

    # --- gate-column reorder / placement helpers (PyTorch order is i|f|g|o) ---
    def reorder(wT):                            # (K, 4H) cols [i f g o] -> [i f o g]
        return jnp.concatenate(
            [wT[:, 0:2 * H], wT[:, 3 * H:4 * H], wT[:, 2 * H:3 * H]], axis=1)

    def place_dir(wT, direction):               # (K, 4H) [i f o g] -> (K, 8H) interleaved
        K = wT.shape[0]
        out = jnp.zeros((K, G), wT.dtype)
        for gi in range(4):
            c0 = gi * H2 + direction * H
            out = out.at[:, c0:c0 + H].set(wT[:, gi * H:(gi + 1) * H])
        return out

    def gate_bias(layer):
        bf_ = (params[f'bias_ih_l{layer}'] + params[f'bias_hh_l{layer}']).reshape(1, 4 * H)
        bb_ = (params[f'bias_ih_l{layer}_reverse']
               + params[f'bias_hh_l{layer}_reverse']).reshape(1, 4 * H)
        return place_dir(reorder(bf_), 0) + place_dir(reorder(bb_), 1)

    # layer 0: single fused input weight [W_ihF ; W_ihB]  (2Dp, 8H)
    wih0fT = jnp.pad(params['weight_ih_l0'].T, ((0, Dp - D), (0, 0)))
    wih0bT = jnp.pad(params['weight_ih_l0_reverse'].T, ((0, Dp - D), (0, 0)))
    w0cat = jnp.concatenate([place_dir(reorder(wih0fT), 0),
                             place_dir(reorder(wih0bT), 1)], axis=0)
    whh0 = jnp.concatenate(
        [place_dir(reorder(params['weight_hh_l0'].T), 0),
         place_dir(reorder(params['weight_hh_l0_reverse'].T), 1)], axis=0)   # (2H, 8H)
    b0 = gate_bias(0)

    # layer 1: single fused input weight [W_ihF ; W_ihB]  (4H, 8H)
    w1cat = jnp.concatenate(
        [place_dir(reorder(params['weight_ih_l1'].T), 0),
         place_dir(reorder(params['weight_ih_l1_reverse'].T), 1)], axis=0)
    whh1 = jnp.concatenate(
        [place_dir(reorder(params['weight_hh_l1'].T), 0),
         place_dir(reorder(params['weight_hh_l1_reverse'].T), 1)], axis=0)
    b1 = gate_bias(1)

    wa1 = params['att0_w'].T                    # (2H, H)
    ba1 = params['att0_b'].reshape(1, H)
    wa2 = params['att2_w'].T                    # (H, 1)
    ba2 = params['att2_b'].reshape(1, 1)
    wf1 = params['fc1_w'].T                     # (2H, H)
    bf1 = params['fc1_b'].reshape(1, H)
    wf2 = params['fc2_w'].T                     # (H, 1)
    bf2 = params['fc2_b'].reshape(1, 1)

    # time-major, batch+feature padded input; row t*Bp + b = x[b, t, :]
    xt = jnp.transpose(x, (1, 0, 2)).astype(f32)
    xt = jnp.pad(xt, ((0, 0), (0, Bp - B), (0, Dp - D)))          # (T, Bp, Dp)
    x_fwd = xt.reshape(T * Bp, Dp)
    x_bwd = xt[::-1].reshape(T * Bp, Dp)                          # time-reversed rows
    xcat = jnp.concatenate([x_fwd, x_bwd], axis=1)                # (T*Bp, 2Dp)

    inputs = (
        xcat.astype(bf16),
        w0cat.astype(bf16), whh0.astype(bf16), b0.astype(f32),
        w1cat.astype(bf16), whh1.astype(bf16), b1.astype(f32),
        wa1.astype(bf16), ba1.astype(f32), wa2.astype(bf16), ba2.astype(f32),
        wf1.astype(bf16), bf1.astype(f32), wf2.astype(bf16), bf2.astype(f32),
    )

    vmem = pl.BlockSpec(memory_space=pltpu.MemorySpace.VMEM)
    out_p, attn_flat = pl.pallas_call(
        attention_bilstm_kernel,
        out_shape=(jax.ShapeDtypeStruct((Bp, 1), f32),
                   jax.ShapeDtypeStruct((T * Bp, 1), f32)),
        in_specs=[vmem] * len(inputs),
        out_specs=(vmem, vmem),
        scratch_shapes=[pltpu.VMEM((T * Bp, G), f32)],            # fused projSum buffer
    )(*inputs)

    out = out_p[:B]                                               # drop batch padding
    attn = jnp.transpose(attn_flat.reshape(T, Bp, 1), (1, 0, 2))[:B]   # (B, T, 1)
    return out, attn


# ---------------------- pure-JAX reference (for checking) -------------------
def ref_forward(x, params, H):
    B, T, D = x.shape

    def run_dir(inp, wih, whh, bih, bhh, reverse):
        xs = jnp.transpose(inp, (1, 0, 2))
        if reverse:
            xs = xs[::-1]

        def cell(carry, x_t):
            h, c = carry
            gates = x_t @ wih.T + bih + h @ whh.T + bhh
            i, f, g, o = jnp.split(gates, 4, axis=-1)
            i = jax.nn.sigmoid(i)
            f = jax.nn.sigmoid(f)
            g = jnp.tanh(g)
            o = jax.nn.sigmoid(o)
            c = f * c + i * g
            h = o * jnp.tanh(c)
            return (h, c), h

        init = (jnp.zeros((B, H), jnp.float32), jnp.zeros((B, H), jnp.float32))
        _, hs = lax.scan(cell, init, xs)
        if reverse:
            hs = hs[::-1]
        return jnp.transpose(hs, (1, 0, 2))

    out0 = jnp.concatenate([
        run_dir(x, params['weight_ih_l0'], params['weight_hh_l0'],
                params['bias_ih_l0'], params['bias_hh_l0'], False),
        run_dir(x, params['weight_ih_l0_reverse'], params['weight_hh_l0_reverse'],
                params['bias_ih_l0_reverse'], params['bias_hh_l0_reverse'], True)], axis=-1)
    out1 = jnp.concatenate([
        run_dir(out0, params['weight_ih_l1'], params['weight_hh_l1'],
                params['bias_ih_l1'], params['bias_hh_l1'], False),
        run_dir(out0, params['weight_ih_l1_reverse'], params['weight_hh_l1_reverse'],
                params['bias_ih_l1_reverse'], params['bias_hh_l1_reverse'], True)], axis=-1)

    scores = jnp.tanh(out1 @ params['att0_w'].T + params['att0_b']) @ params['att2_w'].T + params['att2_b']
    w = jax.nn.softmax(scores, axis=1)
    ctx = jnp.sum(w * out1, axis=1)
    h1 = jax.nn.relu(ctx @ params['fc1_w'].T + params['fc1_b'])
    y = h1 @ params['fc2_w'].T + params['fc2_b']
    return y, w


def init_params(key, input_dim, hidden_dim):
    H = hidden_dim
    k = 1.0 / np.sqrt(H)
    shapes = {
        'weight_ih_l0': (4 * H, input_dim), 'weight_hh_l0': (4 * H, H),
        'bias_ih_l0': (4 * H,), 'bias_hh_l0': (4 * H,),
        'weight_ih_l0_reverse': (4 * H, input_dim), 'weight_hh_l0_reverse': (4 * H, H),
        'bias_ih_l0_reverse': (4 * H,), 'bias_hh_l0_reverse': (4 * H,),
        'weight_ih_l1': (4 * H, 2 * H), 'weight_hh_l1': (4 * H, H),
        'bias_ih_l1': (4 * H,), 'bias_hh_l1': (4 * H,),
        'weight_ih_l1_reverse': (4 * H, 2 * H), 'weight_hh_l1_reverse': (4 * H, H),
        'bias_ih_l1_reverse': (4 * H,), 'bias_hh_l1_reverse': (4 * H,),
        'att0_w': (H, 2 * H), 'att0_b': (H,),
        'att2_w': (1, H), 'att2_b': (1,),
        'fc1_w': (H, 2 * H), 'fc1_b': (H,),
        'fc2_w': (1, H), 'fc2_b': (1,),
    }
    keys = jax.random.split(key, len(shapes))
    return {name: jax.random.uniform(kk, shp, jnp.float32, -k, k)
            for (name, shp), kk in zip(shapes.items(), keys)}


if __name__ == "__main__":
    B, T, D, H = 2, 8, 100, 64      # batch=2, seq=8, input_dim=100, hidden_dim=64
    key = jax.random.PRNGKey(0)
    kx, kp = jax.random.split(key)
    x = jax.random.normal(kx, (B, T, D), jnp.float32)
    params = init_params(kp, D, H)

    y, attn = attention_bilstm_pallas(x, params, H)
    y = jax.block_until_ready(y)
    attn = jax.block_until_ready(attn)

    y_ref, attn_ref = ref_forward(x, params, H)
    np.testing.assert_allclose(np.asarray(y), np.asarray(y_ref), rtol=5e-2, atol=1e-2)
    np.testing.assert_allclose(np.asarray(attn), np.asarray(attn_ref), rtol=5e-2, atol=1e-2)
    assert y.shape == (B, 1) and attn.shape == (B, T, 1)

    print("KERNEL_OK")
</pallas_src>

<mosaic_0001>
module attributes {stable_mosaic.version = 11 : i64} {
  func.func @attention_bilstm_kernel(%arg0: memref<64x256xbf16, #tpu.memory_space<vmem>>, %arg1: memref<256x512xbf16, #tpu.memory_space<vmem>>, %arg2: memref<128x512xbf16, #tpu.memory_space<vmem>>, %arg3: memref<1x512xf32, #tpu.memory_space<vmem>>, %arg4: memref<256x512xbf16, #tpu.memory_space<vmem>>, %arg5: memref<128x512xbf16, #tpu.memory_space<vmem>>, %arg6: memref<1x512xf32, #tpu.memory_space<vmem>>, %arg7: memref<128x64xbf16, #tpu.memory_space<vmem>>, %arg8: memref<1x64xf32, #tpu.memory_space<vmem>>, %arg9: memref<64x1xbf16, #tpu.memory_space<vmem>>, %arg10: memref<1x1xf32, #tpu.memory_space<vmem>>, %arg11: memref<128x64xbf16, #tpu.memory_space<vmem>>, %arg12: memref<1x64xf32, #tpu.memory_space<vmem>>, %arg13: memref<64x1xbf16, #tpu.memory_space<vmem>>, %arg14: memref<1x1xf32, #tpu.memory_space<vmem>>, %arg15: memref<8x1xf32, #tpu.memory_space<vmem>>, %arg16: memref<64x1xf32, #tpu.memory_space<vmem>>, %arg17: memref<64x512xf32, #tpu.memory_space<vmem>>) attributes {dimension_semantics = [], scalar_prefetch = 0 : i64, scratch_operands = 1 : i64, tpu.core_type = #tpu.core_type<tc>} {
    %c0 = arith.constant 0 : index
    %c0_0 = arith.constant 0 : index
    %0 = vector.load %arg0[%c0, %c0_0] : memref<64x256xbf16, #tpu.memory_space<vmem>>, vector<64x256xbf16>
    %c0_1 = arith.constant 0 : index
    %c0_2 = arith.constant 0 : index
    %1 = vector.load %arg1[%c0_1, %c0_2] : memref<256x512xbf16, #tpu.memory_space<vmem>>, vector<256x512xbf16>
    %cst = arith.constant dense<0.000000e+00> : vector<64x512xf32>
    %2 = tpu.matmul %0, %1, %cst {dimension_numbers = #tpu.dot_dimension_numbers<[1], [0], [0], [1], [0, 0, 1, 1], [], []>} : vector<64x256xbf16>, vector<256x512xbf16>, vector<64x512xf32> -> vector<64x512xf32>
    %c0_3 = arith.constant 0 : index
    %c0_4 = arith.constant 0 : index
    %3 = vector.load %arg3[%c0_3, %c0_4] : memref<1x512xf32, #tpu.memory_space<vmem>>, vector<1x512xf32>
    %4 = vector.broadcast %3 : vector<1x512xf32> to vector<64x512xf32>
    %5 = arith.addf %2, %4 : vector<64x512xf32>
    %c0_5 = arith.constant 0 : index
    %c0_6 = arith.constant 0 : index
    %6 = vector.load %arg17[%c0_5, %c0_6] : memref<64x512xf32, #tpu.memory_space<vmem>>, vector<64x512xf32>
    tpu.vector_store %arg17[%c0_5, %c0_6], %5 {strides = array<i32>} : memref<64x512xf32, #tpu.memory_space<vmem>>, vector<64x512xf32>,
    %c0_7 = arith.constant 0 : index
    %c0_8 = arith.constant 0 : index
    %7 = vector.load %arg2[%c0_7, %c0_8] : memref<128x512xbf16, #tpu.memory_space<vmem>>, vector<128x512xbf16>
    %cst_9 = arith.constant 0.000000e+00 : bf16
    %8 = vector.broadcast %cst_9 : bf16 to vector<8x128xbf16>
    %cst_10 = arith.constant 0.000000e+00 : f32
    %9 = vector.broadcast %cst_10 : f32 to vector<8x128xf32>
    %c0_11 = arith.constant 0 : index
    %c0_12 = arith.constant 0 : index
    %10 = vector.load %arg17[%c0_11, %c0_12] : memref<64x512xf32, #tpu.memory_space<vmem>>, vector<8x512xf32>
    %cst_13 = arith.constant dense<0.000000e+00> : vector<8x512xf32>
    %11 = tpu.matmul %8, %7, %cst_13 {dimension_numbers = #tpu.dot_dimension_numbers<[1], [0], [0], [1], [0, 0, 1, 1], [], []>} : vector<8x128xbf16>, vector<128x512xbf16>, vector<8x512xf32> -> vector<8x512xf32>
    %12 = arith.addf %11, %10 : vector<8x512xf32>
    %13 = vector.extract_strided_slice %12 {offsets = [0, 0], sizes = [8, 384], strides = [1, 1]} : vector<8x512xf32> to vector<8x384xf32>
    %14 = arith.negf %13 : vector<8x384xf32>
    %15 = math.exp %14 : vector<8x384xf32>
    %cst_14 = arith.constant 1.000000e+00 : f32
    %16 = vector.broadcast %cst_14 : f32 to vector<8x384xf32>
    %17 = arith.addf %16, %15 : vector<8x384xf32>
    %18 = arith.divf %16, %17 : vector<8x384xf32>
    %19 = vector.extract_strided_slice %12 {offsets = [0, 384], sizes = [8, 128], strides = [1, 1]} : vector<8x512xf32> to vector<8x128xf32>
    %20 = math.tanh %19 : vector<8x128xf32>
    %21 = vector.extract_strided_slice %18 {offsets = [0, 0], sizes = [8, 128], strides = [1, 1]} : vector<8x384xf32> to vector<8x128xf32>
    %22 = vector.extract_strided_slice %18 {offsets = [0, 128], sizes = [8, 128], strides = [1, 1]} : vector<8x384xf32> to vector<8x128xf32>
    %23 = vector.extract_strided_slice %18 {offsets = [0, 256], sizes = [8, 128], strides = [1, 1]} : vector<8x384xf32> to vector<8x128xf32>
    %24 = arith.mulf %22, %9 : vector<8x128xf32>
    %25 = arith.mulf %21, %20 : vector<8x128xf32>
    %26 = arith.addf %24, %25 : vector<8x128xf32>
    %27 = math.tanh %26 : vector<8x128xf32>
    %28 = arith.mulf %23, %27 : vector<8x128xf32>
    %29 = arith.truncf %28 : vector<8x128xf32> to vector<8x128xbf16>
    %c8 = arith.constant 8 : index
    %c0_15 = arith.constant 0 : index
    %30 = vector.load %arg17[%c8, %c0_15] : memref<64x512xf32, #tpu.memory_space<vmem>>, vector<8x512xf32>
    %cst_16 = arith.constant dense<0.000000e+00> : vector<8x512xf32>
    %31 = tpu.matmul %29, %7, %cst_16 {dimension_numbers = #tpu.dot_dimension_numbers<[1], [0], [0], [1], [0, 0, 1, 1], [], []>} : vector<8x128xbf16>, vector<128x512xbf16>, vector<8x512xf32> -> vector<8x512xf32>
    %32 = arith.addf %31, %30 : vector<8x512xf32>
    %33 = vector.extract_strided_slice %32 {offsets = [0, 0], sizes = [8, 384], strides = [1, 1]} : vector<8x512xf32> to vector<8x384xf32>
    %34 = arith.negf %33 : vector<8x384xf32>
    %35 = math.exp %34 : vector<8x384xf32>
    %cst_17 = arith.constant 1.000000e+00 : f32
    %36 = vector.broadcast %cst_17 : f32 to vector<8x384xf32>
    %37 = arith.addf %36, %35 : vector<8x384xf32>
    %38 = arith.divf %36, %37 : vector<8x384xf32>
    %39 = vector.extract_strided_slice %32 {offsets = [0, 384], sizes = [8, 128], strides = [1, 1]} : vector<8x512xf32> to vector<8x128xf32>
    %40 = math.tanh %39 : vector<8x128xf32>
    %41 = vector.extract_strided_slice %38 {offsets = [0, 0], sizes = [8, 128], strides = [1, 1]} : vector<8x384xf32> to vector<8x128xf32>
    %42 = vector.extract_strided_slice %38 {offsets = [0, 128], sizes = [8, 128], strides = [1, 1]} : vector<8x384xf32> to vector<8x128xf32>
    %43 = vector.extract_strided_slice %38 {offsets = [0, 256], sizes = [8, 128], strides = [1, 1]} : vector<8x384xf32> to vector<8x128xf32>
    %44 = arith.mulf %42, %26 : vector<8x128xf32>
    %45 = arith.mulf %41, %40 : vector<8x128xf32>
    %46 = arith.addf %44, %45 : vector<8x128xf32>
    %47 = math.tanh %46 : vector<8x128xf32>
    %48 = arith.mulf %43, %47 : vector<8x128xf32>
    %49 = arith.truncf %48 : vector<8x128xf32> to vector<8x128xbf16>
    %c16 = arith.constant 16 : index
    %c0_18 = arith.constant 0 : index
    %50 = vector.load %arg17[%c16, %c0_18] : memref<64x512xf32, #tpu.memory_space<vmem>>, vector<8x512xf32>
    %cst_19 = arith.constant dense<0.000000e+00> : vector<8x512xf32>
    %51 = tpu.matmul %49, %7, %cst_19 {dimension_numbers = #tpu.dot_dimension_numbers<[1], [0], [0], [1], [0, 0, 1, 1], [], []>} : vector<8x128xbf16>, vector<128x512xbf16>, vector<8x512xf32> -> vector<8x512xf32>
    %52 = arith.addf %51, %50 : vector<8x512xf32>
    %53 = vector.extract_strided_slice %52 {offsets = [0, 0], sizes = [8, 384], strides = [1, 1]} : vector<8x512xf32> to vector<8x384xf32>
    %54 = arith.negf %53 : vector<8x384xf32>
    %55 = math.exp %54 : vector<8x384xf32>
    %cst_20 = arith.constant 1.000000e+00 : f32
    %56 = vector.broadcast %cst_20 : f32 to vector<8x384xf32>
    %57 = arith.addf %56, %55 : vector<8x384xf32>
    %58 = arith.divf %56, %57 : vector<8x384xf32>
    %59 = vector.extract_strided_slice %52 {offsets = [0, 384], sizes = [8, 128], strides = [1, 1]} : vector<8x512xf32> to vector<8x128xf32>
    %60 = math.tanh %59 : vector<8x128xf32>
    %61 = vector.extract_strided_slice %58 {offsets = [0, 0], sizes = [8, 128], strides = [1, 1]} : vector<8x384xf32> to vector<8x128xf32>
    %62 = vector.extract_strided_slice %58 {offsets = [0, 128], sizes = [8, 128], strides = [1, 1]} : vector<8x384xf32> to vector<8x128xf32>
    %63 = vector.extract_strided_slice %58 {offsets = [0, 256], sizes = [8, 128], strides = [1, 1]} : vector<8x384xf32> to vector<8x128xf32>
    %64 = arith.mulf %62, %46 : vector<8x128xf32>
    %65 = arith.mulf %61, %60 : vector<8x128xf32>
    %66 = arith.addf %64, %65 : vector<8x128xf32>
    %67 = math.tanh %66 : vector<8x128xf32>
    %68 = arith.mulf %63, %67 : vector<8x128xf32>
    %69 = arith.truncf %68 : vector<8x128xf32> to vector<8x128xbf16>
    %c24 = arith.constant 24 : index
    %c0_21 = arith.constant 0 : index
    %70 = vector.load %arg17[%c24, %c0_21] : memref<64x512xf32, #tpu.memory_space<vmem>>, vector<8x512xf32>
    %cst_22 = arith.constant dense<0.000000e+00> : vector<8x512xf32>
    %71 = tpu.matmul %69, %7, %cst_22 {dimension_numbers = #tpu.dot_dimension_numbers<[1], [0], [0], [1], [0, 0, 1, 1], [], []>} : vector<8x128xbf16>, vector<128x512xbf16>, vector<8x512xf32> -> vector<8x512xf32>
    %72 = arith.addf %71, %70 : vector<8x512xf32>
    %73 = vector.extract_strided_slice %72 {offsets = [0, 0], sizes = [8, 384], strides = [1, 1]} : vector<8x512xf32> to vector<8x384xf32>
    %74 = arith.negf %73 : vector<8x384xf32>
    %75 = math.exp %74 : vector<8x384xf32>
    %cst_23 = arith.constant 1.000000e+00 : f32
    %76 = vector.broadcast %cst_23 : f32 to vector<8x384xf32>
    %77 = arith.addf %76, %75 : vector<8x384xf32>
    %78 = arith.divf %76, %77 : vector<8x384xf32>
    %79 = vector.extract_strided_slice %72 {offsets = [0, 384], sizes = [8, 128], strides = [1, 1]} : vector<8x512xf32> to vector<8x128xf32>
    %80 = math.tanh %79 : vector<8x128xf32>
    %81 = vector.extract_strided_slice %78 {offsets = [0, 0], sizes = [8, 128], strides = [1, 1]} : vector<8x384xf32> to vector<8x128xf32>
    %82 = vector.extract_strided_slice %78 {offsets = [0, 128], sizes = [8, 128], strides = [1, 1]} : vector<8x384xf32> to vector<8x128xf32>
    %83 = vector.extract_strided_slice %78 {offsets = [0, 256], sizes = [8, 128], strides = [1, 1]} : vector<8x384xf32> to vector<8x128xf32>
    %84 = arith.mulf %82, %66 : vector<8x128xf32>
    %85 = arith.mulf %81, %80 : vector<8x128xf32>
    %86 = arith.addf %84, %85 : vector<8x128xf32>
    %87 = math.tanh %86 : vector<8x128xf32>
    %88 = arith.mulf %83, %87 : vector<8x128xf32>
    %89 = arith.truncf %88 : vector<8x128xf32> to vector<8x128xbf16>
    %c32 = arith.constant 32 : index
    %c0_24 = arith.constant 0 : index
    %90 = vector.load %arg17[%c32, %c0_24] : memref<64x512xf32, #tpu.memory_space<vmem>>, vector<8x512xf32>
    %cst_25 = arith.constant dense<0.000000e+00> : vector<8x512xf32>
    %91 = tpu.matmul %89, %7, %cst_25 {dimension_numbers = #tpu.dot_dimension_numbers<[1], [0], [0], [1], [0, 0, 1, 1], [], []>} : vector<8x128xbf16>, vector<128x512xbf16>, vector<8x512xf32> -> vector<8x512xf32>
    %92 = arith.addf %91, %90 : vector<8x512xf32>
    %93 = vector.extract_strided_slice %92 {offsets = [0, 0], sizes = [8, 384], strides = [1, 1]} : vector<8x512xf32> to vector<8x384xf32>
    %94 = arith.negf %93 : vector<8x384xf32>
    %95 = math.exp %94 : vector<8x384xf32>
    %cst_26 = arith.constant 1.000000e+00 : f32
    %96 = vector.broadcast %cst_26 : f32 to vector<8x384xf32>
    %97 = arith.addf %96, %95 : vector<8x384xf32>
    %98 = arith.divf %96, %97 : vector<8x384xf32>
    %99 = vector.extract_strided_slice %92 {offsets = [0, 384], sizes = [8, 128], strides = [1, 1]} : vector<8x512xf32> to vector<8x128xf32>
    %100 = math.tanh %99 : vector<8x128xf32>
    %101 = vector.extract_strided_slice %98 {offsets = [0, 0], sizes = [8, 128], strides = [1, 1]} : vector<8x384xf32> to vector<8x128xf32>
    %102 = vector.extract_strided_slice %98 {offsets = [0, 128], sizes = [8, 128], strides = [1, 1]} : vector<8x384xf32> to vector<8x128xf32>
    %103 = vector.extract_strided_slice %98 {offsets = [0, 256], sizes = [8, 128], strides = [1, 1]} : vector<8x384xf32> to vector<8x128xf32>
    %104 = arith.mulf %102, %86 : vector<8x128xf32>
    %105 = arith.mulf %101, %100 : vector<8x128xf32>
    %106 = arith.addf %104, %105 : vector<8x128xf32>
    %107 = math.tanh %106 : vector<8x128xf32>
    %108 = arith.mulf %103, %107 : vector<8x128xf32>
    %109 = arith.truncf %108 : vector<8x128xf32> to vector<8x128xbf16>
    %c40 = arith.constant 40 : index
    %c0_27 = arith.constant 0 : index
    %110 = vector.load %arg17[%c40, %c0_27] : memref<64x512xf32, #tpu.memory_space<vmem>>, vector<8x512xf32>
    %cst_28 = arith.constant dense<0.000000e+00> : vector<8x512xf32>
    %111 = tpu.matmul %109, %7, %cst_28 {dimension_numbers = #tpu.dot_dimension_numbers<[1], [0], [0], [1], [0, 0, 1, 1], [], []>} : vector<8x128xbf16>, vector<128x512xbf16>, vector<8x512xf32> -> vector<8x512xf32>
    %112 = arith.addf %111, %110 : vector<8x512xf32>
    %113 = vector.extract_strided_slice %112 {offsets = [0, 0], sizes = [8, 384], strides = [1, 1]} : vector<8x512xf32> to vector<8x384xf32>
    %114 = arith.negf %113 : vector<8x384xf32>
    %115 = math.exp %114 : vector<8x384xf32>
    %cst_29 = arith.constant 1.000000e+00 : f32
    %116 = vector.broadcast %cst_29 : f32 to vector<8x384xf32>
    %117 = arith.addf %116, %115 : vector<8x384xf32>
    %118 = arith.divf %116, %117 : vector<8x384xf32>
    %119 = vector.extract_strided_slice %112 {offsets = [0, 384], sizes = [8, 128], strides = [1, 1]} : vector<8x512xf32> to vector<8x128xf32>
    %120 = math.tanh %119 : vector<8x128xf32>
    %121 = vector.extract_strided_slice %118 {offsets = [0, 0], sizes = [8, 128], strides = [1, 1]} : vector<8x384xf32> to vector<8x128xf32>
    %122 = vector.extract_strided_slice %118 {offsets = [0, 128], sizes = [8, 128], strides = [1, 1]} : vector<8x384xf32> to vector<8x128xf32>
    %123 = vector.extract_strided_slice %118 {offsets = [0, 256], sizes = [8, 128], strides = [1, 1]} : vector<8x384xf32> to vector<8x128xf32>
    %124 = arith.mulf %122, %106 : vector<8x128xf32>
    %125 = arith.mulf %121, %120 : vector<8x128xf32>
    %126 = arith.addf %124, %125 : vector<8x128xf32>
    %127 = math.tanh %126 : vector<8x128xf32>
    %128 = arith.mulf %123, %127 : vector<8x128xf32>
    %129 = arith.truncf %128 : vector<8x128xf32> to vector<8x128xbf16>
    %c48 = arith.constant 48 : index
    %c0_30 = arith.constant 0 : index
    %130 = vector.load %arg17[%c48, %c0_30] : memref<64x512xf32, #tpu.memory_space<vmem>>, vector<8x512xf32>
    %cst_31 = arith.constant dense<0.000000e+00> : vector<8x512xf32>
    %131 = tpu.matmul %129, %7, %cst_31 {dimension_numbers = #tpu.dot_dimension_numbers<[1], [0], [0], [1], [0, 0, 1, 1], [], []>} : vector<8x128xbf16>, vector<128x512xbf16>, vector<8x512xf32> -> vector<8x512xf32>
    %132 = arith.addf %131, %130 : vector<8x512xf32>
    %133 = vector.extract_strided_slice %132 {offsets = [0, 0], sizes = [8, 384], strides = [1, 1]} : vector<8x512xf32> to vector<8x384xf32>
    %134 = arith.negf %133 : vector<8x384xf32>
    %135 = math.exp %134 : vector<8x384xf32>
    %cst_32 = arith.constant 1.000000e+00 : f32
    %136 = vector.broadcast %cst_32 : f32 to vector<8x384xf32>
    %137 = arith.addf %136, %135 : vector<8x384xf32>
    %138 = arith.divf %136, %137 : vector<8x384xf32>
    %139 = vector.extract_strided_slice %132 {offsets = [0, 384], sizes = [8, 128], strides = [1, 1]} : vector<8x512xf32> to vector<8x128xf32>
    %140 = math.tanh %139 : vector<8x128xf32>
    %141 = vector.extract_strided_slice %138 {offsets = [0, 0], sizes = [8, 128], strides = [1, 1]} : vector<8x384xf32> to vector<8x128xf32>
    %142 = vector.extract_strided_slice %138 {offsets = [0, 128], sizes = [8, 128], strides = [1, 1]} : vector<8x384xf32> to vector<8x128xf32>
    %143 = vector.extract_strided_slice %138 {offsets = [0, 256], sizes = [8, 128], strides = [1, 1]} : vector<8x384xf32> to vector<8x128xf32>
    %144 = arith.mulf %142, %126 : vector<8x128xf32>
    %145 = arith.mulf %141, %140 : vector<8x128xf32>
    %146 = arith.addf %144, %145 : vector<8x128xf32>
    %147 = math.tanh %146 : vector<8x128xf32>
    %148 = arith.mulf %143, %147 : vector<8x128xf32>
    %149 = arith.truncf %148 : vector<8x128xf32> to vector<8x128xbf16>
    %c56 = arith.constant 56 : index
    %c0_33 = arith.constant 0 : index
    %150 = vector.load %arg17[%c56, %c0_33] : memref<64x512xf32, #tpu.memory_space<vmem>>, vector<8x512xf32>
    %cst_34 = arith.constant dense<0.000000e+00> : vector<8x512xf32>
    %151 = tpu.matmul %149, %7, %cst_34 {dimension_numbers = #tpu.dot_dimension_numbers<[1], [0], [0], [1], [0, 0, 1, 1], [], []>} : vector<8x128xbf16>, vector<128x512xbf16>, vector<8x512xf32> -> vector<8x512xf32>
    %152 = arith.addf %151, %150 : vector<8x512xf32>
    %153 = vector.extract_strided_slice %152 {offsets = [0, 0], sizes = [8, 384], strides = [1, 1]} : vector<8x512xf32> to vector<8x384xf32>
    %154 = arith.negf %153 : vector<8x384xf32>
    %155 = math.exp %154 : vector<8x384xf32>
    %cst_35 = arith.constant 1.000000e+00 : f32
    %156 = vector.broadcast %cst_35 : f32 to vector<8x384xf32>
    %157 = arith.addf %156, %155 : vector<8x384xf32>
    %158 = arith.divf %156, %157 : vector<8x384xf32>
    %159 = vector.extract_strided_slice %152 {offsets = [0, 384], sizes = [8, 128], strides = [1, 1]} : vector<8x512xf32> to vector<8x128xf32>
    %160 = math.tanh %159 : vector<8x128xf32>
    %161 = vector.extract_strided_slice %158 {offsets = [0, 0], sizes = [8, 128], strides = [1, 1]} : vector<8x384xf32> to vector<8x128xf32>
    %162 = vector.extract_strided_slice %158 {offsets = [0, 128], sizes = [8, 128], strides = [1, 1]} : vector<8x384xf32> to vector<8x128xf32>
    %163 = vector.extract_strided_slice %158 {offsets = [0, 256], sizes = [8, 128], strides = [1, 1]} : vector<8x384xf32> to vector<8x128xf32>
    %164 = arith.mulf %162, %146 : vector<8x128xf32>
    %165 = arith.mulf %161, %160 : vector<8x128xf32>
    %166 = arith.addf %164, %165 : vector<8x128xf32>
    %167 = math.tanh %166 : vector<8x128xf32>
    %168 = arith.mulf %163, %167 : vector<8x128xf32>
    %169 = vector.extract_strided_slice %28 {offsets = [0, 0], sizes = [8, 64], strides = [1, 1]} : vector<8x128xf32> to vector<8x64xf32>
    %170 = vector.extract_strided_slice %168 {offsets = [0, 64], sizes = [8, 64], strides = [1, 1]} : vector<8x128xf32> to vector<8x64xf32>
    %171 = tpu.concatenate %169, %170 in 1 : vector<8x64xf32>, vector<8x64xf32> -> vector<8x128xf32>
    %172 = vector.extract_strided_slice %48 {offsets = [0, 0], sizes = [8, 64], strides = [1, 1]} : vector<8x128xf32> to vector<8x64xf32>
    %173 = vector.extract_strided_slice %148 {offsets = [0, 64], sizes = [8, 64], strides = [1, 1]} : vector<8x128xf32> to vector<8x64xf32>
    %174 = tpu.concatenate %172, %173 in 1 : vector<8x64xf32>, vector<8x64xf32> -> vector<8x128xf32>
    %175 = vector.extract_strided_slice %68 {offsets = [0, 0], sizes = [8, 64], strides = [1, 1]} : vector<8x128xf32> to vector<8x64xf32>
    %176 = vector.extract_strided_slice %128 {offsets = [0, 64], sizes = [8, 64], strides = [1, 1]} : vector<8x128xf32> to vector<8x64xf32>
    %177 = tpu.concatenate %175, %176 in 1 : vector<8x64xf32>, vector<8x64xf32> -> vector<8x128xf32>
    %178 = vector.extract_strided_slice %88 {offsets = [0, 0], sizes = [8, 64], strides = [1, 1]} : vector<8x128xf32> to vector<8x64xf32>
    %179 = vector.extract_strided_slice %108 {offsets = [0, 64], sizes = [8, 64], strides = [1, 1]} : vector<8x128xf32> to vector<8x64xf32>
    %180 = tpu.concatenate %178, %179 in 1 : vector<8x64xf32>, vector<8x64xf32> -> vector<8x128xf32>
    %181 = vector.extract_strided_slice %108 {offsets = [0, 0], sizes = [8, 64], strides = [1, 1]} : vector<8x128xf32> to vector<8x64xf32>
    %182 = vector.extract_strided_slice %88 {offsets = [0, 64], sizes = [8, 64], strides = [1, 1]} : vector<8x128xf32> to vector<8x64xf32>
    %183 = tpu.concatenate %181, %182 in 1 : vector<8x64xf32>, vector<8x64xf32> -> vector<8x128xf32>
    %184 = vector.extract_strided_slice %128 {offsets = [0, 0], sizes = [8, 64], strides = [1, 1]} : vector<8x128xf32> to vector<8x64xf32>
    %185 = vector.extract_strided_slice %68 {offsets = [0, 64], sizes = [8, 64], strides = [1, 1]} : vector<8x128xf32> to vector<8x64xf32>
    %186 = tpu.concatenate %184, %185 in 1 : vector<8x64xf32>, vector<8x64xf32> -> vector<8x128xf32>
    %187 = vector.extract_strided_slice %148 {offsets = [0, 0], sizes = [8, 64], strides = [1, 1]} : vector<8x128xf32> to vector<8x64xf32>
    %188 = vector.extract_strided_slice %48 {offsets = [0, 64], sizes = [8, 64], strides = [1, 1]} : vector<8x128xf32> to vector<8x64xf32>
    %189 = tpu.concatenate %187, %188 in 1 : vector<8x64xf32>, vector<8x64xf32> -> vector<8x128xf32>
    %190 = vector.extract_strided_slice %168 {offsets = [0, 0], sizes = [8, 64], strides = [1, 1]} : vector<8x128xf32> to vector<8x64xf32>
    %191 = vector.extract_strided_slice %28 {offsets = [0, 64], sizes = [8, 64], strides = [1, 1]} : vector<8x128xf32> to vector<8x64xf32>
    %192 = tpu.concatenate %190, %191 in 1 : vector<8x64xf32>, vector<8x64xf32> -> vector<8x128xf32>
    %193 = tpu.concatenate %171, %174, %177, %180, %183, %186, %189, %192 in 0 : vector<8x128xf32>, vector<8x128xf32>, vector<8x128xf32>, vector<8x128xf32>, vector<8x128xf32>, vector<8x128xf32>, vector<8x128xf32>, vector<8x128xf32> -> vector<64x128xf32>
    %194 = tpu.concatenate %192, %189, %186, %183, %180, %177, %174, %171 in 0 : vector<8x128xf32>, vector<8x128xf32>, vector<8x128xf32>, vector<8x128xf32>, vector<8x128xf32>, vector<8x128xf32>, vector<8x128xf32>, vector<8x128xf32> -> vector<64x128xf32>
    %195 = tpu.concatenate %193, %194 in 1 : vector<64x128xf32>, vector<64x128xf32> -> vector<64x256xf32>
    %196 = arith.truncf %195 : vector<64x256xf32> to vector<64x256xbf16>
    %c0_36 = arith.constant 0 : index
    %c0_37 = arith.constant 0 : index
    %197 = vector.load %arg4[%c0_36, %c0_37] : memref<256x512xbf16, #tpu.memory_space<vmem>>, vector<256x512xbf16>
    %cst_38 = arith.constant dense<0.000000e+00> : vector<64x512xf32>
    %198 = tpu.matmul %196, %197, %cst_38 {dimension_numbers = #tpu.dot_dimension_numbers<[1], [0], [0], [1], [0, 0, 1, 1], [], []>} : vector<64x256xbf16>, vector<256x512xbf16>, vector<64x512xf32> -> vector<64x512xf32>
    %c0_39 = arith.constant 0 : index
    %c0_40 = arith.constant 0 : index
    %199 = vector.load %arg6[%c0_39, %c0_40] : memref<1x512xf32, #tpu.memory_space<vmem>>, vector<1x512xf32>
    %200 = vector.broadcast %199 : vector<1x512xf32> to vector<64x512xf32>
    %201 = arith.addf %198, %200 : vector<64x512xf32>
    %c0_41 = arith.constant 0 : index
    %c0_42 = arith.constant 0 : index
    %202 = vector.load %arg17[%c0_41, %c0_42] : memref<64x512xf32, #tpu.memory_space<vmem>>, vector<64x512xf32>
    tpu.vector_store %arg17[%c0_41, %c0_42], %201 {strides = array<i32>} : memref<64x512xf32, #tpu.memory_space<vmem>>, vector<64x512xf32>,
    %c0_43 = arith.constant 0 : index
    %c0_44 = arith.constant 0 : index
    %203 = vector.load %arg5[%c0_43, %c0_44] : memref<128x512xbf16, #tpu.memory_space<vmem>>, vector<128x512xbf16>
    %cst_45 = arith.constant 0.000000e+00 : bf16
    %204 = vector.broadcast %cst_45 : bf16 to vector<8x128xbf16>
    %cst_46 = arith.constant 0.000000e+00 : f32
    %205 = vector.broadcast %cst_46 : f32 to vector<8x128xf32>
    %c0_47 = arith.constant 0 : index
    %c0_48 = arith.constant 0 : index
    %206 = vector.load %arg17[%c0_47, %c0_48] : memref<64x512xf32, #tpu.memory_space<vmem>>, vector<8x512xf32>
    %cst_49 = arith.constant dense<0.000000e+00> : vector<8x512xf32>
    %207 = tpu.matmul %204, %203, %cst_49 {dimension_numbers = #tpu.dot_dimension_numbers<[1], [0], [0], [1], [0, 0, 1, 1], [], []>} : vector<8x128xbf16>, vector<128x512xbf16>, vector<8x512xf32> -> vector<8x512xf32>
    %208 = arith.addf %207, %206 : vector<8x512xf32>
    %209 = vector.extract_strided_slice %208 {offsets = [0, 0], sizes = [8, 384], strides = [1, 1]} : vector<8x512xf32> to vector<8x384xf32>
    %210 = arith.negf %209 : vector<8x384xf32>
    %211 = math.exp %210 : vector<8x384xf32>
    %cst_50 = arith.constant 1.000000e+00 : f32
    %212 = vector.broadcast %cst_50 : f32 to vector<8x384xf32>
    %213 = arith.addf %212, %211 : vector<8x384xf32>
    %214 = arith.divf %212, %213 : vector<8x384xf32>
    %215 = vector.extract_strided_slice %208 {offsets = [0, 384], sizes = [8, 128], strides = [1, 1]} : vector<8x512xf32> to vector<8x128xf32>
    %216 = math.tanh %215 : vector<8x128xf32>
    %217 = vector.extract_strided_slice %214 {offsets = [0, 0], sizes = [8, 128], strides = [1, 1]} : vector<8x384xf32> to vector<8x128xf32>
    %218 = vector.extract_strided_slice %214 {offsets = [0, 128], sizes = [8, 128], strides = [1, 1]} : vector<8x384xf32> to vector<8x128xf32>
    %219 = vector.extract_strided_slice %214 {offsets = [0, 256], sizes = [8, 128], strides = [1, 1]} : vector<8x384xf32> to vector<8x128xf32>
    %220 = arith.mulf %218, %205 : vector<8x128xf32>
    %221 = arith.mulf %217, %216 : vector<8x128xf32>
    %222 = arith.addf %220, %221 : vector<8x128xf32>
    %223 = math.tanh %222 : vector<8x128xf32>
    %224 = arith.mulf %219, %223 : vector<8x128xf32>
    %225 = arith.truncf %224 : vector<8x128xf32> to vector<8x128xbf16>
    %c8_51 = arith.constant 8 : index
    %c0_52 = arith.constant 0 : index
    %226 = vector.load %arg17[%c8_51, %c0_52] : memref<64x512xf32, #tpu.memory_space<vmem>>, vector<8x512xf32>
    %cst_53 = arith.constant dense<0.000000e+00> : vector<8x512xf32>
    %227 = tpu.matmul %225, %203, %cst_53 {dimension_numbers = #tpu.dot_dimension_numbers<[1], [0], [0], [1], [0, 0, 1, 1], [], []>} : vector<8x128xbf16>, vector<128x512xbf16>, vector<8x512xf32> -> vector<8x512xf32>
    %228 = arith.addf %227, %226 : vector<8x512xf32>
    %229 = vector.extract_strided_slice %228 {offsets = [0, 0], sizes = [8, 384], strides = [1, 1]} : vector<8x512xf32> to vector<8x384xf32>
    %230 = arith.negf %229 : vector<8x384xf32>
    %231 = math.exp %230 : vector<8x384xf32>
    %cst_54 = arith.constant 1.000000e+00 : f32
    %232 = vector.broadcast %cst_54 : f32 to vector<8x384xf32>
    %233 = arith.addf %232, %231 : vector<8x384xf32>
    %234 = arith.divf %232, %233 : vector<8x384xf32>
    %235 = vector.extract_strided_slice %228 {offsets = [0, 384], sizes = [8, 128], strides = [1, 1]} : vector<8x512xf32> to vector<8x128xf32>
    %236 = math.tanh %235 : vector<8x128xf32>
    %237 = vector.extract_strided_slice %234 {offsets = [0, 0], sizes = [8, 128], strides = [1, 1]} : vector<8x384xf32> to vector<8x128xf32>
    %238 = vector.extract_strided_slice %234 {offsets = [0, 128], sizes = [8, 128], strides = [1, 1]} : vector<8x384xf32> to vector<8x128xf32>
    %239 = vector.extract_strided_slice %234 {offsets = [0, 256], sizes = [8, 128], strides = [1, 1]} : vector<8x384xf32> to vector<8x128xf32>
    %240 = arith.mulf %238, %222 : vector<8x128xf32>
    %241 = arith.mulf %237, %236 : vector<8x128xf32>
    %242 = arith.addf %240, %241 : vector<8x128xf32>
    %243 = math.tanh %242 : vector<8x128xf32>
    %244 = arith.mulf %239, %243 : vector<8x128xf32>
    %245 = arith.truncf %244 : vector<8x128xf32> to vector<8x128xbf16>
    %c16_55 = arith.constant 16 : index
    %c0_56 = arith.constant 0 : index
    %246 = vector.load %arg17[%c16_55, %c0_56] : memref<64x512xf32, #tpu.memory_space<vmem>>, vector<8x512xf32>
    %cst_57 = arith.constant dense<0.000000e+00> : vector<8x512xf32>
    %247 = tpu.matmul %245, %203, %cst_57 {dimension_numbers = #tpu.dot_dimension_numbers<[1], [0], [0], [1], [0, 0, 1, 1], [], []>} : vector<8x128xbf16>, vector<128x512xbf16>, vector<8x512xf32> -> vector<8x512xf32>
    %248 = arith.addf %247, %246 : vector<8x512xf32>
    %249 = vector.extract_strided_slice %248 {offsets = [0, 0], sizes = [8, 384], strides = [1, 1]} : vector<8x512xf32> to vector<8x384xf32>
    %250 = arith.negf %249 : vector<8x384xf32>
    %251 = math.exp %250 : vector<8x384xf32>
    %cst_58 = arith.constant 1.000000e+00 : f32
    %252 = vector.broadcast %cst_58 : f32 to vector<8x384xf32>
    %253 = arith.addf %252, %251 : vector<8x384xf32>
    %254 = arith.divf %252, %253 : vector<8x384xf32>
    %255 = vector.extract_strided_slice %248 {offsets = [0, 384], sizes = [8, 128], strides = [1, 1]} : vector<8x512xf32> to vector<8x128xf32>
    %256 = math.tanh %255 : vector<8x128xf32>
    %257 = vector.extract_strided_slice %254 {offsets = [0, 0], sizes = [8, 128], strides = [1, 1]} : vector<8x384xf32> to vector<8x128xf32>
    %258 = vector.extract_strided_slice %254 {offsets = [0, 128], sizes = [8, 128], strides = [1, 1]} : vector<8x384xf32> to vector<8x128xf32>
    %259 = vector.extract_strided_slice %254 {offsets = [0, 256], sizes = [8, 128], strides = [1, 1]} : vector<8x384xf32> to vector<8x128xf32>
    %260 = arith.mulf %258, %242 : vector<8x128xf32>
    %261 = arith.mulf %257, %256 : vector<8x128xf32>
    %262 = arith.addf %260, %261 : vector<8x128xf32>
    %263 = math.tanh %262 : vector<8x128xf32>
    %264 = arith.mulf %259, %263 : vector<8x128xf32>
    %265 = arith.truncf %264 : vector<8x128xf32> to vector<8x128xbf16>
    %c24_59 = arith.constant 24 : index
    %c0_60 = arith.constant 0 : index
    %266 = vector.load %arg17[%c24_59, %c0_60] : memref<64x512xf32, #tpu.memory_space<vmem>>, vector<8x512xf32>
    %cst_61 = arith.constant dense<0.000000e+00> : vector<8x512xf32>
    %267 = tpu.matmul %265, %203, %cst_61 {dimension_numbers = #tpu.dot_dimension_numbers<[1], [0], [0], [1], [0, 0, 1, 1], [], []>} : vector<8x128xbf16>, vector<128x512xbf16>, vector<8x512xf32> -> vector<8x512xf32>
    %268 = arith.addf %267, %266 : vector<8x512xf32>
    %269 = vector.extract_strided_slice %268 {offsets = [0, 0], sizes = [8, 384], strides = [1, 1]} : vector<8x512xf32> to vector<8x384xf32>
    %270 = arith.negf %269 : vector<8x384xf32>
    %271 = math.exp %270 : vector<8x384xf32>
    %cst_62 = arith.constant 1.000000e+00 : f32
    %272 = vector.broadcast %cst_62 : f32 to vector<8x384xf32>
    %273 = arith.addf %272, %271 : vector<8x384xf32>
    %274 = arith.divf %272, %273 : vector<8x384xf32>
    %275 = vector.extract_strided_slice %268 {offsets = [0, 384], sizes = [8, 128], strides = [1, 1]} : vector<8x512xf32> to vector<8x128xf32>
    %276 = math.tanh %275 : vector<8x128xf32>
    %277 = vector.extract_strided_slice %274 {offsets = [0, 0], sizes = [8, 128], strides = [1, 1]} : vector<8x384xf32> to vector<8x128xf32>
    %278 = vector.extract_strided_slice %274 {offsets = [0, 128], sizes = [8, 128], strides = [1, 1]} : vector<8x384xf32> to vector<8x128xf32>
    %279 = vector.extract_strided_slice %274 {offsets = [0, 256], sizes = [8, 128], strides = [1, 1]} : vector<8x384xf32> to vector<8x128xf32>
    %280 = arith.mulf %278, %262 : vector<8x128xf32>
    %281 = arith.mulf %277, %276 : vector<8x128xf32>
    %282 = arith.addf %280, %281 : vector<8x128xf32>
    %283 = math.tanh %282 : vector<8x128xf32>
    %284 = arith.mulf %279, %283 : vector<8x128xf32>
    %285 = arith.truncf %284 : vector<8x128xf32> to vector<8x128xbf16>
    %c32_63 = arith.constant 32 : index
    %c0_64 = arith.constant 0 : index
    %286 = vector.load %arg17[%c32_63, %c0_64] : memref<64x512xf32, #tpu.memory_space<vmem>>, vector<8x512xf32>
    %cst_65 = arith.constant dense<0.000000e+00> : vector<8x512xf32>
    %287 = tpu.matmul %285, %203, %cst_65 {dimension_numbers = #tpu.dot_dimension_numbers<[1], [0], [0], [1], [0, 0, 1, 1], [], []>} : vector<8x128xbf16>, vector<128x512xbf16>, vector<8x512xf32> -> vector<8x512xf32>
    %288 = arith.addf %287, %286 : vector<8x512xf32>
    %289 = vector.extract_strided_slice %288 {offsets = [0, 0], sizes = [8, 384], strides = [1, 1]} : vector<8x512xf32> to vector<8x384xf32>
    %290 = arith.negf %289 : vector<8x384xf32>
    %291 = math.exp %290 : vector<8x384xf32>
    %cst_66 = arith.constant 1.000000e+00 : f32
    %292 = vector.broadcast %cst_66 : f32 to vector<8x384xf32>
    %293 = arith.addf %292, %291 : vector<8x384xf32>
    %294 = arith.divf %292, %293 : vector<8x384xf32>
    %295 = vector.extract_strided_slice %288 {offsets = [0, 384], sizes = [8, 128], strides = [1, 1]} : vector<8x512xf32> to vector<8x128xf32>
    %296 = math.tanh %295 : vector<8x128xf32>
    %297 = vector.extract_strided_slice %294 {offsets = [0, 0], sizes = [8, 128], strides = [1, 1]} : vector<8x384xf32> to vector<8x128xf32>
    %298 = vector.extract_strided_slice %294 {offsets = [0, 128], sizes = [8, 128], strides = [1, 1]} : vector<8x384xf32> to vector<8x128xf32>
    %299 = vector.extract_strided_slice %294 {offsets = [0, 256], sizes = [8, 128], strides = [1, 1]} : vector<8x384xf32> to vector<8x128xf32>
    %300 = arith.mulf %298, %282 : vector<8x128xf32>
    %301 = arith.mulf %297, %296 : vector<8x128xf32>
    %302 = arith.addf %300, %301 : vector<8x128xf32>
    %303 = math.tanh %302 : vector<8x128xf32>
    %304 = arith.mulf %299, %303 : vector<8x128xf32>
    %305 = arith.truncf %304 : vector<8x128xf32> to vector<8x128xbf16>
    %c40_67 = arith.constant 40 : index
    %c0_68 = arith.constant 0 : index
    %306 = vector.load %arg17[%c40_67, %c0_68] : memref<64x512xf32, #tpu.memory_space<vmem>>, vector<8x512xf32>
    %cst_69 = arith.constant dense<0.000000e+00> : vector<8x512xf32>
    %307 = tpu.matmul %305, %203, %cst_69 {dimension_numbers = #tpu.dot_dimension_numbers<[1], [0], [0], [1], [0, 0, 1, 1], [], []>} : vector<8x128xbf16>, vector<128x512xbf16>, vector<8x512xf32> -> vector<8x512xf32>
    %308 = arith.addf %307, %306 : vector<8x512xf32>
    %309 = vector.extract_strided_slice %308 {offsets = [0, 0], sizes = [8, 384], strides = [1, 1]} : vector<8x512xf32> to vector<8x384xf32>
    %310 = arith.negf %309 : vector<8x384xf32>
    %311 = math.exp %310 : vector<8x384xf32>
    %cst_70 = arith.constant 1.000000e+00 : f32
    %312 = vector.broadcast %cst_70 : f32 to vector<8x384xf32>
    %313 = arith.addf %312, %311 : vector<8x384xf32>
    %314 = arith.divf %312, %313 : vector<8x384xf32>
    %315 = vector.extract_strided_slice %308 {offsets = [0, 384], sizes = [8, 128], strides = [1, 1]} : vector<8x512xf32> to vector<8x128xf32>
    %316 = math.tanh %315 : vector<8x128xf32>
    %317 = vector.extract_strided_slice %314 {offsets = [0, 0], sizes = [8, 128], strides = [1, 1]} : vector<8x384xf32> to vector<8x128xf32>
    %318 = vector.extract_strided_slice %314 {offsets = [0, 128], sizes = [8, 128], strides = [1, 1]} : vector<8x384xf32> to vector<8x128xf32>
    %319 = vector.extract_strided_slice %314 {offsets = [0, 256], sizes = [8, 128], strides = [1, 1]} : vector<8x384xf32> to vector<8x128xf32>
    %320 = arith.mulf %318, %302 : vector<8x128xf32>
    %321 = arith.mulf %317, %316 : vector<8x128xf32>
    %322 = arith.addf %320, %321 : vector<8x128xf32>
    %323 = math.tanh %322 : vector<8x128xf32>
    %324 = arith.mulf %319, %323 : vector<8x128xf32>
    %325 = arith.truncf %324 : vector<8x128xf32> to vector<8x128xbf16>
    %c48_71 = arith.constant 48 : index
    %c0_72 = arith.constant 0 : index
    %326 = vector.load %arg17[%c48_71, %c0_72] : memref<64x512xf32, #tpu.memory_space<vmem>>, vector<8x512xf32>
    %cst_73 = arith.constant dense<0.000000e+00> : vector<8x512xf32>
    %327 = tpu.matmul %325, %203, %cst_73 {dimension_numbers = #tpu.dot_dimension_numbers<[1], [0], [0], [1], [0, 0, 1, 1], [], []>} : vector<8x128xbf16>, vector<128x512xbf16>, vector<8x512xf32> -> vector<8x512xf32>
    %328 = arith.addf %327, %326 : vector<8x512xf32>
    %329 = vector.extract_strided_slice %328 {offsets = [0, 0], sizes = [8, 384], strides = [1, 1]} : vector<8x512xf32> to vector<8x384xf32>
    %330 = arith.negf %329 : vector<8x384xf32>
    %331 = math.exp %330 : vector<8x384xf32>
    %cst_74 = arith.constant 1.000000e+00 : f32
    %332 = vector.broadcast %cst_74 : f32 to vector<8x384xf32>
    %333 = arith.addf %332, %331 : vector<8x384xf32>
    %334 = arith.divf %332, %333 : vector<8x384xf32>
    %335 = vector.extract_strided_slice %328 {offsets = [0, 384], sizes = [8, 128], strides = [1, 1]} : vector<8x512xf32> to vector<8x128xf32>
    %336 = math.tanh %335 : vector<8x128xf32>
    %337 = vector.extract_strided_slice %334 {offsets = [0, 0], sizes = [8, 128], strides = [1, 1]} : vector<8x384xf32> to vector<8x128xf32>
    %338 = vector.extract_strided_slice %334 {offsets = [0, 128], sizes = [8, 128], strides = [1, 1]} : vector<8x384xf32> to vector<8x128xf32>
    %339 = vector.extract_strided_slice %334 {offsets = [0, 256], sizes = [8, 128], strides = [1, 1]} : vector<8x384xf32> to vector<8x128xf32>
    %340 = arith.mulf %338, %322 : vector<8x128xf32>
    %341 = arith.mulf %337, %336 : vector<8x128xf32>
    %342 = arith.addf %340, %341 : vector<8x128xf32>
    %343 = math.tanh %342 : vector<8x128xf32>
    %344 = arith.mulf %339, %343 : vector<8x128xf32>
    %345 = arith.truncf %344 : vector<8x128xf32> to vector<8x128xbf16>
    %c56_75 = arith.constant 56 : index
    %c0_76 = arith.constant 0 : index
    %346 = vector.load %arg17[%c56_75, %c0_76] : memref<64x512xf32, #tpu.memory_space<vmem>>, vector<8x512xf32>
    %cst_77 = arith.constant dense<0.000000e+00> : vector<8x512xf32>
    %347 = tpu.matmul %345, %203, %cst_77 {dimension_numbers = #tpu.dot_dimension_numbers<[1], [0], [0], [1], [0, 0, 1, 1], [], []>} : vector<8x128xbf16>, vector<128x512xbf16>, vector<8x512xf32> -> vector<8x512xf32>
    %348 = arith.addf %347, %346 : vector<8x512xf32>
    %349 = vector.extract_strided_slice %348 {offsets = [0, 0], sizes = [8, 384], strides = [1, 1]} : vector<8x512xf32> to vector<8x384xf32>
    %350 = arith.negf %349 : vector<8x384xf32>
    %351 = math.exp %350 : vector<8x384xf32>
    %cst_78 = arith.constant 1.000000e+00 : f32
    %352 = vector.broadcast %cst_78 : f32 to vector<8x384xf32>
    %353 = arith.addf %352, %351 : vector<8x384xf32>
    %354 = arith.divf %352, %353 : vector<8x384xf32>
    %355 = vector.extract_strided_slice %348 {offsets = [0, 384], sizes = [8, 128], strides = [1, 1]} : vector<8x512xf32> to vector<8x128xf32>
    %356 = math.tanh %355 : vector<8x128xf32>
    %357 = vector.extract_strided_slice %354 {offsets = [0, 0], sizes = [8, 128], strides = [1, 1]} : vector<8x384xf32> to vector<8x128xf32>
    %358 = vector.extract_strided_slice %354 {offsets = [0, 128], sizes = [8, 128], strides = [1, 1]} : vector<8x384xf32> to vector<8x128xf32>
    %359 = vector.extract_strided_slice %354 {offsets = [0, 256], sizes = [8, 128], strides = [1, 1]} : vector<8x384xf32> to vector<8x128xf32>
    %360 = arith.mulf %358, %342 : vector<8x128xf32>
    %361 = arith.mulf %357, %356 : vector<8x128xf32>
    %362 = arith.addf %360, %361 : vector<8x128xf32>
    %363 = math.tanh %362 : vector<8x128xf32>
    %364 = arith.mulf %359, %363 : vector<8x128xf32>
    %365 = vector.extract_strided_slice %224 {offsets = [0, 0], sizes = [8, 64], strides = [1, 1]} : vector<8x128xf32> to vector<8x64xf32>
    %366 = vector.extract_strided_slice %364 {offsets = [0, 64], sizes = [8, 64], strides = [1, 1]} : vector<8x128xf32> to vector<8x64xf32>
    %367 = tpu.concatenate %365, %366 in 1 : vector<8x64xf32>, vector<8x64xf32> -> vector<8x128xf32>
    %368 = vector.extract_strided_slice %244 {offsets = [0, 0], sizes = [8, 64], strides = [1, 1]} : vector<8x128xf32> to vector<8x64xf32>
    %369 = vector.extract_strided_slice %344 {offsets = [0, 64], sizes = [8, 64], strides = [1, 1]} : vector<8x128xf32> to vector<8x64xf32>
    %370 = tpu.concatenate %368, %369 in 1 : vector<8x64xf32>, vector<8x64xf32> -> vector<8x128xf32>
    %371 = vector.extract_strided_slice %264 {offsets = [0, 0], sizes = [8, 64], strides = [1, 1]} : vector<8x128xf32> to vector<8x64xf32>
    %372 = vector.extract_strided_slice %324 {offsets = [0, 64], sizes = [8, 64], strides = [1, 1]} : vector<8x128xf32> to vector<8x64xf32>
    %373 = tpu.concatenate %371, %372 in 1 : vector<8x64xf32>, vector<8x64xf32> -> vector<8x128xf32>
    %374 = vector.extract_strided_slice %284 {offsets = [0, 0], sizes = [8, 64], strides = [1, 1]} : vector<8x128xf32> to vector<8x64xf32>
    %375 = vector.extract_strided_slice %304 {offsets = [0, 64], sizes = [8, 64], strides = [1, 1]} : vector<8x128xf32> to vector<8x64xf32>
    %376 = tpu.concatenate %374, %375 in 1 : vector<8x64xf32>, vector<8x64xf32> -> vector<8x128xf32>
    %377 = vector.extract_strided_slice %304 {offsets = [0, 0], sizes = [8, 64], strides = [1, 1]} : vector<8x128xf32> to vector<8x64xf32>
    %378 = vector.extract_strided_slice %284 {offsets = [0, 64], sizes = [8, 64], strides = [1, 1]} : vector<8x128xf32> to vector<8x64xf32>
    %379 = tpu.concatenate %377, %378 in 1 : vector<8x64xf32>, vector<8x64xf32> -> vector<8x128xf32>
    %380 = vector.extract_strided_slice %324 {offsets = [0, 0], sizes = [8, 64], strides = [1, 1]} : vector<8x128xf32> to vector<8x64xf32>
    %381 = vector.extract_strided_slice %264 {offsets = [0, 64], sizes = [8, 64], strides = [1, 1]} : vector<8x128xf32> to vector<8x64xf32>
    %382 = tpu.concatenate %380, %381 in 1 : vector<8x64xf32>, vector<8x64xf32> -> vector<8x128xf32>
    %383 = vector.extract_strided_slice %344 {offsets = [0, 0], sizes = [8, 64], strides = [1, 1]} : vector<8x128xf32> to vector<8x64xf32>
    %384 = vector.extract_strided_slice %244 {offsets = [0, 64], sizes = [8, 64], strides = [1, 1]} : vector<8x128xf32> to vector<8x64xf32>
    %385 = tpu.concatenate %383, %384 in 1 : vector<8x64xf32>, vector<8x64xf32> -> vector<8x128xf32>
    %386 = vector.extract_strided_slice %364 {offsets = [0, 0], sizes = [8, 64], strides = [1, 1]} : vector<8x128xf32> to vector<8x64xf32>
    %387 = vector.extract_strided_slice %224 {offsets = [0, 64], sizes = [8, 64], strides = [1, 1]} : vector<8x128xf32> to vector<8x64xf32>
    %388 = tpu.concatenate %386, %387 in 1 : vector<8x64xf32>, vector<8x64xf32> -> vector<8x128xf32>
    %389 = tpu.concatenate %367, %370, %373, %376, %379, %382, %385, %388 in 0 : vector<8x128xf32>, vector<8x128xf32>, vector<8x128xf32>, vector<8x128xf32>, vector<8x128xf32>, vector<8x128xf32>, vector<8x128xf32>, vector<8x128xf32> -> vector<64x128xf32>
    %390 = arith.truncf %389 : vector<64x128xf32> to vector<64x128xbf16>
    %c0_79 = arith.constant 0 : index
    %c0_80 = arith.constant 0 : index
    %391 = vector.load %arg7[%c0_79, %c0_80] : memref<128x64xbf16, #tpu.memory_space<vmem>>, vector<128x64xbf16>
    %cst_81 = arith.constant dense<0.000000e+00> : vector<64x64xf32>
    %392 = tpu.matmul %390, %391, %cst_81 {dimension_numbers = #tpu.dot_dimension_numbers<[1], [0], [0], [1], [0, 0, 1, 1], [], []>} : vector<64x128xbf16>, vector<128x64xbf16>, vector<64x64xf32> -> vector<64x64xf32>
    %c0_82 = arith.constant 0 : index
    %c0_83 = arith.constant 0 : index
    %393 = vector.load %arg8[%c0_82, %c0_83] : memref<1x64xf32, #tpu.memory_space<vmem>>, vector<1x64xf32>
    %394 = vector.broadcast %393 : vector<1x64xf32> to vector<64x64xf32>
    %395 = arith.addf %392, %394 : vector<64x64xf32>
    %396 = math.tanh %395 : vector<64x64xf32>
    %397 = arith.truncf %396 : vector<64x64xf32> to vector<64x64xbf16>
    %c0_84 = arith.constant 0 : index
    %c0_85 = arith.constant 0 : index
    %398 = vector.load %arg9[%c0_84, %c0_85] : memref<64x1xbf16, #tpu.memory_space<vmem>>, vector<64x1xbf16>
    %cst_86 = arith.constant dense<0.000000e+00> : vector<64x1xf32>
    %399 = tpu.matmul %397, %398, %cst_86 {dimension_numbers = #tpu.dot_dimension_numbers<[1], [0], [0], [1], [0, 0, 1, 1], [], []>} : vector<64x64xbf16>, vector<64x1xbf16>, vector<64x1xf32> -> vector<64x1xf32>
    %c0_87 = arith.constant 0 : index
    %c0_88 = arith.constant 0 : index
    %400 = vector.load %arg10[%c0_87, %c0_88] : memref<1x1xf32, #tpu.memory_space<vmem>>, vector<1x1xf32>
    %401 = vector.broadcast %400 : vector<1x1xf32> to vector<64x1xf32>
    %402 = arith.addf %399, %401 : vector<64x1xf32>
    %403 = vector.extract_strided_slice %402 {offsets = [0, 0], sizes = [8, 1], strides = [1, 1]} : vector<64x1xf32> to vector<8x1xf32>
    %404 = vector.extract_strided_slice %402 {offsets = [8, 0], sizes = [8, 1], strides = [1, 1]} : vector<64x1xf32> to vector<8x1xf32>
    %405 = vector.extract_strided_slice %402 {offsets = [16, 0], sizes = [8, 1], strides = [1, 1]} : vector<64x1xf32> to vector<8x1xf32>
    %406 = vector.extract_strided_slice %402 {offsets = [24, 0], sizes = [8, 1], strides = [1, 1]} : vector<64x1xf32> to vector<8x1xf32>
    %407 = vector.extract_strided_slice %402 {offsets = [32, 0], sizes = [8, 1], strides = [1, 1]} : vector<64x1xf32> to vector<8x1xf32>
    %408 = vector.extract_strided_slice %402 {offsets = [40, 0], sizes = [8, 1], strides = [1, 1]} : vector<64x1xf32> to vector<8x1xf32>
    %409 = vector.extract_strided_slice %402 {offsets = [48, 0], sizes = [8, 1], strides = [1, 1]} : vector<64x1xf32> to vector<8x1xf32>
    %410 = vector.extract_strided_slice %402 {offsets = [56, 0], sizes = [8, 1], strides = [1, 1]} : vector<64x1xf32> to vector<8x1xf32>
    %411 = arith.maximumf %403, %404 : vector<8x1xf32>
    %412 = arith.maximumf %411, %405 : vector<8x1xf32>
    %413 = arith.maximumf %412, %406 : vector<8x1xf32>
    %414 = arith.maximumf %413, %407 : vector<8x1xf32>
    %415 = arith.maximumf %414, %408 : vector<8x1xf32>
    %416 = arith.maximumf %415, %409 : vector<8x1xf32>
    %417 = arith.maximumf %416, %410 : vector<8x1xf32>
    %418 = arith.subf %403, %417 : vector<8x1xf32>
    %419 = math.exp %418 : vector<8x1xf32>
    %420 = arith.subf %404, %417 : vector<8x1xf32>
    %421 = math.exp %420 : vector<8x1xf32>
    %422 = arith.subf %405, %417 : vector<8x1xf32>
    %423 = math.exp %422 : vector<8x1xf32>
    %424 = arith.subf %406, %417 : vector<8x1xf32>
    %425 = math.exp %424 : vector<8x1xf32>
    %426 = arith.subf %407, %417 : vector<8x1xf32>
    %427 = math.exp %426 : vector<8x1xf32>
    %428 = arith.subf %408, %417 : vector<8x1xf32>
    %429 = math.exp %428 : vector<8x1xf32>
    %430 = arith.subf %409, %417 : vector<8x1xf32>
    %431 = math.exp %430 : vector<8x1xf32>
    %432 = arith.subf %410, %417 : vector<8x1xf32>
    %433 = math.exp %432 : vector<8x1xf32>
    %434 = arith.addf %419, %421 : vector<8x1xf32>
    %435 = arith.addf %434, %423 : vector<8x1xf32>
    %436 = arith.addf %435, %425 : vector<8x1xf32>
    %437 = arith.addf %436, %427 : vector<8x1xf32>
    %438 = arith.addf %437, %429 : vector<8x1xf32>
    %439 = arith.addf %438, %431 : vector<8x1xf32>
    %440 = arith.addf %439, %433 : vector<8x1xf32>
    %441 = tpu.reciprocal %440 {approx = true} : vector<8x1xf32> -> vector<8x1xf32>
    %442 = arith.mulf %419, %441 : vector<8x1xf32>
    %443 = arith.mulf %421, %441 : vector<8x1xf32>
    %444 = arith.mulf %423, %441 : vector<8x1xf32>
    %445 = arith.mulf %425, %441 : vector<8x1xf32>
    %446 = arith.mulf %427, %441 : vector<8x1xf32>
    %447 = arith.mulf %429, %441 : vector<8x1xf32>
    %448 = arith.mulf %431, %441 : vector<8x1xf32>
    %449 = arith.mulf %433, %441 : vector<8x1xf32>
    %450 = tpu.concatenate %442, %443, %444, %445, %446, %447, %448, %449 in 0 : vector<8x1xf32>, vector<8x1xf32>, vector<8x1xf32>, vector<8x1xf32>, vector<8x1xf32>, vector<8x1xf32>, vector<8x1xf32>, vector<8x1xf32> -> vector<64x1xf32>
    %c0_89 = arith.constant 0 : index
    %c0_90 = arith.constant 0 : index
    %451 = vector.load %arg16[%c0_89, %c0_90] : memref<64x1xf32, #tpu.memory_space<vmem>>, vector<64x1xf32>
    tpu.vector_store %arg16[%c0_89, %c0_90], %450 {strides = array<i32>} : memref<64x1xf32, #tpu.memory_space<vmem>>, vector<64x1xf32>,
    %452 = vector.broadcast %442 : vector<8x1xf32> to vector<8x128xf32>
    %453 = arith.mulf %452, %367 : vector<8x128xf32>
    %454 = vector.broadcast %443 : vector<8x1xf32> to vector<8x128xf32>
    %455 = arith.mulf %454, %370 : vector<8x128xf32>
    %456 = arith.addf %453, %455 : vector<8x128xf32>
    %457 = vector.broadcast %444 : vector<8x1xf32> to vector<8x128xf32>
    %458 = arith.mulf %457, %373 : vector<8x128xf32>
    %459 = arith.addf %456, %458 : vector<8x128xf32>
    %460 = vector.broadcast %445 : vector<8x1xf32> to vector<8x128xf32>
    %461 = arith.mulf %460, %376 : vector<8x128xf32>
    %462 = arith.addf %459, %461 : vector<8x128xf32>
    %463 = vector.broadcast %446 : vector<8x1xf32> to vector<8x128xf32>
    %464 = arith.mulf %463, %379 : vector<8x128xf32>
    %465 = arith.addf %462, %464 : vector<8x128xf32>
    %466 = vector.broadcast %447 : vector<8x1xf32> to vector<8x128xf32>
    %467 = arith.mulf %466, %382 : vector<8x128xf32>
    %468 = arith.addf %465, %467 : vector<8x128xf32>
    %469 = vector.broadcast %448 : vector<8x1xf32> to vector<8x128xf32>
    %470 = arith.mulf %469, %385 : vector<8x128xf32>
    %471 = arith.addf %468, %470 : vector<8x128xf32>
    %472 = vector.broadcast %449 : vector<8x1xf32> to vector<8x128xf32>
    %473 = arith.mulf %472, %388 : vector<8x128xf32>
    %474 = arith.addf %471, %473 : vector<8x128xf32>
    %475 = arith.truncf %474 : vector<8x128xf32> to vector<8x128xbf16>
    %c0_91 = arith.constant 0 : index
    %c0_92 = arith.constant 0 : index
    %476 = vector.load %arg11[%c0_91, %c0_92] : memref<128x64xbf16, #tpu.memory_space<vmem>>, vector<128x64xbf16>
    %cst_93 = arith.constant dense<0.000000e+00> : vector<8x64xf32>
    %477 = tpu.matmul %475, %476, %cst_93 {dimension_numbers = #tpu.dot_dimension_numbers<[1], [0], [0], [1], [0, 0, 1, 1], [], []>} : vector<8x128xbf16>, vector<128x64xbf16>, vector<8x64xf32> -> vector<8x64xf32>
    %c0_94 = arith.constant 0 : index
    %c0_95 = arith.constant 0 : index
    %478 = vector.load %arg12[%c0_94, %c0_95] : memref<1x64xf32, #tpu.memory_space<vmem>>, vector<1x64xf32>
    %479 = vector.broadcast %478 : vector<1x64xf32> to vector<8x64xf32>
    %480 = arith.addf %477, %479 : vector<8x64xf32>
    %cst_96 = arith.constant 0.000000e+00 : f32
    %481 = vector.broadcast %cst_96 : f32 to vector<8x64xf32>
    %482 = arith.maximumf %480, %481 : vector<8x64xf32>
    %483 = arith.truncf %482 : vector<8x64xf32> to vector<8x64xbf16>
    %c0_97 = arith.constant 0 : index
    %c0_98 = arith.constant 0 : index
    %484 = vector.load %arg13[%c0_97, %c0_98] : memref<64x1xbf16, #tpu.memory_space<vmem>>, vector<64x1xbf16>
    %cst_99 = arith.constant dense<0.000000e+00> : vector<8x1xf32>
    %485 = tpu.matmul %483, %484, %cst_99 {dimension_numbers = #tpu.dot_dimension_numbers<[1], [0], [0], [1], [0, 0, 1, 1], [], []>} : vector<8x64xbf16>, vector<64x1xbf16>, vector<8x1xf32> -> vector<8x1xf32>
    %c0_100 = arith.constant 0 : index
    %c0_101 = arith.constant 0 : index
    %486 = vector.load %arg14[%c0_100, %c0_101] : memref<1x1xf32, #tpu.memory_space<vmem>>, vector<1x1xf32>
    %487 = vector.broadcast %486 : vector<1x1xf32> to vector<8x1xf32>
    %488 = arith.addf %485, %487 : vector<8x1xf32>
    %c0_102 = arith.constant 0 : index
    %c0_103 = arith.constant 0 : index
    %489 = vector.load %arg15[%c0_102, %c0_103] : memref<8x1xf32, #tpu.memory_space<vmem>>, vector<8x1xf32>
    tpu.vector_store %arg15[%c0_102, %c0_103], %488 {strides = array<i32>} : memref<8x1xf32, #tpu.memory_space<vmem>>, vector<8x1xf32>,
    return
  }
}

</mosaic_0001>

<bundles_post_ra>
// kernel: tpu_custom_call.1
= control target key start
LH: loop header
LB: loop body
LE: loop exit
PB: predicated region body
PF: predicated region fallthrough
CT: control target
= control target key end

     0   :  { %s6924_s0 = inlined_call_operand.hbm [shape: bf16[64,256], index: 0, kind: input, shape index: {}]   ;;  %s6925_s1 = inlined_call_operand.hbm [shape: bf16[256,512], index: 1, kind: input, shape index: {}]   ;;  %s6926_s2 = inlined_call_operand.vmem [shape: bf16[128,512], index: 2, kind: input, shape index: {}]   ;;  %s6927_s3 = inlined_call_operand.vmem [shape: f32[1,512], index: 3, kind: input, shape index: {}]   ;;  %s6928_s4 = inlined_call_operand.hbm [shape: bf16[256,512], index: 4, kind: input, shape index: {}]   ;;  %s6929_s5 = inlined_call_operand.hbm [shape: bf16[128,512], index: 5, kind: input, shape index: {}]   ;;  %s6930_s6 = inlined_call_operand.vmem [shape: f32[1,512], index: 6, kind: input, shape index: {}]   ;;  %s6931_s7 = inlined_call_operand.vmem [shape: bf16[128,64], index: 7, kind: input, shape index: {}]   ;;  %s6932_s8 = inlined_call_operand.vmem [shape: f32[1,64], index: 8, kind: input, shape index: {}]   ;;  %s6933_s9 = inlined_call_operand.vmem [shape: bf16[64,1], index: 9, kind: input, shape index: {}]   ;;  %s6934_s10 = inlined_call_operand.<no memory space> [shape: f32[1,1], index: 10, kind: input, shape index: {}]   ;;  %s6935_s11 = inlined_call_operand.vmem [shape: bf16[128,64], index: 11, kind: input, shape index: {}]   ;;  %s6936_s12 = inlined_call_operand.vmem [shape: f32[1,64], index: 12, kind: input, shape index: {}]   ;;  %s6937_s13 = inlined_call_operand.vmem [shape: bf16[64,1], index: 13, kind: input, shape index: {}]   ;;  %s6938_s15 = inlined_call_operand.vmem [shape: f32[8,1], index: 15, kind: output, shape index: {0}]   ;;  %s6939_s16 = inlined_call_operand.vmem [shape: f32[64,1], index: 16, kind: output, shape index: {1}]   ;;  %s6940_s14 = inlined_call_operand.<no memory space> [shape: f32[1,1], index: 14, kind: input, shape index: {}]  }
   0x1   :  { %6949 = sst [smem:[#allocation35_spill]] %s6924_s0  ;;  %v22_v0 = vstv %s6934_s10  ;;  %v24_v1 = vstv %s6940_s14 }
   0x2   :  { %23 = vst [vmem:[#allocation3] sm:$0x1] %v22_v0  ;;  %25 = vst [vmem:[#allocation4] sm:$0x1] %v24_v1 }
   0x3   :  { %26 = vsyncpa [#allocation6], 0 }
   0x4   :  { %27 = vsyncpa [#allocation8], 0 }
   0x5   :  { %28 = vsyncpa [#allocation11], 0  ;;  %s5262_s25 = smov [#allocation7]  }
   0x6   :  { %s46_s26 = sshll.u32 %s5262_s25, 4  ;;  %s47_s26 = int_to_ptr.vmem [resolvable:$true] %s46_s26 }
   0x7   :  { %s5184_s27 = scalar_lea.vmem %s47_s26, 8192  ;;  %p5189_p1 = scmp.lt.s32.totalorder %s47_s26, %s47_s26 }
   0x8   :  { %p5185_p0 = scmp.ne.s32.totalorder %s47_s26, %s5184_s27  ;;  %p5190_p2 = scmp.lt.s32.totalorder %s5184_s27, %s5184_s27 }
   0xa   :  { %p5191_p3 = por %p5190_p2, %p5189_p1 }
   0xc   :  { %p5192_p4 = pnand %p5191_p3, %p5185_p0 }
   0xe   :  { %5195 = shalt.err (!%p5192_p4)
}
   0xf   :  { %s5263_s10 = smov 256   ;;  %s5264_s28 = smov 16  }
  0x10   :  { %52 = dma.hbm_to_vmem [thread:$0]  %s6925_s1, 8192, %s47_s26, [#allocation8], %s5263_s10, %s5263_s10, %s5264_s28  }
  0x11   :  { %s5265_s30 = smov [#allocation5]  }
  0x12   :  { %s34_s0 = sshll.u32 %s5265_s30, 4  ;;  %s35_s0 = int_to_ptr.vmem [resolvable:$true] %s34_s0 }
  0x13   :  { %s5204_s17 = scalar_lea.vmem %s35_s0, 1024  ;;  %p5209_p6 = scmp.lt.s32.totalorder %s35_s0, %s35_s0 }
  0x14   :  { %p5205_p5 = scmp.ne.s32.totalorder %s35_s0, %s5204_s17  ;;  %p5210_p7 = scmp.lt.s32.totalorder %s5204_s17, %s5204_s17 }
  0x16   :  { %p5211_p8 = por %p5210_p7, %p5209_p6 }
  0x18   :  { %p5212_p9 = pnand %p5211_p8, %p5205_p5 }
  0x1a   :  { %5215 = shalt.err (!%p5212_p9)
}
  0x1b   :  { %s5266_s18 = smov 128   ;;  %s5267_s19 = smov 8  }
  0x1c   :  { %s6950_s22 = sld [smem:[#allocation35_spill]]  ;;  %s5268_s23 = smov [#allocation9]  }
  0x1d   :  { %s62_s24 = sshll.u32 %s5268_s23, 4  ;;  %s5269_s25 = smov [#allocation10]   ;;  %s63_s24 = int_to_ptr.vmem [resolvable:$true] %s62_s24 }
  0x1e   :  { %s74_s1 = sshll.u32 %s5269_s25, 4  ;;  %s5224_s26 = scalar_lea.vmem %s63_s24, 8192  ;;  %s75_s1 = int_to_ptr.vmem [resolvable:$true] %s74_s1 }
  0x1f   :  { %p5225_p10 = scmp.ne.s32.totalorder %s63_s24, %s5224_s26  ;;  %p5229_p11 = scmp.lt.s32.totalorder %s63_s24, %s63_s24 }
  0x20   :  { %p5230_p12 = scmp.lt.s32.totalorder %s5224_s26, %s5224_s26 }
  0x22   :  { %40 = dma.hbm_to_vmem [thread:$0]  %s6950_s22, 1024, %s35_s0, [#allocation6], %s5266_s18, %s5266_s18, %s5267_s19  }
  0x23   :  { %p5231_p13 = por %p5230_p12, %p5229_p11 }
  0x25   :  { %p5232_p0 = pnand %p5231_p13, %p5225_p10 }
  0x27   :  { %5235 = shalt.err (!%p5232_p0)
}
  0x28   :  { %68 = dma.hbm_to_vmem [thread:$0]  %s6928_s4, 8192, %s63_s24, [#allocation8], %s5263_s10, %s5263_s10, %s5264_s28  }
  0x29   :  { %s5244_s29 = scalar_lea.vmem %s75_s1, 4096  ;;  %p5249_p2 = scmp.lt.s32.totalorder %s75_s1, %s75_s1 }
  0x2a   :  { %p5245_p1 = scmp.ne.s32.totalorder %s75_s1, %s5244_s29  ;;  %p5250_p3 = scmp.lt.s32.totalorder %s5244_s29, %s5244_s29 }
  0x2c   :  { %p5251_p4 = por %p5250_p3, %p5249_p2 }
  0x2e   :  { %p5252_p5 = pnand %p5251_p4, %p5245_p1 }
  0x30   :  { %5255 = shalt.err (!%p5252_p5)
}
  0x31   :  { %80 = dma.hbm_to_vmem [thread:$0]  %s6929_s5, 4096, %s75_s1, [#allocation11], %s5263_s10, %s5263_s10, %s5264_s28  }
  0x32   :  { %5256 = dma.done.wait [#allocation6], 1024  }
  0x33   :  { %5257 = vsyncadd [#allocation6], 4294966272 }
  0x34   :  { %5258 = dma.done.wait [#allocation8], 16384  }
  0x35   :  { %5259 = vsyncadd [#allocation8], 4294950912 }
  0x36   :  { %5260 = dma.done.wait [#allocation11], 4096  }
  0x37   :  { %5261 = vsyncadd [#allocation11], 4294963200  ;;  %v6945_v2 = vmov 0   ;;  %v4498_v3 = vld [vmem:[#allocation7 + $0xe4] ss:$16 sps:$4 sm:$0xff]   ;;  %vm1823_vm0 = vcmask 523264  }
  0x38   :  { %4497 = vset.pattern.permute.xlu1 %v6945_v2  ;;  %4496 = vset.pattern.permute.xlu0 %v6945_v2  ;;  %v4500_v4 = vld [vmem:[#allocation7 + $0xec] ss:$16 sps:$4 sm:$0xff]   ;;  %v4502_v5 = vld [vmem:[#allocation7 + $0xe0] ss:$16 sps:$4 sm:$0xff]   ;;  %v4503_v6 = vld [vmem:[#allocation7 + $0xe8] ss:$16 sps:$4 sm:$0xff]  }
  0x39   :  { %566 = vmatprep.subr.bf16.mxu0 %v4498_v3  ;;  %639 = vmatprep.subr.bf16.mxu1 %v4500_v4  ;;  %v4504_v7 = vld [vmem:[#allocation7 + $0xc4] ss:$16 sps:$4 sm:$0xff]   ;;  %v4506_v8 = vld [vmem:[#allocation7 + $0xcc] ss:$16 sps:$4 sm:$0xff]   ;;  %v4508_v9 = vld [vmem:[#allocation7 + $0xc0] ss:$16 sps:$4 sm:$0xff]  }
  0x3a   :  { %567 = vmatpush1.bf16.msra.mxu0 %v4502_v5  ;;  %640 = vmatpush1.bf16.msra.mxu1 %v4503_v6  ;;  %v4509_v10 = vld [vmem:[#allocation7 + $0xc8] ss:$16 sps:$4 sm:$0xff]   ;;  %v4510_v11 = vld [vmem:[#allocation7 + $0xa4] ss:$16 sps:$4 sm:$0xff]   ;;  %v4512_v12 = vld [vmem:[#allocation7 + $0xac] ss:$16 sps:$4 sm:$0xff]  }
  0x3b   :  { %568 = vmatprep.subr.bf16.mxu0 %v4504_v7  ;;  %641 = vmatprep.subr.bf16.mxu1 %v4506_v8  ;;  %v4514_v13 = vld [vmem:[#allocation7 + $0xa0] ss:$16 sps:$4 sm:$0xff]   ;;  %v4515_v14 = vld [vmem:[#allocation7 + $0xa8] ss:$16 sps:$4 sm:$0xff]   ;;  %v4516_v15 = vld [vmem:[#allocation7 + $0x84] ss:$16 sps:$4 sm:$0xff]  }
  0x3c   :  { %v4518_v16 = vld [vmem:[#allocation7 + $0x8c] ss:$16 sps:$4 sm:$0xff]   ;;  %v4520_v17 = vld [vmem:[#allocation7 + $0x80] ss:$16 sps:$4 sm:$0xff]   ;;  %v4521_v18 = vld [vmem:[#allocation7 + $0x88] ss:$16 sps:$4 sm:$0xff]  }
  0x3d   :  { %v4522_v19 = vld [vmem:[#allocation7 + $0x64] ss:$16 sps:$4 sm:$0xff]   ;;  %v4524_v20 = vld [vmem:[#allocation7 + $0x6c] ss:$16 sps:$4 sm:$0xff]   ;;  %v4526_v21 = vld [vmem:[#allocation7 + $0x60] ss:$16 sps:$4 sm:$0xff]  }
  0x3e   :  { %569 = vmatpush1.bf16.msra.mxu0 %v4508_v9  ;;  %642 = vmatpush1.bf16.msra.mxu1 %v4509_v10  ;;  %v4527_v22 = vld [vmem:[#allocation7 + $0x68] ss:$16 sps:$4 sm:$0xff]   ;;  %v4528_v23 = vld [vmem:[#allocation7 + $0x44] ss:$16 sps:$4 sm:$0xff]   ;;  %v4530_v24 = vld [vmem:[#allocation7 + $0x4c] ss:$16 sps:$4 sm:$0xff]  }
  0x3f   :  { %570 = vmatprep.subr.bf16.mxu0 %v4510_v11  ;;  %643 = vmatprep.subr.bf16.mxu1 %v4512_v12  ;;  %v4532_v25 = vld [vmem:[#allocation7 + $0x40] ss:$16 sps:$4 sm:$0xff]   ;;  %v4533_v26 = vld [vmem:[#allocation7 + $0x48] ss:$16 sps:$4 sm:$0xff]   ;;  %v4534_v27 = vld [vmem:[#allocation7 + $0x24] ss:$16 sps:$4 sm:$0xff]  }
  0x40   :  { %v4536_v28 = vld [vmem:[#allocation7 + $0x2c] ss:$16 sps:$4 sm:$0xff]   ;;  %v4538_v29 = vld [vmem:[#allocation7 + $0x20] ss:$16 sps:$4 sm:$0xff]   ;;  %v4539_v30 = vld [vmem:[#allocation7 + $0x28] ss:$16 sps:$4 sm:$0xff]  }
  0x41   :  { %v4540_v31 = vld [vmem:[#allocation7 + $0x4] ss:$16 sps:$4 sm:$0xff]   ;;  %v4542_v32 = vld [vmem:[#allocation7 + $0xc] ss:$16 sps:$4 sm:$0xff]   ;;  %v4544_v33 = vld [vmem:[#allocation7] ss:$16 sps:$4 sm:$0xff]  }
  0x42   :  { %571 = vmatpush1.bf16.msra.mxu0 %v4514_v13  ;;  %644 = vmatpush1.bf16.msra.mxu1 %v4515_v14  ;;  %v4545_v34 = vld [vmem:[#allocation7 + $0x8] ss:$16 sps:$4 sm:$0xff]   ;;  %v4546_v35 = vld [vmem:[#allocation7 + $0x1e4] ss:$16 sps:$4 sm:$0xff]   ;;  %v4548_v36 = vld [vmem:[#allocation7 + $0x1ec] ss:$16 sps:$4 sm:$0xff]  }
  0x43   :  { %572 = vmatprep.subr.bf16.mxu0 %v4516_v15  ;;  %645 = vmatprep.subr.bf16.mxu1 %v4518_v16  ;;  %v4550_v37 = vld [vmem:[#allocation7 + $0x1e0] ss:$16 sps:$4 sm:$0xff]   ;;  %v4551_v38 = vld [vmem:[#allocation7 + $0x1e8] ss:$16 sps:$4 sm:$0xff]   ;;  %v4552_v39 = vld [vmem:[#allocation7 + $0x1c4] ss:$16 sps:$4 sm:$0xff]  }
  0x44   :  { %v4554_v40 = vld [vmem:[#allocation7 + $0x1cc] ss:$16 sps:$4 sm:$0xff]   ;;  %v4556_v41 = vld [vmem:[#allocation7 + $0x1c0] ss:$16 sps:$4 sm:$0xff]   ;;  %v4557_v42 = vld [vmem:[#allocation7 + $0x1c8] ss:$16 sps:$4 sm:$0xff]  }
  0x45   :  { %v4558_v43 = vld [vmem:[#allocation7 + $0x1a4] ss:$16 sps:$4 sm:$0xff]   ;;  %v4560_v44 = vld [vmem:[#allocation7 + $0x1ac] ss:$16 sps:$4 sm:$0xff]   ;;  %v4562_v45 = vld [vmem:[#allocation7 + $0x1a0] ss:$16 sps:$4 sm:$0xff]  }
  0x46   :  { %573 = vmatpush1.bf16.msra.mxu0 %v4520_v17  ;;  %646 = vmatpush1.bf16.msra.mxu1 %v4521_v18  ;;  %v4563_v46 = vld [vmem:[#allocation7 + $0x1a8] ss:$16 sps:$4 sm:$0xff]   ;;  %v4564_v47 = vld [vmem:[#allocation7 + $0x184] ss:$16 sps:$4 sm:$0xff]   ;;  %v4566_v48 = vld [vmem:[#allocation7 + $0x18c] ss:$16 sps:$4 sm:$0xff]  }
  0x47   :  { %574 = vmatprep.subr.bf16.mxu0 %v4522_v19  ;;  %647 = vmatprep.subr.bf16.mxu1 %v4524_v20  ;;  %v4568_v49 = vld [vmem:[#allocation7 + $0x180] ss:$16 sps:$4 sm:$0xff]   ;;  %v4569_v50 = vld [vmem:[#allocation7 + $0x188] ss:$16 sps:$4 sm:$0xff]   ;;  %v4596_v51 = vld [vmem:[#allocation5 + $0x4] ss:$8 sps:$4 sm:$0xff]  }
  0x48   :  { %v4570_v52 = vld [vmem:[#allocation7 + $0x164] ss:$16 sps:$4 sm:$0xff]   ;;  %v4572_v53 = vld [vmem:[#allocation7 + $0x16c] ss:$16 sps:$4 sm:$0xff]   ;;  %598 = vmatprep.mubr.bf16.mxu0 %v4596_v51  ;;  %671 = vmatprep.mubr.bf16.mxu1 %v4596_v51  ;;  %v4574_v54 = vld [vmem:[#allocation7 + $0x160] ss:$16 sps:$4 sm:$0xff]  }
  0x49   :  { %v4575_v55 = vld [vmem:[#allocation7 + $0x168] ss:$16 sps:$4 sm:$0xff]   ;;  %v4576_v56 = vld [vmem:[#allocation7 + $0x144] ss:$16 sps:$4 sm:$0xff]   ;;  %v4578_v57 = vld [vmem:[#allocation7 + $0x14c] ss:$16 sps:$4 sm:$0xff]  }
  0x4a   :  { %575 = vmatpush1.bf16.msra.mxu0 %v4526_v21  ;;  %648 = vmatpush1.bf16.msra.mxu1 %v4527_v22  ;;  %v4580_v58 = vld [vmem:[#allocation7 + $0x140] ss:$16 sps:$4 sm:$0xff]   ;;  %v4581_v59 = vld [vmem:[#allocation7 + $0x148] ss:$16 sps:$4 sm:$0xff]   ;;  %v4582_v60 = vld [vmem:[#allocation7 + $0x124] ss:$16 sps:$4 sm:$0xff]  }
  0x4b   :  { %576 = vmatprep.subr.bf16.mxu0 %v4528_v23  ;;  %649 = vmatprep.subr.bf16.mxu1 %v4530_v24  ;;  %v4584_v61 = vld [vmem:[#allocation7 + $0x12c] ss:$16 sps:$4 sm:$0xff]   ;;  %v4586_v62 = vld [vmem:[#allocation7 + $0x120] ss:$16 sps:$4 sm:$0xff]   ;;  %v4587_v63 = vld [vmem:[#allocation7 + $0x128] ss:$16 sps:$4 sm:$0xff]  }
  0x4c   :  { %v4588_v0 = vld [vmem:[#allocation7 + $0x104] ss:$16 sps:$4 sm:$0xff]   ;;  %v4590_v1 = vld [vmem:[#allocation7 + $0x10c] ss:$16 sps:$4 sm:$0xff]   ;;  %v4592_v3 = vld [vmem:[#allocation7 + $0x100] ss:$16 sps:$4 sm:$0xff]  }
  0x4d   :  { %v4593_v4 = vld [vmem:[#allocation7 + $0x108] ss:$16 sps:$4 sm:$0xff]   ;;  %v5390_v5 = vld [vmem:[%s6926_s2 + $0xe4] ss:$16 sps:$4 sm:$0xff]   ;;  %v5400_v8 = vld [vmem:[%s6926_s2 + $0xe0] ss:$16 sps:$4 sm:$0xff]  }
  0x4e   :  { %577 = vmatpush1.bf16.msra.mxu0 %v4532_v25  ;;  %650 = vmatpush1.bf16.msra.mxu1 %v4533_v26  ;;  %v5395_v6 = vld [vmem:[%s6926_s2 + $0xec] ss:$16 sps:$4 sm:$0xff]   ;;  %v5405_v9 = vld [vmem:[%s6926_s2 + $0xe8] ss:$16 sps:$4 sm:$0xff]   ;;  %v5410_v10 = vld [vmem:[%s6926_s2 + $0xc4] ss:$16 sps:$4 sm:$0xff]  }
  0x4f   :  { %578 = vmatprep.subr.bf16.mxu0 %v4534_v27  ;;  %651 = vmatprep.subr.bf16.mxu1 %v4536_v28  ;;  %v4594_v7 = vld [vmem:[#allocation5] ss:$8 sps:$4 sm:$0xff]   ;;  %v4609_v12 = vld [vmem:[#allocation5 + $0x14] ss:$8 sps:$4 sm:$0xff]   ;;  %v4611_v15 = vld [vmem:[#allocation5 + $0x10] ss:$8 sps:$4 sm:$0xff]  }
  0x50   :  { %v5417_v11 = vld [vmem:[%s6926_s2 + $0xcc] ss:$16 sps:$4 sm:$0xff]   ;;  %v5424_v13 = vld [vmem:[%s6926_s2 + $0xc0] ss:$16 sps:$4 sm:$0xff]   ;;  %v5429_v14 = vld [vmem:[%s6926_s2 + $0xc8] ss:$16 sps:$4 sm:$0xff]  }
  0x51   :  { %v5436_v16 = vld [vmem:[%s6926_s2 + $0xa4] ss:$16 sps:$4 sm:$0xff]   ;;  %v5441_v17 = vld [vmem:[%s6926_s2 + $0xac] ss:$16 sps:$4 sm:$0xff]   ;;  %v5446_v18 = vld [vmem:[%s6926_s2 + $0xa0] ss:$16 sps:$4 sm:$0xff]  }
  0x52   :  { %579 = vmatpush1.bf16.msra.mxu0 %v4538_v29  ;;  %652 = vmatpush1.bf16.msra.mxu1 %v4539_v30  ;;  %v5451_v19 = vld [vmem:[%s6926_s2 + $0xa8] ss:$16 sps:$4 sm:$0xff]   ;;  %v5456_v20 = vld [vmem:[%s6926_s2 + $0x84] ss:$16 sps:$4 sm:$0xff]   ;;  %v5461_v21 = vld [vmem:[%s6926_s2 + $0x8c] ss:$16 sps:$4 sm:$0xff]  }
  0x53   :  { %580 = vmatprep.subr.bf16.mxu0 %v4540_v31  ;;  %653 = vmatprep.subr.bf16.mxu1 %v4542_v32  ;;  %v4624_v22 = vld [vmem:[#allocation5 + $0x24] ss:$8 sps:$4 sm:$0xff]   ;;  %v4626_v27 = vld [vmem:[#allocation5 + $0x20] ss:$8 sps:$4 sm:$0xff]   ;;  %v4639_v32 = vld [vmem:[#allocation5 + $0x34] ss:$8 sps:$4 sm:$0xff]  }
  0x54   :  { %v5470_v23 = vld [vmem:[%s6926_s2 + $0x80] ss:$16 sps:$4 sm:$0xff]   ;;  %v5475_v24 = vld [vmem:[%s6926_s2 + $0x88] ss:$16 sps:$4 sm:$0xff]   ;;  %v5480_v25 = vld [vmem:[%s6926_s2 + $0x64] ss:$16 sps:$4 sm:$0xff]  }
  0x55   :  { %v5485_v26 = vld [vmem:[%s6926_s2 + $0x6c] ss:$16 sps:$4 sm:$0xff]   ;;  %v5494_v28 = vld [vmem:[%s6926_s2 + $0x60] ss:$16 sps:$4 sm:$0xff]   ;;  %v5499_v29 = vld [vmem:[%s6926_s2 + $0x68] ss:$16 sps:$4 sm:$0xff]  }
  0x56   :  { %581 = vmatpush1.bf16.msra.mxu0 %v4544_v33  ;;  %654 = vmatpush1.bf16.msra.mxu1 %v4545_v34  ;;  %v5504_v30 = vld [vmem:[%s6926_s2 + $0x44] ss:$16 sps:$4 sm:$0xff]   ;;  %v5509_v31 = vld [vmem:[%s6926_s2 + $0x4c] ss:$16 sps:$4 sm:$0xff]   ;;  %v5518_v33 = vld [vmem:[%s6926_s2 + $0x40] ss:$16 sps:$4 sm:$0xff]  }
  0x57   :  { %582 = vmatprep.subr.bf16.mxu0 %v4546_v35  ;;  %655 = vmatprep.subr.bf16.mxu1 %v4548_v36  ;;  %v5523_v34 = vld [vmem:[%s6926_s2 + $0x48] ss:$16 sps:$4 sm:$0xff]   ;;  %v5528_v35 = vld [vmem:[%s6926_s2 + $0x24] ss:$16 sps:$4 sm:$0xff]   ;;  %v5533_v36 = vld [vmem:[%s6926_s2 + $0x2c] ss:$16 sps:$4 sm:$0xff]  }
  0x58   :  { %vm3826_vm1 = vcmask 7168   ;;  %vm5272_vm2 = vmmov 0  }
  0x5a   :  { %583 = vmatpush2.bf16.msra.mxu0 %v4550_v37  ;;  %656 = vmatpush2.bf16.msra.mxu1 %v4551_v38  ;;  %v4641_v37 = vld [vmem:[#allocation5 + $0x30] ss:$8 sps:$4 sm:$0xff]  }
  0x5b   :  { %584 = vmatprep.subr.bf16.mxu0 %v4552_v39  ;;  %657 = vmatprep.subr.bf16.mxu1 %v4554_v40  ;;  %v5542_v38 = vld [vmem:[%s6926_s2 + $0x20] ss:$16 sps:$4 sm:$0xff]   ;;  %v5547_v39 = vld [vmem:[%s6926_s2 + $0x28] ss:$16 sps:$4 sm:$0xff]   ;;  %v5552_v40 = vld [vmem:[%s6926_s2 + $0x4] ss:$16 sps:$4 sm:$0xff]  }
  0x5e   :  { %585 = vmatpush2.bf16.msra.mxu0 %v4556_v41  ;;  %658 = vmatpush2.bf16.msra.mxu1 %v4557_v42  ;;  %v5557_v41 = vld [vmem:[%s6926_s2 + $0xc] ss:$16 sps:$4 sm:$0xff]   ;;  %v5566_v42 = vld [vmem:[%s6926_s2] ss:$16 sps:$4 sm:$0xff]  }
  0x5f   :  { %586 = vmatprep.subr.bf16.mxu0 %v4558_v43  ;;  %659 = vmatprep.subr.bf16.mxu1 %v4560_v44  ;;  %v5571_v43 = vld [vmem:[%s6926_s2 + $0x8] ss:$16 sps:$4 sm:$0xff]   ;;  %v186_v44 = vlaneseq }
  0x62   :  { %587 = vmatpush2.bf16.msra.mxu0 %v4562_v45  ;;  %660 = vmatpush2.bf16.msra.mxu1 %v4563_v46  ;;  %v5619_v45 = vshrl.u32 %v186_v44, 7 }
  0x63   :  { %588 = vmatprep.subr.bf16.mxu0 %v4564_v47  ;;  %661 = vmatprep.subr.bf16.mxu1 %v4566_v48 }
  0x64   :  { %6951 = vst [vmem:[#allocation15_spill] sm:$0xff] %v5619_v45  ;;  %v6943_v46 = vsub.s32 2, %v5619_v45  ;;  %v6944_v47 = vsub.s32 0, %v5619_v45  ;;  %v6941_v48 = vsub.s32 3, %v5619_v45 }
  0x66   :  { %589 = vmatpush2.bf16.msra.mxu0 %v4568_v49  ;;  %662 = vmatpush2.bf16.msra.mxu1 %v4569_v50  ;;  %v184_v49 = vld [vmem:[%s6927_s3] sm:$0xf] }
  0x67   :  { %590 = vmatprep.subr.bf16.mxu0 %v4570_v52  ;;  %663 = vmatprep.subr.bf16.mxu1 %v4572_v53  ;;  %v5633_v52 = vrot.slane %v184_v49, %v6943_v46  ;;  %v6942_v53 = vsub.s32 1, %v5619_v45 }
  0x6a   :  { %591 = vmatpush2.bf16.msra.mxu0 %v4574_v54  ;;  %664 = vmatpush2.bf16.msra.mxu1 %v4575_v55 }
  0x6b   :  { %592 = vmatprep.subr.bf16.mxu0 %v4576_v56  ;;  %665 = vmatprep.subr.bf16.mxu1 %v4578_v57  ;;  %v189_v56 = vrot.slane %v184_v49, %v6944_v47  ;;  %v5644_v57 = vrot.slane %v184_v49, %v6941_v48 }
  0x6e   :  { %593 = vmatpush2.bf16.msra.mxu0 %v4580_v58  ;;  %666 = vmatpush2.bf16.msra.mxu1 %v4581_v59 }
  0x6f   :  { %594 = vmatprep.subr.bf16.mxu0 %v4582_v60  ;;  %667 = vmatprep.subr.bf16.mxu1 %v4584_v61  ;;  %v193_v60 = vrot.slane %v184_v49, %v6942_v53 }
  0x72   :  { %595 = vmatpush2.bf16.msra.mxu0 %v4586_v62  ;;  %668 = vmatpush2.bf16.msra.mxu1 %v4587_v63 }
  0x73   :  { %596 = vmatprep.subr.bf16.mxu0 %v4588_v0  ;;  %669 = vmatprep.subr.bf16.mxu1 %v4590_v1 }
  0x76   :  { %597 = vmatpush2.bf16.msra.mxu0 %v4592_v3  ;;  %670 = vmatpush2.bf16.msra.mxu1 %v4593_v4 }
  0x77   :  { %940 = vmatprep.subr.bf16.mxu0 %v5390_v5  ;;  %981 = vmatprep.subr.bf16.mxu1 %v5395_v6 }
  0x79   :  { %599 = vmatmul.mubr.bf16.vlgmr.msra.gmra.mxu0 %v4594_v7  ;;  %672 = vmatmul.mubr.bf16.vlgmr.msra.gmra.mxu1 %v4594_v7 }
  0x7a   :  { %941 = vmatpush1.bf16.msra.mxu0 %v5400_v8  ;;  %982 = vmatpush1.bf16.msra.mxu1 %v5405_v9 }
  0x7b   :  { %942 = vmatprep.subr.bf16.mxu0 %v5410_v10  ;;  %983 = vmatprep.subr.bf16.mxu1 %v5417_v11 }
  0x7c   :  { %608 = vmatprep.mubr.bf16.mxu0 %v4609_v12  ;;  %681 = vmatprep.mubr.bf16.mxu1 %v4609_v12 }
  0x7e   :  { %943 = vmatpush1.bf16.msra.mxu0 %v5424_v13  ;;  %984 = vmatpush1.bf16.msra.mxu1 %v5429_v14 }
  0x7f   :  { %944 = vmatprep.subr.bf16.mxu0 %v5436_v16  ;;  %985 = vmatprep.subr.bf16.mxu1 %v5441_v17 }
  0x81   :  { %609 = vmatmul.mubr.bf16.gmra.mxu0 %v4611_v15  ;;  %682 = vmatmul.mubr.bf16.gmra.mxu1 %v4611_v15 }
  0x82   :  { %945 = vmatpush1.bf16.msra.mxu0 %v5446_v18  ;;  %986 = vmatpush1.bf16.msra.mxu1 %v5451_v19 }
  0x83   :  { %946 = vmatprep.subr.bf16.mxu0 %v5456_v20  ;;  %987 = vmatprep.subr.bf16.mxu1 %v5461_v21 }
  0x84   :  { %618 = vmatprep.mubr.bf16.mxu0 %v4624_v22  ;;  %691 = vmatprep.mubr.bf16.mxu1 %v4624_v22 }
  0x86   :  { %947 = vmatpush1.bf16.msra.mxu0 %v5470_v23  ;;  %988 = vmatpush1.bf16.msra.mxu1 %v5475_v24 }
  0x87   :  { %948 = vmatprep.subr.bf16.mxu0 %v5480_v25  ;;  %989 = vmatprep.subr.bf16.mxu1 %v5485_v26 }
  0x89   :  { %619 = vmatmul.mubr.bf16.gmra.mxu0 %v4626_v27  ;;  %692 = vmatmul.mubr.bf16.gmra.mxu1 %v4626_v27 }
  0x8a   :  { %949 = vmatpush1.bf16.msra.mxu0 %v5494_v28  ;;  %990 = vmatpush1.bf16.msra.mxu1 %v5499_v29 }
  0x8b   :  { %950 = vmatprep.subr.bf16.mxu0 %v5504_v30  ;;  %991 = vmatprep.subr.bf16.mxu1 %v5509_v31 }
  0x8c   :  { %628 = vmatprep.mubr.bf16.mxu0 %v4639_v32  ;;  %701 = vmatprep.mubr.bf16.mxu1 %v4639_v32 }
  0x8e   :  { %951 = vmatpush1.bf16.msra.mxu0 %v5518_v33  ;;  %992 = vmatpush1.bf16.msra.mxu1 %v5523_v34 }
  0x8f   :  { %952 = vmatprep.subr.bf16.mxu0 %v5528_v35  ;;  %993 = vmatprep.subr.bf16.mxu1 %v5533_v36 }
  0x91   :  { %629 = vmatmul.mubr.bf16.gmra.mxu0 %v4641_v37  ;;  %702 = vmatmul.mubr.bf16.gmra.mxu1 %v4641_v37 }
  0x92   :  { %953 = vmatpush1.bf16.msra.mxu0 %v5542_v38  ;;  %994 = vmatpush1.bf16.msra.mxu1 %v5547_v39 }
  0x93   :  { %954 = vmatprep.subr.bf16.mxu0 %v5552_v40  ;;  %995 = vmatprep.subr.bf16.mxu1 %v5557_v41 }
  0x94   :  { %972 = vmatprep.mubr.bf16.mxu0 %v6945_v2  ;;  %1013 = vmatprep.mubr.bf16.mxu1 %v6945_v2 }
  0x96   :  { %955 = vmatpush1.bf16.msra.mxu0 %v5566_v42  ;;  %996 = vmatpush1.bf16.msra.mxu1 %v5571_v43 }
  0x97   :  { %1051 = vmatprep.subr.bf16.mxu0 %v5390_v5  ;;  %1092 = vmatprep.subr.bf16.mxu1 %v5395_v6 }
  0x99   :  { %973 = vmatmul.mubr.bf16.vlgmr.msra.gmra.mxu0 %v6945_v2  ;;  %1014 = vmatmul.mubr.bf16.vlgmr.msra.gmra.mxu1 %v6945_v2 }
  0x9a   :  { %1052 = vmatpush1.bf16.msra.mxu0 %v5400_v8  ;;  %1093 = vmatpush1.bf16.msra.mxu1 %v5405_v9 }
  0x9b   :  { %1053 = vmatprep.subr.bf16.mxu0 %v5410_v10  ;;  %1094 = vmatprep.subr.bf16.mxu1 %v5417_v11 }
  0x9c   :  { %1083 = vmatprep.mubr.bf16.mxu0 %v6945_v2  ;;  %1124 = vmatprep.mubr.bf16.mxu1 %v6945_v2 }
  0x9e   :  { %1054 = vmatpush1.bf16.msra.mxu0 %v5424_v13  ;;  %1095 = vmatpush1.bf16.msra.mxu1 %v5429_v14 }
  0x9f   :  { %1055 = vmatprep.subr.bf16.mxu0 %v5436_v16  ;;  %1096 = vmatprep.subr.bf16.mxu1 %v5441_v17 }
  0xa2   :  { %1056 = vmatpush1.bf16.msra.mxu0 %v5446_v18  ;;  %1097 = vmatpush1.bf16.msra.mxu1 %v5451_v19 }
  0xa3   :  { %1057 = vmatprep.subr.bf16.mxu0 %v5456_v20  ;;  %1098 = vmatprep.subr.bf16.mxu1 %v5461_v21 }
  0xa6   :  { %1058 = vmatpush1.bf16.msra.mxu0 %v5470_v23  ;;  %1099 = vmatpush1.bf16.msra.mxu1 %v5475_v24 }
  0xa7   :  { %1059 = vmatprep.subr.bf16.mxu0 %v5480_v25  ;;  %1100 = vmatprep.subr.bf16.mxu1 %v5485_v26 }
  0xaa   :  { %1060 = vmatpush1.bf16.msra.mxu0 %v5494_v28  ;;  %1101 = vmatpush1.bf16.msra.mxu1 %v5499_v29 }
  0xab   :  { %1061 = vmatprep.subr.bf16.mxu0 %v5504_v30  ;;  %1102 = vmatprep.subr.bf16.mxu1 %v5509_v31 }
  0xae   :  { %1062 = vmatpush1.bf16.msra.mxu0 %v5518_v33  ;;  %1103 = vmatpush1.bf16.msra.mxu1 %v5523_v34 }
  0xaf   :  { %1063 = vmatprep.subr.bf16.mxu0 %v5528_v35  ;;  %1104 = vmatprep.subr.bf16.mxu1 %v5533_v36 }
  0xb2   :  { %1064 = vmatpush1.bf16.msra.mxu0 %v5542_v38  ;;  %1105 = vmatpush1.bf16.msra.mxu1 %v5547_v39 }
  0xb3   :  { %1065 = vmatprep.subr.bf16.mxu0 %v5552_v40  ;;  %1106 = vmatprep.subr.bf16.mxu1 %v5557_v41 }
  0xb6   :  { %1066 = vmatpush1.bf16.msra.mxu0 %v5566_v42  ;;  %1107 = vmatpush1.bf16.msra.mxu1 %v5571_v43 }
  0xb7   :  { %1162 = vmatprep.subr.bf16.mxu0 %v5390_v5  ;;  %1203 = vmatprep.subr.bf16.mxu1 %v5395_v6 }
 0x139   :  { %v5627_v50 = vpop.f32.mrf.mxu0  ;;  %v5629_v51 = vpop.f32.mrf.mxu1 }
 0x13b   :  { %v5636_v54 = vpop.f32.mrf.mxu0  ;;  %v5638_v55 = vpop.f32.mrf.mxu1 }
 0x13d   :  { %v604_v58 = vpop.f32.mrf.mxu0  ;;  %v677_v59 = vpop.f32.mrf.mxu1 }
 0x13e   :  { %v5648_v61 = vadd.f32 %v604_v58, %v189_v56  ;;  %v5651_v62 = vadd.f32 %v677_v59, %v5633_v52 }
 0x13f   :  { %v606_v63 = vpop.f32.mrf.mxu0  ;;  %v679_v0 = vpop.f32.mrf.mxu1 }
 0x140   :  { %v5653_v1 = vadd.f32 %v606_v63, %v193_v60  ;;  %v5656_v3 = vadd.f32 %v679_v0, %v5644_v57 }
 0x141   :  { %v610_v4 = vpop.f32.mrf.mxu0  ;;  %v683_v7 = vpop.f32.mrf.mxu1 }
 0x142   :  { %v5658_v12 = vadd.f32 %v610_v4, %v189_v56  ;;  %v5661_v15 = vadd.f32 %v683_v7, %v5633_v52 }
 0x143   :  { %v612_v22 = vpop.f32.mrf.mxu0  ;;  %v685_v27 = vpop.f32.mrf.mxu1 }
 0x144   :  { %v5663_v32 = vadd.f32 %v612_v22, %v193_v60  ;;  %v5666_v37 = vadd.f32 %v685_v27, %v5644_v57 }
 0x145   :  { %v614_v44 = vpop.f32.mrf.mxu0  ;;  %v687_v49 = vpop.f32.mrf.mxu1 }
 0x146   :  { %6952 = vst [vmem:[#allocation16_spill] sm:$0xff] %v5666_v37  ;;  %v5668_v58 = vadd.f32 %v614_v44, %v189_v56  ;;  %v5671_v59 = vadd.f32 %v687_v49, %v5633_v52 }
 0x147   :  { %v616_v63 = vpop.f32.mrf.mxu0  ;;  %v689_v0 = vpop.f32.mrf.mxu1 }
 0x148   :  { %6953 = vst [vmem:[#allocation17_spill] sm:$0xff] %v5668_v58  ;;  %6954 = vst [vmem:[#allocation18_spill] sm:$0xff] %v5671_v59  ;;  %v5673_v4 = vadd.f32 %v616_v63, %v193_v60  ;;  %v5676_v7 = vadd.f32 %v689_v0, %v5644_v57 }
 0x149   :  { %v620_v48 = vpop.f32.mrf.mxu0  ;;  %v693_v22 = vpop.f32.mrf.mxu1 }
 0x14a   :  { %6955 = vst [vmem:[#allocation19_spill] sm:$0xff] %v5673_v4  ;;  %6956 = vst [vmem:[#allocation20_spill] sm:$0xff] %v5676_v7  ;;  %v5678_v53 = vadd.f32 %v620_v48, %v189_v56  ;;  %v5681_v27 = vadd.f32 %v693_v22, %v5633_v52 }
 0x14b   :  { %v622_v46 = vpop.f32.mrf.mxu0  ;;  %v695_v44 = vpop.f32.mrf.mxu1 }
 0x14c   :  { %6957 = vst [vmem:[#allocation21_spill] sm:$0xff] %v5678_v53  ;;  %6958 = vst [vmem:[#allocation22_spill] sm:$0xff] %v5681_v27  ;;  %v5683_v47 = vadd.f32 %v622_v46, %v193_v60  ;;  %v5686_v49 = vadd.f32 %v695_v44, %v5644_v57 }
 0x14d   :  { %v624_v2 = vpop.f32.mrf.mxu0  ;;  %v697_v63 = vpop.f32.mrf.mxu1 }
 0x14e   :  { %6959 = vst [vmem:[#allocation23_spill] sm:$0xff] %v5683_v47  ;;  %6960 = vst [vmem:[#allocation24_spill] sm:$0xff] %v5686_v49  ;;  %v5688_v45 = vadd.f32 %v624_v2, %v189_v56  ;;  %v5691_v0 = vadd.f32 %v697_v63, %v5633_v52 }
 0x14f   :  { %v626_v7 = vpop.f32.mrf.mxu0  ;;  %v699_v48 = vpop.f32.mrf.mxu1 }
 0x150   :  { %6961 = vst [vmem:[#allocation25_spill] sm:$0xff] %v5688_v45  ;;  %6962 = vst [vmem:[#allocation26_spill] sm:$0xff] %v5691_v0  ;;  %v5693_v53 = vadd.f32 %v626_v7, %v193_v60  ;;  %v5696_v22 = vadd.f32 %v699_v48, %v5644_v57 }
 0x151   :  { %v630_v27 = vpop.f32.mrf.mxu0  ;;  %v703_v46 = vpop.f32.mrf.mxu1 }
 0x152   :  { %6963 = vst [vmem:[#allocation27_spill] sm:$0xff] %v5693_v53  ;;  %6964 = vst [vmem:[#allocation28_spill] sm:$0xff] %v5696_v22  ;;  %v5698_v47 = vadd.f32 %v630_v27, %v189_v56  ;;  %v5701_v44 = vadd.f32 %v703_v46, %v5633_v52 }
 0x153   :  { %v632_v49 = vpop.f32.mrf.mxu0  ;;  %v705_v2 = vpop.f32.mrf.mxu1 }
 0x154   :  { %6965 = vst [vmem:[#allocation29_spill] sm:$0xff] %v5698_v47  ;;  %6966 = vst [vmem:[#allocation30_spill] sm:$0xff] %v5701_v44  ;;  %v5703_v45 = vadd.f32 %v632_v49, %v193_v60  ;;  %v5706_v63 = vadd.f32 %v705_v2, %v5644_v57  ;;  %v601_v47 = vadd.f32 %v5627_v50, %v189_v56 }
 0x155   :  { %v634_v0 = vpop.f32.mrf.mxu0  ;;  %v707_v7 = vpop.f32.mrf.mxu1  ;;  %v603_v2 = vadd.f32 %v5636_v54, %v193_v60 }
 0x156   :  { %6967 = vst [vmem:[#allocation31_spill] sm:$0xff] %v5703_v45  ;;  %6968 = vst [vmem:[#allocation32_spill] sm:$0xff] %v5706_v63  ;;  %v5708_v53 = vadd.f32 %v634_v0, %v189_v56  ;;  %v5711_v48 = vadd.f32 %v707_v7, %v5633_v52  ;;  %v674_v56 = vadd.f32 %v5629_v51, %v5633_v52 }
 0x157   :  { %v636_v22 = vpop.f32.mrf.mxu0  ;;  %v709_v27 = vpop.f32.mrf.mxu1 }
 0x158   :  { %6969 = vst [vmem:[#allocation33_spill] sm:$0xff] %v5708_v53  ;;  %6970 = vst [vmem:[#allocation34_spill] sm:$0xff] %v5711_v48  ;;  %v5714_v46 = vadd.f32 %v636_v22, %v193_v60  ;;  %v5717_v44 = vadd.f32 %v709_v27, %v5644_v57  ;;  %v676_v27 = vadd.f32 %v5638_v55, %v5644_v57 }
 0x159   :  { %v974_v49 = vpop.f32.mrf.mxu0  ;;  %v1015_v45 = vpop.f32.mrf.mxu1 }
 0x15a   :  { %v975_v63 = vadd.f32 %v974_v49, %v601_v47  ;;  %v1016_v22 = vadd.f32 %v1015_v45, %v674_v56 }
 0x15b   :  { %v976_v59 = vpop.f32.mrf.mxu0  ;;  %v1017_v0 = vpop.f32.mrf.mxu1 }
 0x15c   :  { %v4202_v53 = vmul.f32 -1.442695, %v975_v63  ;;  %v977_v4 = vadd.f32 %v976_v59, %v603_v2  ;;  %v4204_v54 = vmul.f32 -1.442695, %v1016_v22  ;;  %v1018_v60 = vadd.f32 %v1017_v0, %v676_v27 }
 0x15d   :  { %v978_v7 = vpop.f32.mrf.mxu0  ;;  %v1019_v48 = vpop.f32.mrf.mxu1 }
 0x15e   :  { %4822 = vpow2.f32 %v4202_v53  ;;  %v4203_v58 = vmul.f32 -1.442695, %v977_v4  ;;  %v6971_v7 = vmov 0  }
 0x15f   :  { %v979_v37 = vpop.f32.mrf.mxu0  ;;  %v1020_v50 = vpop.f32.mrf.mxu1 }
 0x160   :  { %4824 = vpow2.f32 %v4203_v58 }
 0x161   :  { %4826 = vpow2.f32 %v4204_v54 }
 0x16b   :  { %v4823_v47 = vpop.eup %4822 }
 0x16c   :  { %v1031_v49 = vadd.f32 1.0, %v4823_v47 }
 0x16d   :  { %v4825_v63 = vpop.eup %4824 }
 0x16e   :  { %4828 = vrcp.f32 %v1031_v49  ;;  %v1032_v59 = vadd.f32 1.0, %v4825_v63  ;;  %v4827_v53 = vpop.eup %4826 }
 0x16f   :  { %4830 = vtanh.f32 %v1018_v60  ;;  %v1033_v48 = vadd.f32 1.0, %v4827_v53 }
 0x170   :  { %4832 = vrcp.f32 %v1032_v59 }
 0x171   :  { %4834 = vrcp.f32 %v1033_v48 }
 0x17b   :  { %v4829_v37 = vpop.eup %4828 }
 0x17c   :  { %v4831_v58 = vpop.eup %4830 }
 0x17d   :  { %v4833_v4 = vpop.eup %4832  ;;  %v1042_v45 = vmul.f32 %v4831_v58, %v4829_v37 }
 0x17e   :  { %v1041_v51 = vmul.f32 0.0, %v4833_v4  ;;  %v4835_v55 = vpop.eup %4834 }
 0x180   :  { %v5724_v52 = vadd.f32 %v1042_v45, %v1041_v51 }
 0x182   :  { %4836 = vtanh.f32 %v5724_v52 }
 0x18f   :  { %v4837_v57 = vpop.eup %4836 }
 0x190   :  { %v5727_v2 = vmul.f32 %v4837_v57, %v4835_v55 }
 0x192   :  { %v1046_v0 = vpack.c.bf16 %v5727_v2, %v5727_v2 }
 0x194   :  { %1084 = vmatmul.mubr.bf16.vlgmr.msra.gmra.mxu0 %v1046_v0  ;;  %1125 = vmatmul.mubr.bf16.vlgmr.msra.gmra.mxu1 %v1046_v0 }
 0x195   :  { %1163 = vmatpush1.bf16.msra.mxu0 %v5400_v8  ;;  %1204 = vmatpush1.bf16.msra.mxu1 %v5405_v9 }
 0x196   :  { %1164 = vmatprep.subr.bf16.mxu0 %v5410_v10  ;;  %1205 = vmatprep.subr.bf16.mxu1 %v5417_v11 }
 0x197   :  { %1194 = vmatprep.mubr.bf16.mxu0 %v6971_v7  ;;  %1235 = vmatprep.mubr.bf16.mxu1 %v6971_v7 }
 0x199   :  { %1165 = vmatpush1.bf16.msra.mxu0 %v5424_v13  ;;  %1206 = vmatpush1.bf16.msra.mxu1 %v5429_v14 }
 0x19a   :  { %1166 = vmatprep.subr.bf16.mxu0 %v5436_v16  ;;  %1207 = vmatprep.subr.bf16.mxu1 %v5441_v17 }
 0x19d   :  { %1167 = vmatpush1.bf16.msra.mxu0 %v5446_v18  ;;  %1208 = vmatpush1.bf16.msra.mxu1 %v5451_v19 }
 0x19e   :  { %1168 = vmatprep.subr.bf16.mxu0 %v5456_v20  ;;  %1209 = vmatprep.subr.bf16.mxu1 %v5461_v21 }
 0x1a1   :  { %1169 = vmatpush1.bf16.msra.mxu0 %v5470_v23  ;;  %1210 = vmatpush1.bf16.msra.mxu1 %v5475_v24 }
 0x1a2   :  { %1170 = vmatprep.subr.bf16.mxu0 %v5480_v25  ;;  %1211 = vmatprep.subr.bf16.mxu1 %v5485_v26 }
 0x1a5   :  { %1171 = vmatpush1.bf16.msra.mxu0 %v5494_v28  ;;  %1212 = vmatpush1.bf16.msra.mxu1 %v5499_v29 }
 0x1a6   :  { %1172 = vmatprep.subr.bf16.mxu0 %v5504_v30  ;;  %1213 = vmatprep.subr.bf16.mxu1 %v5509_v31 }
 0x1a9   :  { %1173 = vmatpush1.bf16.msra.mxu0 %v5518_v33  ;;  %1214 = vmatpush1.bf16.msra.mxu1 %v5523_v34 }
 0x1aa   :  { %1174 = vmatprep.subr.bf16.mxu0 %v5528_v35  ;;  %1215 = vmatprep.subr.bf16.mxu1 %v5533_v36 }
 0x1ad   :  { %1175 = vmatpush1.bf16.msra.mxu0 %v5542_v38  ;;  %1216 = vmatpush1.bf16.msra.mxu1 %v5547_v39 }
 0x1ae   :  { %1176 = vmatprep.subr.bf16.mxu0 %v5552_v40  ;;  %1217 = vmatprep.subr.bf16.mxu1 %v5557_v41 }
 0x1b1   :  { %1177 = vmatpush1.bf16.msra.mxu0 %v5566_v42  ;;  %1218 = vmatpush1.bf16.msra.mxu1 %v5571_v43 }
 0x1b2   :  { %1273 = vmatprep.subr.bf16.mxu0 %v5390_v5  ;;  %1314 = vmatprep.subr.bf16.mxu1 %v5395_v6 }
 0x254   :  { %v1085_v50 = vpop.f32.mrf.mxu0  ;;  %v1126_v56 = vpop.f32.mrf.mxu1 }
 0x255   :  { %v1086_v22 = vadd.f32 %v1085_v50, %v5648_v61  ;;  %v1127_v58 = vadd.f32 %v1126_v56, %v5651_v62 }
 0x256   :  { %v1087_v27 = vpop.f32.mrf.mxu0  ;;  %v1128_v54 = vpop.f32.mrf.mxu1 }
 0x257   :  { %v4205_v47 = vmul.f32 -1.442695, %v1086_v22  ;;  %v1088_v60 = vadd.f32 %v1087_v27, %v5653_v1  ;;  %v4207_v4 = vmul.f32 -1.442695, %v1127_v58  ;;  %v1129_v48 = vadd.f32 %v1128_v54, %v5656_v3 }
 0x258   :  { %v1089_v49 = vpop.f32.mrf.mxu0  ;;  %v1130_v63 = vpop.f32.mrf.mxu1 }
 0x259   :  { %4838 = vpow2.f32 %v4205_v47  ;;  %v4206_v59 = vmul.f32 -1.442695, %v1088_v60 }
 0x25a   :  { %v1090_v53 = vpop.f32.mrf.mxu0  ;;  %v1131_v37 = vpop.f32.mrf.mxu1 }
 0x25b   :  { %4840 = vpow2.f32 %v4206_v59 }
 0x25c   :  { %4842 = vpow2.f32 %v4207_v4 }
 0x25d   :  { %4844 = vtanh.f32 %v1129_v48 }
 0x266   :  { %v4839_v51 = vpop.eup %4838 }
 0x267   :  { %v1142_v45 = vadd.f32 1.0, %v4839_v51 }
 0x268   :  { %v4841_v61 = vpop.eup %4840 }
 0x269   :  { %4846 = vrcp.f32 %v1142_v45  ;;  %v1143_v55 = vadd.f32 1.0, %v4841_v61  ;;  %v4843_v1 = vpop.eup %4842 }
 0x26a   :  { %v4845_v57 = vpop.eup %4844  ;;  %v1144_v27 = vadd.f32 1.0, %v4843_v1 }
 0x26b   :  { %4848 = vrcp.f32 %v1143_v55 }
 0x26c   :  { %4850 = vrcp.f32 %v1144_v27  ;;  %v5844_v27 = vld [vmem:[%s6926_s2 + $0xcc] ss:$16 sps:$4 sm:$0xff]  }
 0x276   :  { %v4847_v0 = vpop.eup %4846 }
 0x277   :  { %v1153_v50 = vmul.f32 %v4847_v0, %v4845_v57  ;;  %v5826_v0 = vld [vmem:[%s6926_s2 + $0xe0] ss:$16 sps:$4 sm:$0xff]  }
 0x278   :  { %v4849_v22 = vpop.eup %4848 }
 0x279   :  { %v1152_v47 = vmul.f32 %v4849_v22, %v5724_v52  ;;  %v4851_v3 = vpop.eup %4850  ;;  %v5838_v22 = vld [vmem:[%s6926_s2 + $0xc4] ss:$16 sps:$4 sm:$0xff]  }
 0x27b   :  { %v5770_v62 = vadd.f32 %v1153_v50, %v1152_v47  ;;  %v5832_v50 = vld [vmem:[%s6926_s2 + $0xe8] ss:$16 sps:$4 sm:$0xff]   ;;  %v5852_v47 = vld [vmem:[%s6926_s2 + $0xc0] ss:$16 sps:$4 sm:$0xff]  }
 0x27d   :  { %4852 = vtanh.f32 %v5770_v62 }
 0x28a   :  { %v4853_v56 = vpop.eup %4852 }
 0x28b   :  { %v5773_v54 = vmul.f32 %v4853_v56, %v4851_v3  ;;  %v5864_v3 = vld [vmem:[%s6926_s2 + $0xa4] ss:$16 sps:$4 sm:$0xff]   ;;  %v5870_v56 = vld [vmem:[%s6926_s2 + $0xac] ss:$16 sps:$4 sm:$0xff]  }
 0x28d   :  { %v1157_v60 = vpack.c.bf16 %v5773_v54, %v5773_v54 }
 0x28f   :  { %1195 = vmatmul.mubr.bf16.vlgmr.msra.gmra.mxu0 %v1157_v60  ;;  %1236 = vmatmul.mubr.bf16.vlgmr.msra.gmra.mxu1 %v1157_v60  ;;  %v5876_v60 = vld [vmem:[%s6926_s2 + $0xa0] ss:$16 sps:$4 sm:$0xff]  }
 0x290   :  { %1274 = vmatpush1.bf16.msra.mxu0 %v5400_v8  ;;  %1315 = vmatpush1.bf16.msra.mxu1 %v5405_v9 }
 0x291   :  { %1275 = vmatprep.subr.bf16.mxu0 %v5410_v10  ;;  %1316 = vmatprep.subr.bf16.mxu1 %v5417_v11 }
 0x292   :  { %1305 = vmatprep.mubr.bf16.mxu0 %v6971_v7  ;;  %1346 = vmatprep.mubr.bf16.mxu1 %v6971_v7 }
 0x294   :  { %1276 = vmatpush1.bf16.msra.mxu0 %v5424_v13  ;;  %1317 = vmatpush1.bf16.msra.mxu1 %v5429_v14 }
 0x295   :  { %1277 = vmatprep.subr.bf16.mxu0 %v5436_v16  ;;  %1318 = vmatprep.subr.bf16.mxu1 %v5441_v17 }
 0x298   :  { %1278 = vmatpush1.bf16.msra.mxu0 %v5446_v18  ;;  %1319 = vmatpush1.bf16.msra.mxu1 %v5451_v19 }
 0x299   :  { %1279 = vmatprep.subr.bf16.mxu0 %v5456_v20  ;;  %1320 = vmatprep.subr.bf16.mxu1 %v5461_v21 }
 0x29c   :  { %1280 = vmatpush1.bf16.msra.mxu0 %v5470_v23  ;;  %1321 = vmatpush1.bf16.msra.mxu1 %v5475_v24 }
 0x29d   :  { %1281 = vmatprep.subr.bf16.mxu0 %v5480_v25  ;;  %1322 = vmatprep.subr.bf16.mxu1 %v5485_v26 }
 0x2a0   :  { %1282 = vmatpush1.bf16.msra.mxu0 %v5494_v28  ;;  %1323 = vmatpush1.bf16.msra.mxu1 %v5499_v29 }
 0x2a1   :  { %1283 = vmatprep.subr.bf16.mxu0 %v5504_v30  ;;  %1324 = vmatprep.subr.bf16.mxu1 %v5509_v31 }
 0x2a4   :  { %1284 = vmatpush1.bf16.msra.mxu0 %v5518_v33  ;;  %1325 = vmatpush1.bf16.msra.mxu1 %v5523_v34 }
 0x2a5   :  { %1285 = vmatprep.subr.bf16.mxu0 %v5528_v35  ;;  %1326 = vmatprep.subr.bf16.mxu1 %v5533_v36 }
 0x2a8   :  { %1286 = vmatpush1.bf16.msra.mxu0 %v5542_v38  ;;  %1327 = vmatpush1.bf16.msra.mxu1 %v5547_v39 }
 0x2a9   :  { %1287 = vmatprep.subr.bf16.mxu0 %v5552_v40  ;;  %1328 = vmatprep.subr.bf16.mxu1 %v5557_v41 }
 0x2ac   :  { %1288 = vmatpush1.bf16.msra.mxu0 %v5566_v42  ;;  %1329 = vmatpush1.bf16.msra.mxu1 %v5571_v43 }
 0x2ad   :  { %1384 = vmatprep.subr.bf16.mxu0 %v5390_v5  ;;  %1425 = vmatprep.subr.bf16.mxu1 %v5395_v6  ;;  %v6972_v6 = vld [vmem:[#allocation16_spill] sm:$0xff] }
 0x34f   :  { %v1196_v8 = vpop.f32.mrf.mxu0  ;;  %v1237_v9 = vpop.f32.mrf.mxu1 }
 0x350   :  { %v1197_v10 = vadd.f32 %v1196_v8, %v5658_v12  ;;  %v1238_v5 = vadd.f32 %v1237_v9, %v5661_v15  ;;  %v5882_v8 = vld [vmem:[%s6926_s2 + $0xa8] ss:$16 sps:$4 sm:$0xff]   ;;  %v5888_v9 = vld [vmem:[%s6926_s2 + $0x84] ss:$16 sps:$4 sm:$0xff]  }
 0x351   :  { %v1198_v11 = vpop.f32.mrf.mxu0  ;;  %v1239_v13 = vpop.f32.mrf.mxu1 }
 0x352   :  { %v4208_v14 = vmul.f32 -1.442695, %v1197_v10  ;;  %v1199_v16 = vadd.f32 %v1198_v11, %v5663_v32  ;;  %v4210_v52 = vmul.f32 -1.442695, %v1238_v5  ;;  %v1240_v49 = vadd.f32 %v1239_v13, %v6972_v6  ;;  %v5894_v10 = vld [vmem:[%s6926_s2 + $0x8c] ss:$16 sps:$4 sm:$0xff]  }
 0x353   :  { %v1200_v17 = vpop.f32.mrf.mxu0  ;;  %v1241_v18 = vpop.f32.mrf.mxu1  ;;  %v6975_v11 = vld [vmem:[#allocation18_spill] sm:$0xff] }
 0x354   :  { %4854 = vpow2.f32 %v4208_v14  ;;  %v4209_v19 = vmul.f32 -1.442695, %v1199_v16  ;;  %v6976_v16 = vld [vmem:[#allocation20_spill] sm:$0xff] }
 0x355   :  { %v1201_v20 = vpop.f32.mrf.mxu0  ;;  %v1242_v21 = vpop.f32.mrf.mxu1 }
 0x356   :  { %4856 = vpow2.f32 %v4209_v19 }
 0x357   :  { %4858 = vpow2.f32 %v4210_v52 }
 0x358   :  { %4860 = vtanh.f32 %v1240_v49 }
 0x361   :  { %v4855_v63 = vpop.eup %4854 }
 0x362   :  { %v1253_v59 = vadd.f32 1.0, %v4855_v63 }
 0x363   :  { %v4857_v12 = vpop.eup %4856 }
 0x364   :  { %4862 = vrcp.f32 %v1253_v59  ;;  %v1254_v53 = vadd.f32 1.0, %v4857_v12  ;;  %v4859_v32 = vpop.eup %4858 }
 0x365   :  { %v4861_v37 = vpop.eup %4860  ;;  %v1255_v51 = vadd.f32 1.0, %v4859_v32 }
 0x366   :  { %4864 = vrcp.f32 %v1254_v53 }
 0x367   :  { %4866 = vrcp.f32 %v1255_v51  ;;  %v5962_v51 = vld [vmem:[%s6926_s2 + $0x88] ss:$16 sps:$4 sm:$0xff]  }
 0x371   :  { %v4863_v58 = vpop.eup %4862 }
 0x372   :  { %v1264_v4 = vmul.f32 %v4863_v58, %v4861_v37 }
 0x373   :  { %v4865_v48 = vpop.eup %4864 }
 0x374   :  { %v1263_v45 = vmul.f32 %v4865_v48, %v5770_v62  ;;  %v4867_v61 = vpop.eup %4866  ;;  %v5858_v62 = vld [vmem:[%s6926_s2 + $0xc8] ss:$16 sps:$4 sm:$0xff]   ;;  %v5956_v48 = vld [vmem:[%s6926_s2 + $0x80] ss:$16 sps:$4 sm:$0xff]  }
 0x376   :  { %v5816_v15 = vadd.f32 %v1264_v4, %v1263_v45  ;;  %v5968_v45 = vld [vmem:[%s6926_s2 + $0x64] ss:$16 sps:$4 sm:$0xff]  }
 0x378   :  { %4868 = vtanh.f32 %v5816_v15 }
 0x385   :  { %v4869_v55 = vpop.eup %4868 }
 0x386   :  { %v5819_v1 = vmul.f32 %v4869_v55, %v4867_v61  ;;  %v5980_v61 = vld [vmem:[%s6926_s2 + $0x60] ss:$16 sps:$4 sm:$0xff]   ;;  %v5986_v55 = vld [vmem:[%s6926_s2 + $0x68] ss:$16 sps:$4 sm:$0xff]  }
 0x388   :  { %v1268_v57 = vpack.c.bf16 %v5819_v1, %v5819_v1 }
 0x38a   :  { %1306 = vmatmul.mubr.bf16.vlgmr.msra.gmra.mxu0 %v1268_v57  ;;  %1347 = vmatmul.mubr.bf16.vlgmr.msra.gmra.mxu1 %v1268_v57  ;;  %v5992_v57 = vld [vmem:[%s6926_s2 + $0x44] ss:$16 sps:$4 sm:$0xff]  }
 0x38b   :  { %1385 = vmatpush1.bf16.msra.mxu0 %v5826_v0  ;;  %1426 = vmatpush1.bf16.msra.mxu1 %v5832_v50 }
 0x38c   :  { %1386 = vmatprep.subr.bf16.mxu0 %v5838_v22  ;;  %1427 = vmatprep.subr.bf16.mxu1 %v5844_v27 }
 0x38d   :  { %1416 = vmatprep.mubr.bf16.mxu0 %v6971_v7  ;;  %1457 = vmatprep.mubr.bf16.mxu1 %v6971_v7 }
 0x38f   :  { %1387 = vmatpush1.bf16.msra.mxu0 %v5852_v47  ;;  %1428 = vmatpush1.bf16.msra.mxu1 %v5858_v62 }
 0x390   :  { %1388 = vmatprep.subr.bf16.mxu0 %v5864_v3  ;;  %1429 = vmatprep.subr.bf16.mxu1 %v5870_v56 }
 0x393   :  { %1389 = vmatpush1.bf16.msra.mxu0 %v5876_v60  ;;  %1430 = vmatpush1.bf16.msra.mxu1 %v5882_v8 }
 0x394   :  { %1390 = vmatprep.subr.bf16.mxu0 %v5888_v9  ;;  %1431 = vmatprep.subr.bf16.mxu1 %v5894_v10 }
 0x397   :  { %1391 = vmatpush1.bf16.msra.mxu0 %v5470_v23  ;;  %1432 = vmatpush1.bf16.msra.mxu1 %v5475_v24  ;;  %v5918_v23 = vld [vmem:[%s6926_s2 + $0xe4] ss:$16 sps:$4 sm:$0xff]   ;;  %v5924_v24 = vld [vmem:[%s6926_s2 + $0xec] ss:$16 sps:$4 sm:$0xff]  }
 0x398   :  { %1392 = vmatprep.subr.bf16.mxu0 %v5480_v25  ;;  %1433 = vmatprep.subr.bf16.mxu1 %v5485_v26 }
 0x39b   :  { %1393 = vmatpush1.bf16.msra.mxu0 %v5494_v28  ;;  %1434 = vmatpush1.bf16.msra.mxu1 %v5499_v29  ;;  %v6973_v28 = vld [vmem:[#allocation17_spill] sm:$0xff] }
 0x39c   :  { %1394 = vmatprep.subr.bf16.mxu0 %v5504_v30  ;;  %1435 = vmatprep.subr.bf16.mxu1 %v5509_v31 }
 0x39f   :  { %1395 = vmatpush1.bf16.msra.mxu0 %v5518_v33  ;;  %1436 = vmatpush1.bf16.msra.mxu1 %v5523_v34  ;;  %v6974_v34 = vld [vmem:[#allocation19_spill] sm:$0xff] }
 0x3a0   :  { %1396 = vmatprep.subr.bf16.mxu0 %v5528_v35  ;;  %1437 = vmatprep.subr.bf16.mxu1 %v5533_v36 }
 0x3a3   :  { %1397 = vmatpush1.bf16.msra.mxu0 %v5542_v38  ;;  %1438 = vmatpush1.bf16.msra.mxu1 %v5547_v39 }
 0x3a4   :  { %1398 = vmatprep.subr.bf16.mxu0 %v5552_v40  ;;  %1439 = vmatprep.subr.bf16.mxu1 %v5557_v41 }
 0x3a7   :  { %1399 = vmatpush1.bf16.msra.mxu0 %v5566_v42  ;;  %1440 = vmatpush1.bf16.msra.mxu1 %v5571_v43 }
 0x3a8   :  { %1495 = vmatprep.subr.bf16.mxu0 %v5918_v23  ;;  %1536 = vmatprep.subr.bf16.mxu1 %v5924_v24 }
 0x44a   :  { %v1307_v25 = vpop.f32.mrf.mxu0  ;;  %v1348_v26 = vpop.f32.mrf.mxu1 }
 0x44b   :  { %v1308_v29 = vadd.f32 %v1307_v25, %v6973_v28  ;;  %v1349_v13 = vadd.f32 %v1348_v26, %v6975_v11  ;;  %v5998_v25 = vld [vmem:[%s6926_s2 + $0x4c] ss:$16 sps:$4 sm:$0xff]   ;;  %v6004_v26 = vld [vmem:[%s6926_s2 + $0x40] ss:$16 sps:$4 sm:$0xff]   ;;  %v6010_v28 = vld [vmem:[%s6926_s2 + $0x48] ss:$16 sps:$4 sm:$0xff]  }
 0x44c   :  { %v1309_v30 = vpop.f32.mrf.mxu0  ;;  %v1350_v31 = vpop.f32.mrf.mxu1 }
 0x44d   :  { %v4211_v33 = vmul.f32 -1.442695, %v1308_v29  ;;  %v1310_v35 = vadd.f32 %v1309_v30, %v6974_v34  ;;  %v4213_v14 = vmul.f32 -1.442695, %v1349_v13  ;;  %v1351_v17 = vadd.f32 %v1350_v31, %v6976_v16  ;;  %v6016_v29 = vld [vmem:[%s6926_s2 + $0x24] ss:$16 sps:$4 sm:$0xff]  }
 0x44e   :  { %v1311_v36 = vpop.f32.mrf.mxu0  ;;  %v1352_v38 = vpop.f32.mrf.mxu1  ;;  %v6022_v30 = vld [vmem:[%s6926_s2 + $0x2c] ss:$16 sps:$4 sm:$0xff]   ;;  %v6028_v31 = vld [vmem:[%s6926_s2 + $0x20] ss:$16 sps:$4 sm:$0xff]   ;;  %v6040_v34 = vld [vmem:[%s6926_s2 + $0x4] ss:$16 sps:$4 sm:$0xff]  }
 0x44f   :  { %4870 = vpow2.f32 %v4211_v33  ;;  %v4212_v39 = vmul.f32 -1.442695, %v1310_v35  ;;  %v6034_v33 = vld [vmem:[%s6926_s2 + $0x28] ss:$16 sps:$4 sm:$0xff]   ;;  %v6046_v35 = vld [vmem:[%s6926_s2 + $0xc] ss:$16 sps:$4 sm:$0xff]  }
 0x450   :  { %v1312_v40 = vpop.f32.mrf.mxu0  ;;  %v1353_v41 = vpop.f32.mrf.mxu1 }
 0x451   :  { %4872 = vpow2.f32 %v4212_v39  ;;  %v6977_v39 = vld [vmem:[#allocation21_spill] sm:$0xff] }
 0x452   :  { %4874 = vpow2.f32 %v4213_v14  ;;  %v6978_v14 = vld [vmem:[#allocation23_spill] sm:$0xff] }
 0x453   :  { %4876 = vtanh.f32 %v1351_v17 }
 0x45c   :  { %v4871_v18 = vpop.eup %4870 }
 0x45d   :  { %v1364_v19 = vadd.f32 1.0, %v4871_v18 }
 0x45e   :  { %v4873_v20 = vpop.eup %4872 }
 0x45f   :  { %4878 = vrcp.f32 %v1364_v19  ;;  %v1365_v21 = vadd.f32 1.0, %v4873_v20  ;;  %v4875_v5 = vpop.eup %4874 }
 0x460   :  { %v4877_v52 = vpop.eup %4876  ;;  %v1366_v59 = vadd.f32 1.0, %v4875_v5 }
 0x461   :  { %4880 = vrcp.f32 %v1365_v21 }
 0x462   :  { %4882 = vrcp.f32 %v1366_v59 }
 0x46c   :  { %v4879_v6 = vpop.eup %4878 }
 0x46d   :  { %v1375_v49 = vmul.f32 %v4879_v6, %v4877_v52  ;;  %v6980_v52 = vld [vmem:[#allocation24_spill] sm:$0xff] }
 0x46e   :  { %v4881_v63 = vpop.eup %4880 }
 0x46f   :  { %v1374_v12 = vmul.f32 %v4881_v63, %v5816_v15  ;;  %v4883_v32 = vpop.eup %4882  ;;  %v5974_v15 = vld [vmem:[%s6926_s2 + $0x6c] ss:$16 sps:$4 sm:$0xff]  }
 0x471   :  { %v5932_v53 = vadd.f32 %v1375_v49, %v1374_v12 }
 0x473   :  { %4884 = vtanh.f32 %v5932_v53 }
 0x480   :  { %v4885_v37 = vpop.eup %4884 }
 0x481   :  { %v5935_v58 = vmul.f32 %v4885_v37, %v4883_v32 }
 0x483   :  { %v1379_v4 = vpack.c.bf16 %v5935_v58, %v5935_v58 }
 0x485   :  { %1417 = vmatmul.mubr.bf16.vlgmr.msra.gmra.mxu0 %v1379_v4  ;;  %1458 = vmatmul.mubr.bf16.vlgmr.msra.gmra.mxu1 %v1379_v4 }
 0x486   :  { %1496 = vmatpush1.bf16.msra.mxu0 %v5826_v0  ;;  %1537 = vmatpush1.bf16.msra.mxu1 %v5832_v50 }
 0x487   :  { %1497 = vmatprep.subr.bf16.mxu0 %v5838_v22  ;;  %1538 = vmatprep.subr.bf16.mxu1 %v5844_v27 }
 0x488   :  { %1527 = vmatprep.mubr.bf16.mxu0 %v6971_v7  ;;  %1568 = vmatprep.mubr.bf16.mxu1 %v6971_v7 }
 0x48a   :  { %1498 = vmatpush1.bf16.msra.mxu0 %v5852_v47  ;;  %1539 = vmatpush1.bf16.msra.mxu1 %v5858_v62 }
 0x48b   :  { %1499 = vmatprep.subr.bf16.mxu0 %v5864_v3  ;;  %1540 = vmatprep.subr.bf16.mxu1 %v5870_v56 }
 0x48e   :  { %1500 = vmatpush1.bf16.msra.mxu0 %v5876_v60  ;;  %1541 = vmatpush1.bf16.msra.mxu1 %v5882_v8 }
 0x48f   :  { %1501 = vmatprep.subr.bf16.mxu0 %v5888_v9  ;;  %1542 = vmatprep.subr.bf16.mxu1 %v5894_v10 }
 0x492   :  { %1502 = vmatpush1.bf16.msra.mxu0 %v5956_v48  ;;  %1543 = vmatpush1.bf16.msra.mxu1 %v5962_v51 }
 0x493   :  { %1503 = vmatprep.subr.bf16.mxu0 %v5968_v45  ;;  %1544 = vmatprep.subr.bf16.mxu1 %v5974_v15 }
 0x496   :  { %1504 = vmatpush1.bf16.msra.mxu0 %v5980_v61  ;;  %1545 = vmatpush1.bf16.msra.mxu1 %v5986_v55 }
 0x497   :  { %1505 = vmatprep.subr.bf16.mxu0 %v5992_v57  ;;  %1546 = vmatprep.subr.bf16.mxu1 %v5998_v25 }
 0x49a   :  { %1506 = vmatpush1.bf16.msra.mxu0 %v6004_v26  ;;  %1547 = vmatpush1.bf16.msra.mxu1 %v6010_v28 }
 0x49b   :  { %1507 = vmatprep.subr.bf16.mxu0 %v6016_v29  ;;  %1548 = vmatprep.subr.bf16.mxu1 %v6022_v30 }
 0x49e   :  { %1508 = vmatpush1.bf16.msra.mxu0 %v6028_v31  ;;  %1549 = vmatpush1.bf16.msra.mxu1 %v6034_v33 }
 0x49f   :  { %1509 = vmatprep.subr.bf16.mxu0 %v6040_v34  ;;  %1550 = vmatprep.subr.bf16.mxu1 %v6046_v35 }
 0x4a2   :  { %1510 = vmatpush1.bf16.msra.mxu0 %v5566_v42  ;;  %1551 = vmatpush1.bf16.msra.mxu1 %v5571_v43  ;;  %v6979_v43 = vld [vmem:[#allocation22_spill] sm:$0xff] }
 0x4a3   :  { %1606 = vmatprep.subr.bf16.mxu0 %v5918_v23  ;;  %1647 = vmatprep.subr.bf16.mxu1 %v5924_v24 }
 0x545   :  { %v1418_v36 = vpop.f32.mrf.mxu0  ;;  %v1459_v38 = vpop.f32.mrf.mxu1 }
 0x546   :  { %v1419_v40 = vadd.f32 %v1418_v36, %v6977_v39  ;;  %v1460_v21 = vadd.f32 %v1459_v38, %v6979_v43 }
 0x547   :  { %v1420_v41 = vpop.f32.mrf.mxu0  ;;  %v1461_v11 = vpop.f32.mrf.mxu1 }
 0x548   :  { %v4214_v13 = vmul.f32 -1.442695, %v1419_v40  ;;  %v1421_v16 = vadd.f32 %v1420_v41, %v6978_v14  ;;  %v4216_v5 = vmul.f32 -1.442695, %v1460_v21  ;;  %v1462_v6 = vadd.f32 %v1461_v11, %v6980_v52  ;;  %v6982_v52 = vld [vmem:[#allocation27_spill] sm:$0xff] }
 0x549   :  { %v1422_v17 = vpop.f32.mrf.mxu0  ;;  %v1463_v18 = vpop.f32.mrf.mxu1 }
 0x54a   :  { %4886 = vpow2.f32 %v4214_v13  ;;  %v4215_v19 = vmul.f32 -1.442695, %v1421_v16  ;;  %v6104_v17 = vld [vmem:[%s6926_s2 + $0x8] ss:$16 sps:$4 sm:$0xff]  }
 0x54b   :  { %v1423_v42 = vpop.f32.mrf.mxu0  ;;  %v1464_v20 = vpop.f32.mrf.mxu1 }
 0x54c   :  { %4888 = vpow2.f32 %v4215_v19  ;;  %v6981_v42 = vld [vmem:[#allocation25_spill] sm:$0xff] }
 0x54d   :  { %4890 = vpow2.f32 %v4216_v5 }
 0x54e   :  { %4892 = vtanh.f32 %v1462_v6 }
 0x557   :  { %v4887_v49 = vpop.eup %4886 }
 0x558   :  { %v1475_v63 = vadd.f32 1.0, %v4887_v49 }
 0x559   :  { %v4889_v59 = vpop.eup %4888 }
 0x55a   :  { %4894 = vrcp.f32 %v1475_v63  ;;  %v1476_v12 = vadd.f32 1.0, %v4889_v59  ;;  %v4891_v32 = vpop.eup %4890 }
 0x55b   :  { %v4893_v37 = vpop.eup %4892  ;;  %v1477_v40 = vadd.f32 1.0, %v4891_v32 }
 0x55c   :  { %4896 = vrcp.f32 %v1476_v12 }
 0x55d   :  { %4898 = vrcp.f32 %v1477_v40 }
 0x567   :  { %v4895_v4 = vpop.eup %4894 }
 0x568   :  { %v1486_v36 = vmul.f32 %v4895_v4, %v4893_v37  ;;  %v6983_v37 = vld [vmem:[#allocation26_spill] sm:$0xff] }
 0x569   :  { %v4897_v39 = vpop.eup %4896 }
 0x56a   :  { %v1485_v41 = vmul.f32 %v4897_v39, %v5932_v53  ;;  %v4899_v11 = vpop.eup %4898  ;;  %v6098_v53 = vld [vmem:[%s6926_s2] ss:$16 sps:$4 sm:$0xff]  }
 0x56c   :  { %v6058_v38 = vadd.f32 %v1486_v36, %v1485_v41 }
 0x56e   :  { %4900 = vtanh.f32 %v6058_v38 }
 0x57b   :  { %v4901_v13 = vpop.eup %4900 }
 0x57c   :  { %v6061_v14 = vmul.f32 %v4901_v13, %v4899_v11 }
 0x57e   :  { %v1490_v16 = vpack.c.bf16 %v6061_v14, %v6061_v14 }
 0x580   :  { %1528 = vmatmul.mubr.bf16.vlgmr.msra.gmra.mxu0 %v1490_v16  ;;  %1569 = vmatmul.mubr.bf16.vlgmr.msra.gmra.mxu1 %v1490_v16 }
 0x581   :  { %1607 = vmatpush1.bf16.msra.mxu0 %v5826_v0  ;;  %1648 = vmatpush1.bf16.msra.mxu1 %v5832_v50 }
 0x582   :  { %1608 = vmatprep.subr.bf16.mxu0 %v5838_v22  ;;  %1649 = vmatprep.subr.bf16.mxu1 %v5844_v27 }
 0x583   :  { %1638 = vmatprep.mubr.bf16.mxu0 %v6971_v7  ;;  %1679 = vmatprep.mubr.bf16.mxu1 %v6971_v7 }
 0x585   :  { %1609 = vmatpush1.bf16.msra.mxu0 %v5852_v47  ;;  %1650 = vmatpush1.bf16.msra.mxu1 %v5858_v62 }
 0x586   :  { %1610 = vmatprep.subr.bf16.mxu0 %v5864_v3  ;;  %1651 = vmatprep.subr.bf16.mxu1 %v5870_v56 }
 0x589   :  { %1611 = vmatpush1.bf16.msra.mxu0 %v5876_v60  ;;  %1652 = vmatpush1.bf16.msra.mxu1 %v5882_v8 }
 0x58a   :  { %1612 = vmatprep.subr.bf16.mxu0 %v5888_v9  ;;  %1653 = vmatprep.subr.bf16.mxu1 %v5894_v10 }
 0x58d   :  { %1613 = vmatpush1.bf16.msra.mxu0 %v5956_v48  ;;  %1654 = vmatpush1.bf16.msra.mxu1 %v5962_v51 }
 0x58e   :  { %1614 = vmatprep.subr.bf16.mxu0 %v5968_v45  ;;  %1655 = vmatprep.subr.bf16.mxu1 %v5974_v15 }
 0x591   :  { %1615 = vmatpush1.bf16.msra.mxu0 %v5980_v61  ;;  %1656 = vmatpush1.bf16.msra.mxu1 %v5986_v55 }
 0x592   :  { %1616 = vmatprep.subr.bf16.mxu0 %v5992_v57  ;;  %1657 = vmatprep.subr.bf16.mxu1 %v5998_v25 }
 0x595   :  { %1617 = vmatpush1.bf16.msra.mxu0 %v6004_v26  ;;  %1658 = vmatpush1.bf16.msra.mxu1 %v6010_v28 }
 0x596   :  { %1618 = vmatprep.subr.bf16.mxu0 %v6016_v29  ;;  %1659 = vmatprep.subr.bf16.mxu1 %v6022_v30 }
 0x599   :  { %1619 = vmatpush1.bf16.msra.mxu0 %v6028_v31  ;;  %1660 = vmatpush1.bf16.msra.mxu1 %v6034_v33 }
 0x59a   :  { %1620 = vmatprep.subr.bf16.mxu0 %v6040_v34  ;;  %1661 = vmatprep.subr.bf16.mxu1 %v6046_v35 }
 0x59d   :  { %1621 = vmatpush1.bf16.msra.mxu0 %v6098_v53  ;;  %1662 = vmatpush1.bf16.msra.mxu1 %v6104_v17 }
 0x59e   :  { %1717 = vmatprep.subr.bf16.mxu0 %v5918_v23  ;;  %1758 = vmatprep.subr.bf16.mxu1 %v5924_v24  ;;  %v6984_v24 = vld [vmem:[#allocation28_spill] sm:$0xff] }
 0x640   :  { %v1529_v18 = vpop.f32.mrf.mxu0  ;;  %v1570_v19 = vpop.f32.mrf.mxu1 }
 0x641   :  { %v1530_v20 = vadd.f32 %v1529_v18, %v6981_v42  ;;  %v1571_v23 = vadd.f32 %v1570_v19, %v6983_v37 }
 0x642   :  { %v1531_v43 = vpop.f32.mrf.mxu0  ;;  %v1572_v21 = vpop.f32.mrf.mxu1 }
 0x643   :  { %v4217_v5 = vmul.f32 -1.442695, %v1530_v20  ;;  %v1532_v6 = vadd.f32 %v1531_v43, %v6982_v52  ;;  %v4219_v4 = vmul.f32 -1.442695, %v1571_v23  ;;  %v1573_v36 = vadd.f32 %v1572_v21, %v6984_v24 }
 0x644   :  { %v1533_v49 = vpop.f32.mrf.mxu0  ;;  %v1574_v63 = vpop.f32.mrf.mxu1 }
 0x645   :  { %4902 = vpow2.f32 %v4217_v5  ;;  %v4218_v59 = vmul.f32 -1.442695, %v1532_v6  ;;  %v1828_v49 = vsel %vm1823_vm0, %v6061_v14, %v5935_v58 }
 0x646   :  { %v1534_v12 = vpop.f32.mrf.mxu0  ;;  %v1575_v32 = vpop.f32.mrf.mxu1 }
 0x647   :  { %4904 = vpow2.f32 %v4218_v59  ;;  %v1827_v12 = vsel %vm1823_vm0, %v5935_v58, %v6061_v14 }
 0x648   :  { %4906 = vpow2.f32 %v4219_v4 }
 0x649   :  { %4908 = vtanh.f32 %v1573_v36 }
 0x652   :  { %v4903_v39 = vpop.eup %4902 }
 0x653   :  { %v1586_v40 = vadd.f32 1.0, %v4903_v39 }
 0x654   :  { %v4905_v41 = vpop.eup %4904 }
 0x655   :  { %4910 = vrcp.f32 %v1586_v40  ;;  %v1587_v11 = vadd.f32 1.0, %v4905_v41  ;;  %v4907_v13 = vpop.eup %4906  ;;  %v4654_v40 = vld [vmem:[#allocation9 + $0xe0] ss:$16 sps:$4 sm:$0xff]   ;;  %v4657_v41 = vld [vmem:[#allocation9 + $0xe8] ss:$16 sps:$4 sm:$0xff]  }
 0x656   :  { %v4909_v16 = vpop.eup %4908  ;;  %v1588_v43 = vadd.f32 1.0, %v4907_v13  ;;  %v4662_v13 = vld [vmem:[#allocation9 + $0xc4] ss:$16 sps:$4 sm:$0xff]  }
 0x657   :  { %4912 = vrcp.f32 %v1587_v11 }
 0x658   :  { %4914 = vrcp.f32 %v1588_v43  ;;  %v4671_v43 = vld [vmem:[#allocation9 + $0xac] ss:$16 sps:$4 sm:$0xff]  }
 0x662   :  { %v4911_v18 = vpop.eup %4910 }
 0x663   :  { %v1597_v42 = vmul.f32 %v4911_v18, %v4909_v16  ;;  %v4665_v16 = vld [vmem:[#allocation9 + $0xcc] ss:$16 sps:$4 sm:$0xff]   ;;  %v4660_v18 = vld [vmem:[#allocation9 + $0xc0] ss:$16 sps:$4 sm:$0xff]  }
 0x664   :  { %v4913_v20 = vpop.eup %4912 }
 0x665   :  { %v1596_v5 = vmul.f32 %v4913_v20, %v6058_v38  ;;  %v4915_v21 = vpop.eup %4914  ;;  %v4668_v20 = vld [vmem:[#allocation9 + $0xa4] ss:$16 sps:$4 sm:$0xff]  }
 0x667   :  { %v6114_v19 = vadd.f32 %v1597_v42, %v1596_v5  ;;  %v4663_v42 = vld [vmem:[#allocation9 + $0xc8] ss:$16 sps:$4 sm:$0xff]   ;;  %v4666_v5 = vld [vmem:[#allocation9 + $0xa0] ss:$16 sps:$4 sm:$0xff]  }
 0x669   :  { %4916 = vtanh.f32 %v6114_v19 }
 0x676   :  { %v4917_v52 = vpop.eup %4916 }
 0x677   :  { %v1600_v6 = vmul.f32 %v4917_v52, %v4915_v21  ;;  %v4674_v21 = vld [vmem:[#allocation9 + $0x84] ss:$16 sps:$4 sm:$0xff]   ;;  %v4677_v52 = vld [vmem:[#allocation9 + $0x8c] ss:$16 sps:$4 sm:$0xff]  }
 0x679   :  { %v1601_v63 = vpack.c.bf16 %v1600_v6, %v1600_v6  ;;  %v1829_v59 = vsel %vm1823_vm0, %v1600_v6, %v5819_v1  ;;  %v1826_v38 = vsel %vm1823_vm0, %v5819_v1, %v1600_v6  ;;  %v4656_v1 = vld [vmem:[#allocation9 + $0xe4] ss:$16 sps:$4 sm:$0xff]   ;;  %v4672_v6 = vld [vmem:[#allocation9 + $0x80] ss:$16 sps:$4 sm:$0xff]  }
 0x67a   :  { %v6127_v32 = vpack.c.bf16 %v1828_v49, %v1829_v59  ;;  %v6129_v37 = vpack.c.bf16 %v1827_v12, %v1826_v38  ;;  %v6131_v23 = vpack.c.bf16 %v1826_v38, %v1827_v12  ;;  %v6133_v4 = vpack.c.bf16 %v1829_v59, %v1828_v49  ;;  %v4675_v49 = vld [vmem:[#allocation9 + $0x88] ss:$16 sps:$4 sm:$0xff]   ;;  %v4683_v59 = vld [vmem:[#allocation9 + $0x6c] ss:$16 sps:$4 sm:$0xff]   ;;  %v4678_v38 = vld [vmem:[#allocation9 + $0x60] ss:$16 sps:$4 sm:$0xff]  }
 0x67b   :  { %1639 = vmatmul.mubr.bf16.vlgmr.msra.gmra.mxu0 %v1601_v63  ;;  %1680 = vmatmul.mubr.bf16.vlgmr.msra.gmra.mxu1 %v1601_v63  ;;  %v4680_v63 = vld [vmem:[#allocation9 + $0x64] ss:$16 sps:$4 sm:$0xff]   ;;  %v4681_v12 = vld [vmem:[#allocation9 + $0x68] ss:$16 sps:$4 sm:$0xff]  }
 0x67c   :  { %1718 = vmatpush1.bf16.msra.mxu0 %v5826_v0  ;;  %1759 = vmatpush1.bf16.msra.mxu1 %v5832_v50  ;;  %v4659_v0 = vld [vmem:[#allocation9 + $0xec] ss:$16 sps:$4 sm:$0xff]  }
 0x67d   :  { %1719 = vmatprep.subr.bf16.mxu0 %v5838_v22  ;;  %1760 = vmatprep.subr.bf16.mxu1 %v5844_v27  ;;  %v6985_v27 = vld [vmem:[#allocation29_spill] sm:$0xff] }
 0x67e   :  { %1749 = vmatprep.mubr.bf16.mxu0 %v6971_v7  ;;  %1790 = vmatprep.mubr.bf16.mxu1 %v6971_v7 }
 0x680   :  { %1720 = vmatpush1.bf16.msra.mxu0 %v5852_v47  ;;  %1761 = vmatpush1.bf16.msra.mxu1 %v5858_v62 }
 0x681   :  { %1721 = vmatprep.subr.bf16.mxu0 %v5864_v3  ;;  %1762 = vmatprep.subr.bf16.mxu1 %v5870_v56 }
 0x684   :  { %1722 = vmatpush1.bf16.msra.mxu0 %v5876_v60  ;;  %1763 = vmatpush1.bf16.msra.mxu1 %v5882_v8  ;;  %v6986_v60 = vld [vmem:[#allocation31_spill] sm:$0xff] }
 0x685   :  { %1723 = vmatprep.subr.bf16.mxu0 %v5888_v9  ;;  %1764 = vmatprep.subr.bf16.mxu1 %v5894_v10 }
 0x688   :  { %1724 = vmatpush1.bf16.msra.mxu0 %v5956_v48  ;;  %1765 = vmatpush1.bf16.msra.mxu1 %v5962_v51 }
 0x689   :  { %1725 = vmatprep.subr.bf16.mxu0 %v5968_v45  ;;  %1766 = vmatprep.subr.bf16.mxu1 %v5974_v15  ;;  %v6987_v45 = vld [vmem:[#allocation30_spill] sm:$0xff] }
 0x68c   :  { %1726 = vmatpush1.bf16.msra.mxu0 %v5980_v61  ;;  %1767 = vmatpush1.bf16.msra.mxu1 %v5986_v55  ;;  %v6988_v55 = vld [vmem:[#allocation32_spill] sm:$0xff] }
 0x68d   :  { %1727 = vmatprep.subr.bf16.mxu0 %v5992_v57  ;;  %1768 = vmatprep.subr.bf16.mxu1 %v5998_v25 }
 0x690   :  { %1728 = vmatpush1.bf16.msra.mxu0 %v6004_v26  ;;  %1769 = vmatpush1.bf16.msra.mxu1 %v6010_v28 }
 0x691   :  { %1729 = vmatprep.subr.bf16.mxu0 %v6016_v29  ;;  %1770 = vmatprep.subr.bf16.mxu1 %v6022_v30 }
 0x694   :  { %1730 = vmatpush1.bf16.msra.mxu0 %v6028_v31  ;;  %1771 = vmatpush1.bf16.msra.mxu1 %v6034_v33 }
 0x695   :  { %1731 = vmatprep.subr.bf16.mxu0 %v6040_v34  ;;  %1772 = vmatprep.subr.bf16.mxu1 %v6046_v35 }
 0x698   :  { %1732 = vmatpush1.bf16.msra.mxu0 %v6098_v53  ;;  %1773 = vmatpush1.bf16.msra.mxu1 %v6104_v17 }
 0x699   :  { %2246 = vmatprep.subr.bf16.mxu0 %v4656_v1  ;;  %2319 = vmatprep.subr.bf16.mxu1 %v4659_v0  ;;  %v4686_v1 = vld [vmem:[#allocation9 + $0x44] ss:$16 sps:$4 sm:$0xff]   ;;  %v4689_v0 = vld [vmem:[#allocation9 + $0x4c] ss:$16 sps:$4 sm:$0xff]  }
 0x73b   :  { %v1640_v50 = vpop.f32.mrf.mxu0  ;;  %v1681_v22 = vpop.f32.mrf.mxu1 }
 0x73c   :  { %v1641_v47 = vadd.f32 %v1640_v50, %v6985_v27  ;;  %v1682_v15 = vadd.f32 %v1681_v22, %v6987_v45  ;;  %v4684_v50 = vld [vmem:[#allocation9 + $0x40] ss:$16 sps:$4 sm:$0xff]   ;;  %v4687_v22 = vld [vmem:[#allocation9 + $0x48] ss:$16 sps:$4 sm:$0xff]   ;;  %v4692_v27 = vld [vmem:[#allocation9 + $0x24] ss:$16 sps:$4 sm:$0xff]  }
 0x73d   :  { %v1642_v62 = vpop.f32.mrf.mxu0  ;;  %v1683_v3 = vpop.f32.mrf.mxu1  ;;  %v4710_v45 = vld [vmem:[#allocation9 + $0x1c4] ss:$16 sps:$4 sm:$0xff]  }
 0x73e   :  { %v4220_v56 = vmul.f32 -1.442695, %v1641_v47  ;;  %v1643_v8 = vadd.f32 %v1642_v62, %v6986_v60  ;;  %v4222_v61 = vmul.f32 -1.442695, %v1682_v15  ;;  %v1684_v57 = vadd.f32 %v1683_v3, %v6988_v55  ;;  %v4695_v47 = vld [vmem:[#allocation9 + $0x2c] ss:$16 sps:$4 sm:$0xff]  }
 0x73f   :  { %v1644_v9 = vpop.f32.mrf.mxu0  ;;  %v1685_v10 = vpop.f32.mrf.mxu1  ;;  %v4690_v62 = vld [vmem:[#allocation9 + $0x20] ss:$16 sps:$4 sm:$0xff]   ;;  %v4693_v3 = vld [vmem:[#allocation9 + $0x28] ss:$16 sps:$4 sm:$0xff]   ;;  %v4701_v60 = vld [vmem:[#allocation9 + $0xc] ss:$16 sps:$4 sm:$0xff]  }
 0x740   :  { %4918 = vpow2.f32 %v4220_v56  ;;  %v4221_v58 = vmul.f32 -1.442695, %v1643_v8  ;;  %v4698_v56 = vld [vmem:[#allocation9 + $0x4] ss:$16 sps:$4 sm:$0xff]   ;;  %v4696_v8 = vld [vmem:[#allocation9] ss:$16 sps:$4 sm:$0xff]  }
 0x741   :  { %v1645_v48 = vpop.f32.mrf.mxu0  ;;  %v1686_v51 = vpop.f32.mrf.mxu1  ;;  %v4699_v9 = vld [vmem:[#allocation9 + $0x8] ss:$16 sps:$4 sm:$0xff]   ;;  %v4704_v10 = vld [vmem:[#allocation9 + $0x1e4] ss:$16 sps:$4 sm:$0xff]   ;;  %v4713_v15 = vld [vmem:[#allocation9 + $0x1cc] ss:$16 sps:$4 sm:$0xff]  }
 0x742   :  { %4920 = vpow2.f32 %v4221_v58  ;;  %v4707_v58 = vld [vmem:[#allocation9 + $0x1ec] ss:$16 sps:$4 sm:$0xff]   ;;  %v4702_v48 = vld [vmem:[#allocation9 + $0x1e0] ss:$16 sps:$4 sm:$0xff]   ;;  %v4705_v51 = vld [vmem:[#allocation9 + $0x1e8] ss:$16 sps:$4 sm:$0xff]  }
 0x743   :  { %4922 = vpow2.f32 %v4222_v61  ;;  %v4708_v61 = vld [vmem:[#allocation9 + $0x1c0] ss:$16 sps:$4 sm:$0xff]   ;;  %v4711_v55 = vld [vmem:[#allocation9 + $0x1c8] ss:$16 sps:$4 sm:$0xff]  }
 0x744   :  { %4924 = vtanh.f32 %v1684_v57  ;;  %v4716_v57 = vld [vmem:[#allocation9 + $0x1a4] ss:$16 sps:$4 sm:$0xff]  }
 0x74d   :  { %v4919_v25 = vpop.eup %4918 }
 0x74e   :  { %v1697_v26 = vadd.f32 1.0, %v4919_v25  ;;  %v4719_v25 = vld [vmem:[#allocation9 + $0x1ac] ss:$16 sps:$4 sm:$0xff]  }
 0x74f   :  { %v4921_v28 = vpop.eup %4920 }
 0x750   :  { %4926 = vrcp.f32 %v1697_v26  ;;  %v1698_v29 = vadd.f32 1.0, %v4921_v28  ;;  %v4923_v30 = vpop.eup %4922  ;;  %v4714_v26 = vld [vmem:[#allocation9 + $0x1a0] ss:$16 sps:$4 sm:$0xff]   ;;  %v4717_v28 = vld [vmem:[#allocation9 + $0x1a8] ss:$16 sps:$4 sm:$0xff]  }
 0x751   :  { %v4925_v31 = vpop.eup %4924  ;;  %v1699_v14 = vadd.f32 1.0, %v4923_v30  ;;  %v4722_v30 = vld [vmem:[#allocation9 + $0x184] ss:$16 sps:$4 sm:$0xff]  }
 0x752   :  { %4928 = vrcp.f32 %v1698_v29  ;;  %v4720_v29 = vld [vmem:[#allocation9 + $0x180] ss:$16 sps:$4 sm:$0xff]  }
 0x753   :  { %4930 = vrcp.f32 %v1699_v14  ;;  %v4726_v14 = vld [vmem:[#allocation9 + $0x160] ss:$16 sps:$4 sm:$0xff]  }
 0x75d   :  { %v4927_v33 = vpop.eup %4926 }
 0x75e   :  { %v1708_v34 = vmul.f32 %v4927_v33, %v4925_v31  ;;  %v4723_v31 = vld [vmem:[#allocation9 + $0x188] ss:$16 sps:$4 sm:$0xff]   ;;  %v4725_v33 = vld [vmem:[#allocation9 + $0x18c] ss:$16 sps:$4 sm:$0xff]  }
 0x75f   :  { %v4929_v35 = vpop.eup %4928 }
 0x760   :  { %v1707_v53 = vmul.f32 %v4929_v35, %v6114_v19  ;;  %v4931_v24 = vpop.eup %4930  ;;  %v4669_v19 = vld [vmem:[#allocation9 + $0xa8] ss:$16 sps:$4 sm:$0xff]   ;;  %v4731_v35 = vld [vmem:[#allocation9 + $0x16c] ss:$16 sps:$4 sm:$0xff]  }
 0x762   :  { %v6172_v17 = vadd.f32 %v1708_v34, %v1707_v53  ;;  %v4728_v34 = vld [vmem:[#allocation9 + $0x164] ss:$16 sps:$4 sm:$0xff]   ;;  %v4729_v53 = vld [vmem:[#allocation9 + $0x168] ss:$16 sps:$4 sm:$0xff]  }
 0x764   :  { %4932 = vtanh.f32 %v6172_v17 }
 0x771   :  { %v4933_v36 = vpop.eup %4932 }
 0x772   :  { %v6175_v39 = vmul.f32 %v4933_v36, %v4931_v24  ;;  %v4734_v24 = vld [vmem:[#allocation9 + $0x144] ss:$16 sps:$4 sm:$0xff]   ;;  %v4737_v36 = vld [vmem:[#allocation9 + $0x14c] ss:$16 sps:$4 sm:$0xff]  }
 0x774   :  { %v1712_v11 = vpack.c.bf16 %v6175_v39, %v6175_v39 }
 0x776   :  { %1750 = vmatmul.mubr.bf16.vlgmr.msra.gmra.mxu0 %v1712_v11  ;;  %1791 = vmatmul.mubr.bf16.vlgmr.msra.gmra.mxu1 %v1712_v11  ;;  %v4740_v11 = vld [vmem:[#allocation9 + $0x124] ss:$16 sps:$4 sm:$0xff]  }
 0x777   :  { %2247 = vmatpush1.bf16.msra.mxu0 %v4654_v40  ;;  %2320 = vmatpush1.bf16.msra.mxu1 %v4657_v41  ;;  %v4732_v40 = vld [vmem:[#allocation9 + $0x140] ss:$16 sps:$4 sm:$0xff]   ;;  %v4735_v41 = vld [vmem:[#allocation9 + $0x148] ss:$16 sps:$4 sm:$0xff]  }
 0x778   :  { %2248 = vmatprep.subr.bf16.mxu0 %v4662_v13  ;;  %2321 = vmatprep.subr.bf16.mxu1 %v4665_v16  ;;  %v4743_v13 = vld [vmem:[#allocation9 + $0x12c] ss:$16 sps:$4 sm:$0xff]   ;;  %v4738_v16 = vld [vmem:[#allocation9 + $0x120] ss:$16 sps:$4 sm:$0xff]  }
 0x77b   :  { %2249 = vmatpush1.bf16.msra.mxu0 %v4660_v18  ;;  %2322 = vmatpush1.bf16.msra.mxu1 %v4663_v42  ;;  %v4741_v18 = vld [vmem:[#allocation9 + $0x128] ss:$16 sps:$4 sm:$0xff]   ;;  %v4746_v42 = vld [vmem:[#allocation9 + $0x104] ss:$16 sps:$4 sm:$0xff]  }
 0x77c   :  { %2250 = vmatprep.subr.bf16.mxu0 %v4668_v20  ;;  %2323 = vmatprep.subr.bf16.mxu1 %v4671_v43  ;;  %v4749_v20 = vld [vmem:[#allocation9 + $0x10c] ss:$16 sps:$4 sm:$0xff]   ;;  %v4744_v43 = vld [vmem:[#allocation9 + $0x100] ss:$16 sps:$4 sm:$0xff]  }
 0x77f   :  { %2251 = vmatpush1.bf16.msra.mxu0 %v4666_v5  ;;  %2324 = vmatpush1.bf16.msra.mxu1 %v4669_v19  ;;  %v4747_v5 = vld [vmem:[#allocation9 + $0x108] ss:$16 sps:$4 sm:$0xff]   ;;  %v6179_v19 = vld [vmem:[#allocation10 + $0xe4] ss:$16 sps:$4 sm:$0xff]  }
 0x780   :  { %2252 = vmatprep.subr.bf16.mxu0 %v4674_v21  ;;  %2325 = vmatprep.subr.bf16.mxu1 %v4677_v52  ;;  %v6181_v21 = vld [vmem:[#allocation10 + $0xec] ss:$16 sps:$4 sm:$0xff]  }
 0x783   :  { %2253 = vmatpush1.bf16.msra.mxu0 %v4672_v6  ;;  %2326 = vmatpush1.bf16.msra.mxu1 %v4675_v49  ;;  %v6989_v49 = vld [vmem:[#allocation33_spill] sm:$0xff] }
 0x784   :  { %2254 = vmatprep.subr.bf16.mxu0 %v4680_v63  ;;  %2327 = vmatprep.subr.bf16.mxu1 %v4683_v59 }
 0x787   :  { %2255 = vmatpush1.bf16.msra.mxu0 %v4678_v38  ;;  %2328 = vmatpush1.bf16.msra.mxu1 %v4681_v12 }
 0x788   :  { %2256 = vmatprep.subr.bf16.mxu0 %v4686_v1  ;;  %2329 = vmatprep.subr.bf16.mxu1 %v4689_v0 }
 0x78b   :  { %2257 = vmatpush1.bf16.msra.mxu0 %v4684_v50  ;;  %2330 = vmatpush1.bf16.msra.mxu1 %v4687_v22 }
 0x78c   :  { %2258 = vmatprep.subr.bf16.mxu0 %v4692_v27  ;;  %2331 = vmatprep.subr.bf16.mxu1 %v4695_v47 }
 0x78f   :  { %2259 = vmatpush1.bf16.msra.mxu0 %v4690_v62  ;;  %2332 = vmatpush1.bf16.msra.mxu1 %v4693_v3  ;;  %v6990_v62 = vld [vmem:[#allocation34_spill] sm:$0xff] }
 0x790   :  { %2260 = vmatprep.subr.bf16.mxu0 %v4698_v56  ;;  %2333 = vmatprep.subr.bf16.mxu1 %v4701_v60 }
 0x793   :  { %2261 = vmatpush1.bf16.msra.mxu0 %v4696_v8  ;;  %2334 = vmatpush1.bf16.msra.mxu1 %v4699_v9 }
 0x794   :  { %2262 = vmatprep.subr.bf16.mxu0 %v4704_v10  ;;  %2335 = vmatprep.subr.bf16.mxu1 %v4707_v58 }
 0x797   :  { %2263 = vmatpush2.bf16.msra.mxu0 %v4702_v48  ;;  %2336 = vmatpush2.bf16.msra.mxu1 %v4705_v51 }
 0x798   :  { %2264 = vmatprep.subr.bf16.mxu0 %v4710_v45  ;;  %2337 = vmatprep.subr.bf16.mxu1 %v4713_v15 }
 0x79b   :  { %2265 = vmatpush2.bf16.msra.mxu0 %v4708_v61  ;;  %2338 = vmatpush2.bf16.msra.mxu1 %v4711_v55 }
 0x79c   :  { %2266 = vmatprep.subr.bf16.mxu0 %v4716_v57  ;;  %2339 = vmatprep.subr.bf16.mxu1 %v4719_v25 }
 0x79f   :  { %2267 = vmatpush2.bf16.msra.mxu0 %v4714_v26  ;;  %2340 = vmatpush2.bf16.msra.mxu1 %v4717_v28  ;;  %v1830_v28 = vsel %vm1823_vm0, %v6175_v39, %v5773_v54 }
 0x7a0   :  { %2268 = vmatprep.subr.bf16.mxu0 %v4722_v30  ;;  %2341 = vmatprep.subr.bf16.mxu1 %v4725_v33 }
 0x7a3   :  { %2269 = vmatpush2.bf16.msra.mxu0 %v4720_v29  ;;  %2342 = vmatpush2.bf16.msra.mxu1 %v4723_v31 }
 0x7a4   :  { %2270 = vmatprep.subr.bf16.mxu0 %v4728_v34  ;;  %2343 = vmatprep.subr.bf16.mxu1 %v4731_v35 }
 0x7a7   :  { %2271 = vmatpush2.bf16.msra.mxu0 %v4726_v14  ;;  %2344 = vmatpush2.bf16.msra.mxu1 %v4729_v53  ;;  %v6202_v14 = vld [vmem:[#allocation10 + $0xe0] ss:$16 sps:$4 sm:$0xff]   ;;  %v6204_v53 = vld [vmem:[#allocation10 + $0xe8] ss:$16 sps:$4 sm:$0xff]  }
 0x7a8   :  { %2272 = vmatprep.subr.bf16.mxu0 %v4734_v24  ;;  %2345 = vmatprep.subr.bf16.mxu1 %v4737_v36  ;;  %v6206_v24 = vld [vmem:[#allocation10 + $0xc4] ss:$16 sps:$4 sm:$0xff]   ;;  %v6208_v36 = vld [vmem:[#allocation10 + $0xcc] ss:$16 sps:$4 sm:$0xff]  }
 0x7ab   :  { %2273 = vmatpush2.bf16.msra.mxu0 %v4732_v40  ;;  %2346 = vmatpush2.bf16.msra.mxu1 %v4735_v41  ;;  %v6222_v40 = vld [vmem:[#allocation10 + $0xac] ss:$16 sps:$4 sm:$0xff]   ;;  %v6228_v41 = vld [vmem:[#allocation10 + $0xa8] ss:$16 sps:$4 sm:$0xff]  }
 0x7ac   :  { %2274 = vmatprep.subr.bf16.mxu0 %v4740_v11  ;;  %2347 = vmatprep.subr.bf16.mxu1 %v4743_v13  ;;  %v6232_v11 = vld [vmem:[#allocation10 + $0x84] ss:$16 sps:$4 sm:$0xff]   ;;  %v6234_v13 = vld [vmem:[#allocation10 + $0x8c] ss:$16 sps:$4 sm:$0xff]  }
 0x7af   :  { %2275 = vmatpush2.bf16.msra.mxu0 %v4738_v16  ;;  %2348 = vmatpush2.bf16.msra.mxu1 %v4741_v18  ;;  %v6242_v16 = vld [vmem:[#allocation10 + $0x80] ss:$16 sps:$4 sm:$0xff]   ;;  %v6244_v18 = vld [vmem:[#allocation10 + $0x88] ss:$16 sps:$4 sm:$0xff]  }
 0x7b0   :  { %2276 = vmatprep.subr.bf16.mxu0 %v4746_v42  ;;  %2349 = vmatprep.subr.bf16.mxu1 %v4749_v20  ;;  %v6248_v42 = vld [vmem:[#allocation10 + $0x64] ss:$16 sps:$4 sm:$0xff]   ;;  %v6250_v20 = vld [vmem:[#allocation10 + $0x6c] ss:$16 sps:$4 sm:$0xff]  }
 0x7b3   :  { %2277 = vmatpush2.bf16.msra.mxu0 %v4744_v43  ;;  %2350 = vmatpush2.bf16.msra.mxu1 %v4747_v5  ;;  %v6260_v43 = vld [vmem:[#allocation10 + $0x44] ss:$16 sps:$4 sm:$0xff]   ;;  %v6262_v5 = vld [vmem:[#allocation10 + $0x4c] ss:$16 sps:$4 sm:$0xff]  }
 0x7b4   :  { %2620 = vmatprep.subr.bf16.mxu0 %v6179_v19  ;;  %2661 = vmatprep.subr.bf16.mxu1 %v6181_v21 }
 0x836   :  { %v1751_v52 = vpop.f32.mrf.mxu0  ;;  %v1792_v6 = vpop.f32.mrf.mxu1 }
 0x837   :  { %v1752_v63 = vadd.f32 %v1751_v52, %v6989_v49  ;;  %v1793_v3 = vadd.f32 %v1792_v6, %v6990_v62  ;;  %v6268_v52 = vld [vmem:[#allocation10 + $0x40] ss:$16 sps:$4 sm:$0xff]   ;;  %v6270_v6 = vld [vmem:[#allocation10 + $0x48] ss:$16 sps:$4 sm:$0xff]   ;;  %v6274_v49 = vld [vmem:[#allocation10 + $0x24] ss:$16 sps:$4 sm:$0xff]  }
 0x838   :  { %v1753_v59 = vpop.f32.mrf.mxu0  ;;  %v1794_v38 = vpop.f32.mrf.mxu1 }
 0x839   :  { %v4223_v12 = vmul.f32 -1.442695, %v1752_v63  ;;  %v1754_v1 = vadd.f32 %v1753_v59, %v5714_v46  ;;  %v4225_v56 = vmul.f32 -1.442695, %v1793_v3  ;;  %v1795_v60 = vadd.f32 %v1794_v38, %v5717_v44  ;;  %v6276_v63 = vld [vmem:[#allocation10 + $0x2c] ss:$16 sps:$4 sm:$0xff]  }
 0x83a   :  { %v1755_v0 = vpop.f32.mrf.mxu0  ;;  %v1796_v50 = vpop.f32.mrf.mxu1  ;;  %v6282_v59 = vld [vmem:[#allocation10 + $0x28] ss:$16 sps:$4 sm:$0xff]   ;;  %v6286_v38 = vld [vmem:[#allocation10 + $0x4] ss:$16 sps:$4 sm:$0xff]  }
 0x83b   :  { %4934 = vpow2.f32 %v4223_v12  ;;  %v4224_v22 = vmul.f32 -1.442695, %v1754_v1  ;;  %v6288_v12 = vld [vmem:[#allocation10 + $0xc] ss:$16 sps:$4 sm:$0xff]   ;;  %v6296_v1 = vld [vmem:[#allocation10] ss:$16 sps:$4 sm:$0xff]  }
 0x83c   :  { %v1756_v27 = vpop.f32.mrf.mxu0  ;;  %v1797_v47 = vpop.f32.mrf.mxu1  ;;  %v6298_v0 = vld [vmem:[#allocation10 + $0x8] ss:$16 sps:$4 sm:$0xff]   ;;  %v1904_v50 = vld [vmem:[%s6930_s6] sm:$0xf] }
 0x83d   :  { %4936 = vpow2.f32 %v4224_v22  ;;  %v6991_v3 = vld [vmem:[#allocation15_spill] sm:$0xff] }
 0x83e   :  { %4938 = vpow2.f32 %v4225_v56  ;;  %v6992_v56 = vsub.s32 0, %v6991_v3 }
 0x83f   :  { %4940 = vtanh.f32 %v1795_v60 }
 0x840   :  { %v1909_v60 = vrot.slane %v1904_v50, %v6992_v56 }
 0x848   :  { %v4935_v8 = vpop.eup %4934 }
 0x849   :  { %v1808_v9 = vadd.f32 1.0, %v4935_v8  ;;  %v6993_v8 = vsub.s32 2, %v6991_v3 }
 0x84a   :  { %v4937_v10 = vpop.eup %4936 }
 0x84b   :  { %4942 = vrcp.f32 %v1808_v9  ;;  %v1809_v58 = vadd.f32 1.0, %v4937_v10  ;;  %v4939_v46 = vpop.eup %4938  ;;  %v6357_v9 = vrot.slane %v1904_v50, %v6993_v8 }
 0x84c   :  { %v4941_v48 = vpop.eup %4940  ;;  %v1810_v61 = vadd.f32 1.0, %v4939_v46  ;;  %v6994_v46 = vsub.s32 1, %v6991_v3 }
 0x84d   :  { %4944 = vrcp.f32 %v1809_v58 }
 0x84e   :  { %4946 = vrcp.f32 %v1810_v61 }
 0x858   :  { %v4943_v51 = vpop.eup %4942 }
 0x859   :  { %v1819_v45 = vmul.f32 %v4943_v51, %v4941_v48  ;;  %v1913_v48 = vrot.slane %v1904_v50, %v6994_v46  ;;  %v6995_v51 = vsub.s32 3, %v6991_v3 }
 0x85a   :  { %v4945_v15 = vpop.eup %4944 }
 0x85b   :  { %v1818_v55 = vmul.f32 %v4945_v15, %v6172_v17  ;;  %v4947_v44 = vpop.eup %4946  ;;  %v1825_v17 = vsel %vm1823_vm0, %v5773_v54, %v6175_v39  ;;  %v6216_v54 = vld [vmem:[#allocation10 + $0xc8] ss:$16 sps:$4 sm:$0xff]   ;;  %v6220_v39 = vld [vmem:[#allocation10 + $0xa4] ss:$16 sps:$4 sm:$0xff]  }
 0x85d   :  { %v1820_v57 = vadd.f32 %v1819_v45, %v1818_v55  ;;  %v6363_v45 = vrot.slane %v1904_v50, %v6995_v51 }
 0x85f   :  { %4948 = vtanh.f32 %v1820_v57 }
 0x86c   :  { %v4949_v25 = vpop.eup %4948 }
 0x86d   :  { %v1822_v26 = vmul.f32 %v4949_v25, %v4947_v44 }
 0x86f   :  { %v1831_v29 = vsel %vm1823_vm0, %v1822_v26, %v5727_v2  ;;  %v1824_v30 = vsel %vm1823_vm0, %v5727_v2, %v1822_v26  ;;  %v6214_v2 = vld [vmem:[#allocation10 + $0xc0] ss:$16 sps:$4 sm:$0xff]  }
 0x870   :  { %v1833_v31 = vpack.c.bf16 %v1830_v28, %v1831_v29  ;;  %v1832_v33 = vpack.c.bf16 %v1825_v17, %v1824_v30  ;;  %v1839_v34 = vpack.c.bf16 %v1824_v30, %v1825_v17  ;;  %v6200_v35 = vpack.c.bf16 %v1831_v29, %v1830_v28 }
 0x872   :  { %2278 = vmatprep.mubr.bf16.mxu0 %v1833_v31  ;;  %2351 = vmatprep.mubr.bf16.mxu1 %v1833_v31 }
 0x873   :  { %2279 = vmatmul.mubr.bf16.vlgmr.msra.gmra.mxu0 %v1832_v33  ;;  %2352 = vmatmul.mubr.bf16.vlgmr.msra.gmra.mxu1 %v1832_v33 }
 0x874   :  { %2288 = vmatprep.mubr.bf16.mxu0 %v6127_v32  ;;  %2361 = vmatprep.mubr.bf16.mxu1 %v6127_v32  ;;  %v6226_v32 = vld [vmem:[#allocation10 + $0xa0] ss:$16 sps:$4 sm:$0xff]  }
 0x875   :  { %2621 = vmatpush1.bf16.msra.mxu0 %v6202_v14  ;;  %2662 = vmatpush1.bf16.msra.mxu1 %v6204_v53 }
 0x876   :  { %2622 = vmatprep.subr.bf16.mxu0 %v6206_v24  ;;  %2663 = vmatprep.subr.bf16.mxu1 %v6208_v36 }
 0x879   :  { %2623 = vmatpush1.bf16.msra.mxu0 %v6214_v2  ;;  %2664 = vmatpush1.bf16.msra.mxu1 %v6216_v54 }
 0x87a   :  { %2624 = vmatprep.subr.bf16.mxu0 %v6220_v39  ;;  %2665 = vmatprep.subr.bf16.mxu1 %v6222_v40 }
 0x87b   :  { %2289 = vmatmul.mubr.bf16.gmra.mxu0 %v6129_v37  ;;  %2362 = vmatmul.mubr.bf16.gmra.mxu1 %v6129_v37  ;;  %v6254_v37 = vld [vmem:[#allocation10 + $0x60] ss:$16 sps:$4 sm:$0xff]  }
 0x87c   :  { %2298 = vmatprep.mubr.bf16.mxu0 %v6131_v23  ;;  %2371 = vmatprep.mubr.bf16.mxu1 %v6131_v23  ;;  %v6256_v23 = vld [vmem:[#allocation10 + $0x68] ss:$16 sps:$4 sm:$0xff]  }
 0x87d   :  { %2625 = vmatpush1.bf16.msra.mxu0 %v6226_v32  ;;  %2666 = vmatpush1.bf16.msra.mxu1 %v6228_v41 }
 0x87e   :  { %2626 = vmatprep.subr.bf16.mxu0 %v6232_v11  ;;  %2667 = vmatprep.subr.bf16.mxu1 %v6234_v13 }
 0x881   :  { %2627 = vmatpush1.bf16.msra.mxu0 %v6242_v16  ;;  %2668 = vmatpush1.bf16.msra.mxu1 %v6244_v18 }
 0x882   :  { %2628 = vmatprep.subr.bf16.mxu0 %v6248_v42  ;;  %2669 = vmatprep.subr.bf16.mxu1 %v6250_v20 }
 0x883   :  { %2299 = vmatmul.mubr.bf16.gmra.mxu0 %v6133_v4  ;;  %2372 = vmatmul.mubr.bf16.gmra.mxu1 %v6133_v4  ;;  %v6280_v4 = vld [vmem:[#allocation10 + $0x20] ss:$16 sps:$4 sm:$0xff]  }
 0x884   :  { %2308 = vmatprep.mubr.bf16.mxu0 %v1839_v34  ;;  %2381 = vmatprep.mubr.bf16.mxu1 %v1839_v34 }
 0x885   :  { %2629 = vmatpush1.bf16.msra.mxu0 %v6254_v37  ;;  %2670 = vmatpush1.bf16.msra.mxu1 %v6256_v23 }
 0x886   :  { %2630 = vmatprep.subr.bf16.mxu0 %v6260_v43  ;;  %2671 = vmatprep.subr.bf16.mxu1 %v6262_v5 }
 0x889   :  { %2631 = vmatpush1.bf16.msra.mxu0 %v6268_v52  ;;  %2672 = vmatpush1.bf16.msra.mxu1 %v6270_v6 }
 0x88a   :  { %2632 = vmatprep.subr.bf16.mxu0 %v6274_v49  ;;  %2673 = vmatprep.subr.bf16.mxu1 %v6276_v63 }
 0x88b   :  { %2309 = vmatmul.mubr.bf16.gmra.mxu0 %v6200_v35  ;;  %2382 = vmatmul.mubr.bf16.gmra.mxu1 %v6200_v35 }
 0x88c   :  { %2652 = vmatprep.mubr.bf16.mxu0 %v6971_v7  ;;  %2693 = vmatprep.mubr.bf16.mxu1 %v6971_v7 }
 0x88d   :  { %2633 = vmatpush1.bf16.msra.mxu0 %v6280_v4  ;;  %2674 = vmatpush1.bf16.msra.mxu1 %v6282_v59 }
 0x88e   :  { %2634 = vmatprep.subr.bf16.mxu0 %v6286_v38  ;;  %2675 = vmatprep.subr.bf16.mxu1 %v6288_v12 }
 0x891   :  { %2635 = vmatpush1.bf16.msra.mxu0 %v6296_v1  ;;  %2676 = vmatpush1.bf16.msra.mxu1 %v6298_v0 }
 0x892   :  { %2731 = vmatprep.subr.bf16.mxu0 %v6179_v19  ;;  %2772 = vmatprep.subr.bf16.mxu1 %v6181_v21 }
 0x894   :  { %2653 = vmatmul.mubr.bf16.vlgmr.msra.gmra.mxu0 %v6971_v7  ;;  %2694 = vmatmul.mubr.bf16.vlgmr.msra.gmra.mxu1 %v6971_v7 }
 0x895   :  { %2732 = vmatpush1.bf16.msra.mxu0 %v6202_v14  ;;  %2773 = vmatpush1.bf16.msra.mxu1 %v6204_v53 }
 0x896   :  { %2733 = vmatprep.subr.bf16.mxu0 %v6206_v24  ;;  %2774 = vmatprep.subr.bf16.mxu1 %v6208_v36 }
 0x897   :  { %2763 = vmatprep.mubr.bf16.mxu0 %v6971_v7  ;;  %2804 = vmatprep.mubr.bf16.mxu1 %v6971_v7 }
 0x899   :  { %2734 = vmatpush1.bf16.msra.mxu0 %v6214_v2  ;;  %2775 = vmatpush1.bf16.msra.mxu1 %v6216_v54 }
 0x89a   :  { %2735 = vmatprep.subr.bf16.mxu0 %v6220_v39  ;;  %2776 = vmatprep.subr.bf16.mxu1 %v6222_v40 }
 0x89d   :  { %2736 = vmatpush1.bf16.msra.mxu0 %v6226_v32  ;;  %2777 = vmatpush1.bf16.msra.mxu1 %v6228_v41 }
 0x89e   :  { %2737 = vmatprep.subr.bf16.mxu0 %v6232_v11  ;;  %2778 = vmatprep.subr.bf16.mxu1 %v6234_v13 }
 0x8a1   :  { %2738 = vmatpush1.bf16.msra.mxu0 %v6242_v16  ;;  %2779 = vmatpush1.bf16.msra.mxu1 %v6244_v18 }
 0x8a2   :  { %2739 = vmatprep.subr.bf16.mxu0 %v6248_v42  ;;  %2780 = vmatprep.subr.bf16.mxu1 %v6250_v20 }
 0x8a5   :  { %2740 = vmatpush1.bf16.msra.mxu0 %v6254_v37  ;;  %2781 = vmatpush1.bf16.msra.mxu1 %v6256_v23 }
 0x8a6   :  { %2741 = vmatprep.subr.bf16.mxu0 %v6260_v43  ;;  %2782 = vmatprep.subr.bf16.mxu1 %v6262_v5 }
 0x8a9   :  { %2742 = vmatpush1.bf16.msra.mxu0 %v6268_v52  ;;  %2783 = vmatpush1.bf16.msra.mxu1 %v6270_v6 }
 0x8aa   :  { %2743 = vmatprep.subr.bf16.mxu0 %v6274_v49  ;;  %2784 = vmatprep.subr.bf16.mxu1 %v6276_v63 }
 0x8ad   :  { %2744 = vmatpush1.bf16.msra.mxu0 %v6280_v4  ;;  %2785 = vmatpush1.bf16.msra.mxu1 %v6282_v59 }
 0x8ae   :  { %2745 = vmatprep.subr.bf16.mxu0 %v6286_v38  ;;  %2786 = vmatprep.subr.bf16.mxu1 %v6288_v12 }
 0x8b1   :  { %2746 = vmatpush1.bf16.msra.mxu0 %v6296_v1  ;;  %2787 = vmatpush1.bf16.msra.mxu1 %v6298_v0 }
 0x8b2   :  { %2842 = vmatprep.subr.bf16.mxu0 %v6179_v19  ;;  %2883 = vmatprep.subr.bf16.mxu1 %v6181_v21 }
 0x933   :  { %v6345_v22 = vpop.f32.mrf.mxu0  ;;  %v6347_v27 = vpop.f32.mrf.mxu1 }
 0x935   :  { %v6349_v47 = vpop.f32.mrf.mxu0  ;;  %v6351_v62 = vpop.f32.mrf.mxu1 }
 0x937   :  { %v2284_v10 = vpop.f32.mrf.mxu0  ;;  %v2357_v58 = vpop.f32.mrf.mxu1 }
 0x938   :  { %v6365_v15 = vadd.f32 %v2284_v10, %v1909_v60  ;;  %v6368_v61 = vadd.f32 %v2357_v58, %v6357_v9 }
 0x939   :  { %v2286_v55 = vpop.f32.mrf.mxu0  ;;  %v2359_v57 = vpop.f32.mrf.mxu1 }
 0x93a   :  { %v6370_v44 = vadd.f32 %v2286_v55, %v1913_v48  ;;  %v6373_v25 = vadd.f32 %v2359_v57, %v6363_v45 }
 0x93b   :  { %v2290_v26 = vpop.f32.mrf.mxu0  ;;  %v2363_v28 = vpop.f32.mrf.mxu1 }
 0x93c   :  { %v6375_v29 = vadd.f32 %v2290_v26, %v1909_v60  ;;  %v6378_v30 = vadd.f32 %v2363_v28, %v6357_v9 }
 0x93d   :  { %v2292_v17 = vpop.f32.mrf.mxu0  ;;  %v2365_v31 = vpop.f32.mrf.mxu1 }
 0x93e   :  { %v6380_v33 = vadd.f32 %v2292_v17, %v1913_v48  ;;  %v6383_v34 = vadd.f32 %v2365_v31, %v6363_v45 }
 0x93f   :  { %v2294_v35 = vpop.f32.mrf.mxu0  ;;  %v2367_v50 = vpop.f32.mrf.mxu1 }
 0x940   :  { %6996 = vst [vmem:[#allocation16_spill] sm:$0xff] %v6383_v34  ;;  %v6385_v3 = vadd.f32 %v2294_v35, %v1909_v60  ;;  %v6388_v56 = vadd.f32 %v2367_v50, %v6357_v9 }
 0x941   :  { %v2296_v8 = vpop.f32.mrf.mxu0  ;;  %v2369_v10 = vpop.f32.mrf.mxu1 }
 0x942   :  { %6997 = vst [vmem:[#allocation17_spill] sm:$0xff] %v6385_v3  ;;  %6998 = vst [vmem:[#allocation19_spill] sm:$0xff] %v6388_v56  ;;  %v6390_v58 = vadd.f32 %v2296_v8, %v1913_v48  ;;  %v6393_v46 = vadd.f32 %v2369_v10, %v6363_v45 }
 0x943   :  { %v2300_v51 = vpop.f32.mrf.mxu0  ;;  %v2373_v55 = vpop.f32.mrf.mxu1 }
 0x944   :  { %6999 = vst [vmem:[#allocation18_spill] sm:$0xff] %v6390_v58  ;;  %7000 = vst [vmem:[#allocation20_spill] sm:$0xff] %v6393_v46  ;;  %v6395_v57 = vadd.f32 %v2300_v51, %v1909_v60  ;;  %v6398_v26 = vadd.f32 %v2373_v55, %v6357_v9 }
 0x945   :  { %v2302_v28 = vpop.f32.mrf.mxu0  ;;  %v2375_v17 = vpop.f32.mrf.mxu1 }
 0x946   :  { %7001 = vst [vmem:[#allocation21_spill] sm:$0xff] %v6395_v57  ;;  %7002 = vst [vmem:[#allocation23_spill] sm:$0xff] %v6398_v26  ;;  %v6400_v31 = vadd.f32 %v2302_v28, %v1913_v48  ;;  %v6403_v35 = vadd.f32 %v2375_v17, %v6363_v45 }
 0x947   :  { %v2304_v50 = vpop.f32.mrf.mxu0  ;;  %v2377_v8 = vpop.f32.mrf.mxu1 }
 0x948   :  { %7003 = vst [vmem:[#allocation22_spill] sm:$0xff] %v6400_v31  ;;  %7004 = vst [vmem:[#allocation24_spill] sm:$0xff] %v6403_v35  ;;  %v6405_v56 = vadd.f32 %v2304_v50, %v1909_v60  ;;  %v6408_v10 = vadd.f32 %v2377_v8, %v6357_v9 }
 0x949   :  { %v2306_v46 = vpop.f32.mrf.mxu0  ;;  %v2379_v51 = vpop.f32.mrf.mxu1 }
 0x94a   :  { %7005 = vst [vmem:[#allocation25_spill] sm:$0xff] %v6405_v56  ;;  %7006 = vst [vmem:[#allocation27_spill] sm:$0xff] %v6408_v10  ;;  %v6410_v57 = vadd.f32 %v2306_v46, %v1913_v48  ;;  %v6413_v55 = vadd.f32 %v2379_v51, %v6363_v45 }
 0x94b   :  { %v2310_v26 = vpop.f32.mrf.mxu0  ;;  %v2383_v28 = vpop.f32.mrf.mxu1 }
 0x94c   :  { %7007 = vst [vmem:[#allocation26_spill] sm:$0xff] %v6410_v57  ;;  %7008 = vst [vmem:[#allocation28_spill] sm:$0xff] %v6413_v55  ;;  %v6415_v31 = vadd.f32 %v2310_v26, %v1909_v60  ;;  %v6418_v17 = vadd.f32 %v2383_v28, %v6357_v9 }
 0x94d   :  { %v2312_v35 = vpop.f32.mrf.mxu0  ;;  %v2385_v50 = vpop.f32.mrf.mxu1 }
 0x94e   :  { %7009 = vst [vmem:[#allocation29_spill] sm:$0xff] %v6415_v31  ;;  %7010 = vst [vmem:[#allocation31_spill] sm:$0xff] %v6418_v17  ;;  %v6420_v56 = vadd.f32 %v2312_v35, %v1913_v48  ;;  %v6423_v8 = vadd.f32 %v2385_v50, %v6363_v45  ;;  %v2281_v35 = vadd.f32 %v6345_v22, %v1909_v60 }
 0x94f   :  { %v2314_v10 = vpop.f32.mrf.mxu0  ;;  %v2387_v46 = vpop.f32.mrf.mxu1  ;;  %v2283_v50 = vadd.f32 %v6349_v47, %v1913_v48 }
 0x950   :  { %7011 = vst [vmem:[#allocation30_spill] sm:$0xff] %v6420_v56  ;;  %7012 = vst [vmem:[#allocation32_spill] sm:$0xff] %v6423_v8  ;;  %v6425_v57 = vadd.f32 %v2314_v10, %v1909_v60  ;;  %v6428_v51 = vadd.f32 %v2387_v46, %v6357_v9  ;;  %v2356_v60 = vadd.f32 %v6351_v62, %v6363_v45 }
 0x951   :  { %v2316_v55 = vpop.f32.mrf.mxu0  ;;  %v2389_v26 = vpop.f32.mrf.mxu1 }
 0x952   :  { %7013 = vst [vmem:[#allocation33_spill] sm:$0xff] %v6425_v57  ;;  %7014 = vst [vmem:[#allocation34_spill] sm:$0xff] %v6428_v51  ;;  %v6430_v31 = vadd.f32 %v2316_v55, %v1913_v48  ;;  %v6433_v28 = vadd.f32 %v2389_v26, %v6363_v45  ;;  %v2354_v26 = vadd.f32 %v6347_v27, %v6357_v9 }
 0x954   :  { %7015 = vst [vmem:[#allocation15_spill] sm:$0xff] %v6430_v31  ;;  %v2654_v17 = vpop.f32.mrf.mxu0  ;;  %v2695_v56 = vpop.f32.mrf.mxu1 }
 0x955   :  { %v2655_v8 = vadd.f32 %v2654_v17, %v2281_v35  ;;  %v2696_v22 = vadd.f32 %v2695_v56, %v2354_v26 }
 0x956   :  { %v2656_v58 = vpop.f32.mrf.mxu0  ;;  %v2697_v10 = vpop.f32.mrf.mxu1 }
 0x957   :  { %v4322_v57 = vmul.f32 -1.442695, %v2655_v8  ;;  %v2657_v3 = vadd.f32 %v2656_v58, %v2283_v50  ;;  %v4324_v47 = vmul.f32 -1.442695, %v2696_v22  ;;  %v2698_v17 = vadd.f32 %v2697_v10, %v2356_v60 }
 0x958   :  { %v2658_v46 = vpop.f32.mrf.mxu0  ;;  %v2699_v51 = vpop.f32.mrf.mxu1 }
 0x959   :  { %4950 = vpow2.f32 %v4322_v57  ;;  %v4323_v34 = vmul.f32 -1.442695, %v2657_v3 }
 0x95a   :  { %v2659_v55 = vpop.f32.mrf.mxu0  ;;  %v2700_v31 = vpop.f32.mrf.mxu1 }
 0x95b   :  { %4952 = vpow2.f32 %v4323_v34 }
 0x95c   :  { %4954 = vpow2.f32 %v4324_v47 }
 0x966   :  { %v4951_v48 = vpop.eup %4950 }
 0x967   :  { %v2711_v35 = vadd.f32 1.0, %v4951_v48 }
 0x968   :  { %v4953_v8 = vpop.eup %4952 }
 0x969   :  { %4956 = vrcp.f32 %v2711_v35  ;;  %v2712_v58 = vadd.f32 1.0, %v4953_v8  ;;  %v4955_v3 = vpop.eup %4954 }
 0x96a   :  { %4958 = vtanh.f32 %v2698_v17  ;;  %v2713_v51 = vadd.f32 1.0, %v4955_v3 }
 0x96b   :  { %4960 = vrcp.f32 %v2712_v58 }
 0x96c   :  { %4962 = vrcp.f32 %v2713_v51 }
 0x976   :  { %v4957_v57 = vpop.eup %4956 }
 0x977   :  { %v4959_v34 = vpop.eup %4958 }
 0x978   :  { %v4961_v31 = vpop.eup %4960  ;;  %v2722_v9 = vmul.f32 %v4959_v34, %v4957_v57 }
 0x979   :  { %v2721_v27 = vmul.f32 0.0, %v4961_v31  ;;  %v4963_v62 = vpop.eup %4962 }
 0x97b   :  { %v6441_v56 = vadd.f32 %v2722_v9, %v2721_v27 }
 0x97d   :  { %4964 = vtanh.f32 %v6441_v56 }
 0x98a   :  { %v4965_v45 = vpop.eup %4964 }
 0x98b   :  { %v6444_v50 = vmul.f32 %v4965_v45, %v4963_v62 }
 0x98d   :  { %v2726_v10 = vpack.c.bf16 %v6444_v50, %v6444_v50 }
 0x98f   :  { %2764 = vmatmul.mubr.bf16.vlgmr.msra.gmra.mxu0 %v2726_v10  ;;  %2805 = vmatmul.mubr.bf16.vlgmr.msra.gmra.mxu1 %v2726_v10 }
 0x990   :  { %2843 = vmatpush1.bf16.msra.mxu0 %v6202_v14  ;;  %2884 = vmatpush1.bf16.msra.mxu1 %v6204_v53 }
 0x991   :  { %2844 = vmatprep.subr.bf16.mxu0 %v6206_v24  ;;  %2885 = vmatprep.subr.bf16.mxu1 %v6208_v36 }
 0x992   :  { %2874 = vmatprep.mubr.bf16.mxu0 %v6971_v7  ;;  %2915 = vmatprep.mubr.bf16.mxu1 %v6971_v7 }
 0x994   :  { %2845 = vmatpush1.bf16.msra.mxu0 %v6214_v2  ;;  %2886 = vmatpush1.bf16.msra.mxu1 %v6216_v54 }
 0x995   :  { %2846 = vmatprep.subr.bf16.mxu0 %v6220_v39  ;;  %2887 = vmatprep.subr.bf16.mxu1 %v6222_v40 }
 0x998   :  { %2847 = vmatpush1.bf16.msra.mxu0 %v6226_v32  ;;  %2888 = vmatpush1.bf16.msra.mxu1 %v6228_v41 }
 0x999   :  { %2848 = vmatprep.subr.bf16.mxu0 %v6232_v11  ;;  %2889 = vmatprep.subr.bf16.mxu1 %v6234_v13 }
 0x99c   :  { %2849 = vmatpush1.bf16.msra.mxu0 %v6242_v16  ;;  %2890 = vmatpush1.bf16.msra.mxu1 %v6244_v18 }
 0x99d   :  { %2850 = vmatprep.subr.bf16.mxu0 %v6248_v42  ;;  %2891 = vmatprep.subr.bf16.mxu1 %v6250_v20 }
 0x9a0   :  { %2851 = vmatpush1.bf16.msra.mxu0 %v6254_v37  ;;  %2892 = vmatpush1.bf16.msra.mxu1 %v6256_v23 }
 0x9a1   :  { %2852 = vmatprep.subr.bf16.mxu0 %v6260_v43  ;;  %2893 = vmatprep.subr.bf16.mxu1 %v6262_v5 }
 0x9a4   :  { %2853 = vmatpush1.bf16.msra.mxu0 %v6268_v52  ;;  %2894 = vmatpush1.bf16.msra.mxu1 %v6270_v6 }
 0x9a5   :  { %2854 = vmatprep.subr.bf16.mxu0 %v6274_v49  ;;  %2895 = vmatprep.subr.bf16.mxu1 %v6276_v63 }
 0x9a8   :  { %2855 = vmatpush1.bf16.msra.mxu0 %v6280_v4  ;;  %2896 = vmatpush1.bf16.msra.mxu1 %v6282_v59 }
 0x9a9   :  { %2856 = vmatprep.subr.bf16.mxu0 %v6286_v38  ;;  %2897 = vmatprep.subr.bf16.mxu1 %v6288_v12 }
 0x9ac   :  { %2857 = vmatpush1.bf16.msra.mxu0 %v6296_v1  ;;  %2898 = vmatpush1.bf16.msra.mxu1 %v6298_v0 }
 0x9ad   :  { %2953 = vmatprep.subr.bf16.mxu0 %v6179_v19  ;;  %2994 = vmatprep.subr.bf16.mxu1 %v6181_v21 }
 0xa4f   :  { %v2765_v46 = vpop.f32.mrf.mxu0  ;;  %v2806_v55 = vpop.f32.mrf.mxu1 }
 0xa50   :  { %v2766_v26 = vadd.f32 %v2765_v46, %v6365_v15  ;;  %v2807_v57 = vadd.f32 %v2806_v55, %v6368_v61 }
 0xa51   :  { %v2767_v22 = vpop.f32.mrf.mxu0  ;;  %v2808_v60 = vpop.f32.mrf.mxu1 }
 0xa52   :  { %v4325_v47 = vmul.f32 -1.442695, %v2766_v26  ;;  %v2768_v48 = vadd.f32 %v2767_v22, %v6370_v44  ;;  %v4327_v34 = vmul.f32 -1.442695, %v2807_v57  ;;  %v2809_v31 = vadd.f32 %v2808_v60, %v6373_v25 }
 0xa53   :  { %v2769_v17 = vpop.f32.mrf.mxu0  ;;  %v2810_v35 = vpop.f32.mrf.mxu1 }
 0xa54   :  { %4966 = vpow2.f32 %v4325_v47  ;;  %v4326_v8 = vmul.f32 -1.442695, %v2768_v48 }
 0xa55   :  { %v2770_v58 = vpop.f32.mrf.mxu0  ;;  %v2811_v3 = vpop.f32.mrf.mxu1 }
 0xa56   :  { %4968 = vpow2.f32 %v4326_v8 }
 0xa57   :  { %4970 = vpow2.f32 %v4327_v34 }
 0xa58   :  { %4972 = vtanh.f32 %v2809_v31 }
 0xa61   :  { %v4967_v51 = vpop.eup %4966 }
 0xa62   :  { %v2822_v27 = vadd.f32 1.0, %v4967_v51 }
 0xa63   :  { %v4969_v15 = vpop.eup %4968 }
 0xa64   :  { %4974 = vrcp.f32 %v2822_v27  ;;  %v2823_v9 = vadd.f32 1.0, %v4969_v15  ;;  %v4971_v44 = vpop.eup %4970 }
 0xa65   :  { %v4973_v62 = vpop.eup %4972  ;;  %v2824_v26 = vadd.f32 1.0, %v4971_v44  ;;  %v7016_v44 = vld [vmem:[#allocation16_spill] sm:$0xff] }
 0xa66   :  { %4976 = vrcp.f32 %v2823_v9 }
 0xa67   :  { %4978 = vrcp.f32 %v2824_v26 }
 0xa71   :  { %v4975_v45 = vpop.eup %4974 }
 0xa72   :  { %v2833_v10 = vmul.f32 %v4975_v45, %v4973_v62 }
 0xa73   :  { %v4977_v46 = vpop.eup %4976 }
 0xa74   :  { %v2832_v22 = vmul.f32 %v4977_v46, %v6441_v56  ;;  %v4979_v25 = vpop.eup %4978 }
 0xa76   :  { %v6487_v61 = vadd.f32 %v2833_v10, %v2832_v22 }
 0xa78   :  { %4980 = vtanh.f32 %v6487_v61 }
 0xa85   :  { %v4981_v55 = vpop.eup %4980 }
 0xa86   :  { %v6490_v60 = vmul.f32 %v4981_v55, %v4979_v25 }
 0xa88   :  { %v2837_v47 = vpack.c.bf16 %v6490_v60, %v6490_v60 }
 0xa8a   :  { %2875 = vmatmul.mubr.bf16.vlgmr.msra.gmra.mxu0 %v2837_v47  ;;  %2916 = vmatmul.mubr.bf16.vlgmr.msra.gmra.mxu1 %v2837_v47 }
 0xa8b   :  { %2954 = vmatpush1.bf16.msra.mxu0 %v6202_v14  ;;  %2995 = vmatpush1.bf16.msra.mxu1 %v6204_v53 }
 0xa8c   :  { %2955 = vmatprep.subr.bf16.mxu0 %v6206_v24  ;;  %2996 = vmatprep.subr.bf16.mxu1 %v6208_v36 }
 0xa8d   :  { %2985 = vmatprep.mubr.bf16.mxu0 %v6971_v7  ;;  %3026 = vmatprep.mubr.bf16.mxu1 %v6971_v7 }
 0xa8f   :  { %2956 = vmatpush1.bf16.msra.mxu0 %v6214_v2  ;;  %2997 = vmatpush1.bf16.msra.mxu1 %v6216_v54 }
 0xa90   :  { %2957 = vmatprep.subr.bf16.mxu0 %v6220_v39  ;;  %2998 = vmatprep.subr.bf16.mxu1 %v6222_v40 }
 0xa93   :  { %2958 = vmatpush1.bf16.msra.mxu0 %v6226_v32  ;;  %2999 = vmatpush1.bf16.msra.mxu1 %v6228_v41 }
 0xa94   :  { %2959 = vmatprep.subr.bf16.mxu0 %v6232_v11  ;;  %3000 = vmatprep.subr.bf16.mxu1 %v6234_v13 }
 0xa97   :  { %2960 = vmatpush1.bf16.msra.mxu0 %v6242_v16  ;;  %3001 = vmatpush1.bf16.msra.mxu1 %v6244_v18 }
 0xa98   :  { %2961 = vmatprep.subr.bf16.mxu0 %v6248_v42  ;;  %3002 = vmatprep.subr.bf16.mxu1 %v6250_v20 }
 0xa9b   :  { %2962 = vmatpush1.bf16.msra.mxu0 %v6254_v37  ;;  %3003 = vmatpush1.bf16.msra.mxu1 %v6256_v23 }
 0xa9c   :  { %2963 = vmatprep.subr.bf16.mxu0 %v6260_v43  ;;  %3004 = vmatprep.subr.bf16.mxu1 %v6262_v5 }
 0xa9f   :  { %2964 = vmatpush1.bf16.msra.mxu0 %v6268_v52  ;;  %3005 = vmatpush1.bf16.msra.mxu1 %v6270_v6 }
 0xaa0   :  { %2965 = vmatprep.subr.bf16.mxu0 %v6274_v49  ;;  %3006 = vmatprep.subr.bf16.mxu1 %v6276_v63 }
 0xaa3   :  { %2966 = vmatpush1.bf16.msra.mxu0 %v6280_v4  ;;  %3007 = vmatpush1.bf16.msra.mxu1 %v6282_v59 }
 0xaa4   :  { %2967 = vmatprep.subr.bf16.mxu0 %v6286_v38  ;;  %3008 = vmatprep.subr.bf16.mxu1 %v6288_v12 }
 0xaa7   :  { %2968 = vmatpush1.bf16.msra.mxu0 %v6296_v1  ;;  %3009 = vmatpush1.bf16.msra.mxu1 %v6298_v0 }
 0xaa8   :  { %3064 = vmatprep.subr.bf16.mxu0 %v6179_v19  ;;  %3105 = vmatprep.subr.bf16.mxu1 %v6181_v21 }
 0xb4a   :  { %v2876_v56 = vpop.f32.mrf.mxu0  ;;  %v2917_v48 = vpop.f32.mrf.mxu1 }
 0xb4b   :  { %v2877_v17 = vadd.f32 %v2876_v56, %v6375_v29  ;;  %v2918_v15 = vadd.f32 %v2917_v48, %v6378_v30 }
 0xb4c   :  { %v2878_v35 = vpop.f32.mrf.mxu0  ;;  %v2919_v8 = vpop.f32.mrf.mxu1 }
 0xb4d   :  { %v4328_v58 = vmul.f32 -1.442695, %v2877_v17  ;;  %v2879_v3 = vadd.f32 %v2878_v35, %v6380_v33  ;;  %v4330_v9 = vmul.f32 -1.442695, %v2918_v15  ;;  %v2920_v62 = vadd.f32 %v2919_v8, %v7016_v44 }
 0xb4e   :  { %v2880_v57 = vpop.f32.mrf.mxu0  ;;  %v2921_v34 = vpop.f32.mrf.mxu1 }
 0xb4f   :  { %4982 = vpow2.f32 %v4328_v58  ;;  %v4329_v31 = vmul.f32 -1.442695, %v2879_v3  ;;  %v7017_v3 = vld [vmem:[#allocation17_spill] sm:$0xff] }
 0xb50   :  { %v2881_v51 = vpop.f32.mrf.mxu0  ;;  %v2922_v27 = vpop.f32.mrf.mxu1 }
 0xb51   :  { %4984 = vpow2.f32 %v4329_v31  ;;  %v7018_v27 = vld [vmem:[#allocation18_spill] sm:$0xff] }
 0xb52   :  { %4986 = vpow2.f32 %v4330_v9 }
 0xb53   :  { %4988 = vtanh.f32 %v2920_v62 }
 0xb5c   :  { %v4983_v45 = vpop.eup %4982 }
 0xb5d   :  { %v2933_v10 = vadd.f32 1.0, %v4983_v45 }
 0xb5e   :  { %v4985_v29 = vpop.eup %4984 }
 0xb5f   :  { %4990 = vrcp.f32 %v2933_v10  ;;  %v2934_v46 = vadd.f32 1.0, %v4985_v29  ;;  %v4987_v33 = vpop.eup %4986  ;;  %v7019_v29 = vld [vmem:[#allocation19_spill] sm:$0xff] }
 0xb60   :  { %v4989_v26 = vpop.eup %4988  ;;  %v2935_v47 = vadd.f32 1.0, %v4987_v33 }
 0xb61   :  { %4992 = vrcp.f32 %v2934_v46 }
 0xb62   :  { %4994 = vrcp.f32 %v2935_v47 }
 0xb6c   :  { %v4991_v22 = vpop.eup %4990 }
 0xb6d   :  { %v2944_v25 = vmul.f32 %v4991_v22, %v4989_v26 }
 0xb6e   :  { %v4993_v55 = vpop.eup %4992 }
 0xb6f   :  { %v2943_v56 = vmul.f32 %v4993_v55, %v6487_v61  ;;  %v4995_v48 = vpop.eup %4994 }
 0xb71   :  { %v6533_v30 = vadd.f32 %v2944_v25, %v2943_v56 }
 0xb73   :  { %4996 = vtanh.f32 %v6533_v30 }
 0xb80   :  { %v4997_v17 = vpop.eup %4996 }
 0xb81   :  { %v6536_v35 = vmul.f32 %v4997_v17, %v4995_v48 }
 0xb83   :  { %v2948_v8 = vpack.c.bf16 %v6536_v35, %v6536_v35 }
 0xb85   :  { %2986 = vmatmul.mubr.bf16.vlgmr.msra.gmra.mxu0 %v2948_v8  ;;  %3027 = vmatmul.mubr.bf16.vlgmr.msra.gmra.mxu1 %v2948_v8 }
 0xb86   :  { %3065 = vmatpush1.bf16.msra.mxu0 %v6202_v14  ;;  %3106 = vmatpush1.bf16.msra.mxu1 %v6204_v53 }
 0xb87   :  { %3066 = vmatprep.subr.bf16.mxu0 %v6206_v24  ;;  %3107 = vmatprep.subr.bf16.mxu1 %v6208_v36 }
 0xb88   :  { %3096 = vmatprep.mubr.bf16.mxu0 %v6971_v7  ;;  %3137 = vmatprep.mubr.bf16.mxu1 %v6971_v7 }
 0xb8a   :  { %3067 = vmatpush1.bf16.msra.mxu0 %v6214_v2  ;;  %3108 = vmatpush1.bf16.msra.mxu1 %v6216_v54 }
 0xb8b   :  { %3068 = vmatprep.subr.bf16.mxu0 %v6220_v39  ;;  %3109 = vmatprep.subr.bf16.mxu1 %v6222_v40 }
 0xb8e   :  { %3069 = vmatpush1.bf16.msra.mxu0 %v6226_v32  ;;  %3110 = vmatpush1.bf16.msra.mxu1 %v6228_v41 }
 0xb8f   :  { %3070 = vmatprep.subr.bf16.mxu0 %v6232_v11  ;;  %3111 = vmatprep.subr.bf16.mxu1 %v6234_v13 }
 0xb92   :  { %3071 = vmatpush1.bf16.msra.mxu0 %v6242_v16  ;;  %3112 = vmatpush1.bf16.msra.mxu1 %v6244_v18 }
 0xb93   :  { %3072 = vmatprep.subr.bf16.mxu0 %v6248_v42  ;;  %3113 = vmatprep.subr.bf16.mxu1 %v6250_v20 }
 0xb96   :  { %3073 = vmatpush1.bf16.msra.mxu0 %v6254_v37  ;;  %3114 = vmatpush1.bf16.msra.mxu1 %v6256_v23 }
 0xb97   :  { %3074 = vmatprep.subr.bf16.mxu0 %v6260_v43  ;;  %3115 = vmatprep.subr.bf16.mxu1 %v6262_v5 }
 0xb9a   :  { %3075 = vmatpush1.bf16.msra.mxu0 %v6268_v52  ;;  %3116 = vmatpush1.bf16.msra.mxu1 %v6270_v6 }
 0xb9b   :  { %3076 = vmatprep.subr.bf16.mxu0 %v6274_v49  ;;  %3117 = vmatprep.subr.bf16.mxu1 %v6276_v63 }
 0xb9e   :  { %3077 = vmatpush1.bf16.msra.mxu0 %v6280_v4  ;;  %3118 = vmatpush1.bf16.msra.mxu1 %v6282_v59 }
 0xb9f   :  { %3078 = vmatprep.subr.bf16.mxu0 %v6286_v38  ;;  %3119 = vmatprep.subr.bf16.mxu1 %v6288_v12 }
 0xba2   :  { %3079 = vmatpush1.bf16.msra.mxu0 %v6296_v1  ;;  %3120 = vmatpush1.bf16.msra.mxu1 %v6298_v0 }
 0xba3   :  { %3175 = vmatprep.subr.bf16.mxu0 %v6179_v19  ;;  %3216 = vmatprep.subr.bf16.mxu1 %v6181_v21  ;;  %v7020_v21 = vld [vmem:[#allocation20_spill] sm:$0xff] }
 0xc45   :  { %v2987_v61 = vpop.f32.mrf.mxu0  ;;  %v3028_v58 = vpop.f32.mrf.mxu1 }
 0xc46   :  { %v2988_v57 = vadd.f32 %v2987_v61, %v7017_v3  ;;  %v3029_v19 = vadd.f32 %v3028_v58, %v7019_v29 }
 0xc47   :  { %v2989_v34 = vpop.f32.mrf.mxu0  ;;  %v3030_v31 = vpop.f32.mrf.mxu1 }
 0xc48   :  { %v4331_v51 = vmul.f32 -1.442695, %v2988_v57  ;;  %v2990_v15 = vadd.f32 %v2989_v34, %v7018_v27  ;;  %v4333_v46 = vmul.f32 -1.442695, %v3029_v19  ;;  %v3031_v33 = vadd.f32 %v3030_v31, %v7020_v21 }
 0xc49   :  { %v2991_v9 = vpop.f32.mrf.mxu0  ;;  %v3032_v44 = vpop.f32.mrf.mxu1 }
 0xc4a   :  { %4998 = vpow2.f32 %v4331_v51  ;;  %v4332_v62 = vmul.f32 -1.442695, %v2990_v15  ;;  %v7023_v44 = vld [vmem:[#allocation23_spill] sm:$0xff] }
 0xc4b   :  { %v2992_v45 = vpop.f32.mrf.mxu0  ;;  %v3033_v10 = vpop.f32.mrf.mxu1 }
 0xc4c   :  { %5000 = vpow2.f32 %v4332_v62  ;;  %v7024_v10 = vld [vmem:[#allocation24_spill] sm:$0xff] }
 0xc4d   :  { %5002 = vpow2.f32 %v4333_v46 }
 0xc4e   :  { %5004 = vtanh.f32 %v3031_v33 }
 0xc57   :  { %v4999_v26 = vpop.eup %4998 }
 0xc58   :  { %v3044_v22 = vadd.f32 1.0, %v4999_v26 }
 0xc59   :  { %v5001_v25 = vpop.eup %5000 }
 0xc5a   :  { %5006 = vrcp.f32 %v3044_v22  ;;  %v3045_v55 = vadd.f32 1.0, %v5001_v25  ;;  %v5003_v47 = vpop.eup %5002 }
 0xc5b   :  { %v5005_v56 = vpop.eup %5004  ;;  %v3046_v61 = vadd.f32 1.0, %v5003_v47 }
 0xc5c   :  { %5008 = vrcp.f32 %v3045_v55 }
 0xc5d   :  { %5010 = vrcp.f32 %v3046_v61 }
 0xc67   :  { %v5007_v48 = vpop.eup %5006 }
 0xc68   :  { %v3055_v17 = vmul.f32 %v5007_v48, %v5005_v56 }
 0xc69   :  { %v5009_v8 = vpop.eup %5008 }
 0xc6a   :  { %v3054_v3 = vmul.f32 %v5009_v8, %v6533_v30  ;;  %v5011_v57 = vpop.eup %5010 }
 0xc6c   :  { %v6579_v58 = vadd.f32 %v3055_v17, %v3054_v3 }
 0xc6e   :  { %5012 = vtanh.f32 %v6579_v58 }
 0xc7b   :  { %v5013_v34 = vpop.eup %5012 }
 0xc7c   :  { %v6582_v31 = vmul.f32 %v5013_v34, %v5011_v57  ;;  %v6636_v34 = vld [vmem:[#allocation10 + $0xe0] ss:$16 sps:$4 sm:$0xff]  }
 0xc7e   :  { %v3059_v51 = vpack.c.bf16 %v6582_v31, %v6582_v31 }
 0xc80   :  { %3097 = vmatmul.mubr.bf16.vlgmr.msra.gmra.mxu0 %v3059_v51  ;;  %3138 = vmatmul.mubr.bf16.vlgmr.msra.gmra.mxu1 %v3059_v51  ;;  %v6639_v51 = vld [vmem:[#allocation10 + $0xe8] ss:$16 sps:$4 sm:$0xff]  }
 0xc81   :  { %3176 = vmatpush1.bf16.msra.mxu0 %v6202_v14  ;;  %3217 = vmatpush1.bf16.msra.mxu1 %v6204_v53  ;;  %v6618_v14 = vld [vmem:[#allocation10 + $0xe4] ss:$16 sps:$4 sm:$0xff]   ;;  %v6621_v53 = vld [vmem:[#allocation10 + $0xec] ss:$16 sps:$4 sm:$0xff]  }
 0xc82   :  { %3177 = vmatprep.subr.bf16.mxu0 %v6206_v24  ;;  %3218 = vmatprep.subr.bf16.mxu1 %v6208_v36 }
 0xc83   :  { %3207 = vmatprep.mubr.bf16.mxu0 %v6971_v7  ;;  %3248 = vmatprep.mubr.bf16.mxu1 %v6971_v7 }
 0xc85   :  { %3178 = vmatpush1.bf16.msra.mxu0 %v6214_v2  ;;  %3219 = vmatpush1.bf16.msra.mxu1 %v6216_v54  ;;  %v7021_v2 = vld [vmem:[#allocation21_spill] sm:$0xff] }
 0xc86   :  { %3179 = vmatprep.subr.bf16.mxu0 %v6220_v39  ;;  %3220 = vmatprep.subr.bf16.mxu1 %v6222_v40 }
 0xc89   :  { %3180 = vmatpush1.bf16.msra.mxu0 %v6226_v32  ;;  %3221 = vmatpush1.bf16.msra.mxu1 %v6228_v41  ;;  %v7022_v41 = vld [vmem:[#allocation22_spill] sm:$0xff] }
 0xc8a   :  { %3181 = vmatprep.subr.bf16.mxu0 %v6232_v11  ;;  %3222 = vmatprep.subr.bf16.mxu1 %v6234_v13 }
 0xc8d   :  { %3182 = vmatpush1.bf16.msra.mxu0 %v6242_v16  ;;  %3223 = vmatpush1.bf16.msra.mxu1 %v6244_v18 }
 0xc8e   :  { %3183 = vmatprep.subr.bf16.mxu0 %v6248_v42  ;;  %3224 = vmatprep.subr.bf16.mxu1 %v6250_v20 }
 0xc91   :  { %3184 = vmatpush1.bf16.msra.mxu0 %v6254_v37  ;;  %3225 = vmatpush1.bf16.msra.mxu1 %v6256_v23 }
 0xc92   :  { %3185 = vmatprep.subr.bf16.mxu0 %v6260_v43  ;;  %3226 = vmatprep.subr.bf16.mxu1 %v6262_v5 }
 0xc95   :  { %3186 = vmatpush1.bf16.msra.mxu0 %v6268_v52  ;;  %3227 = vmatpush1.bf16.msra.mxu1 %v6270_v6 }
 0xc96   :  { %3187 = vmatprep.subr.bf16.mxu0 %v6274_v49  ;;  %3228 = vmatprep.subr.bf16.mxu1 %v6276_v63 }
 0xc99   :  { %3188 = vmatpush1.bf16.msra.mxu0 %v6280_v4  ;;  %3229 = vmatpush1.bf16.msra.mxu1 %v6282_v59 }
 0xc9a   :  { %3189 = vmatprep.subr.bf16.mxu0 %v6286_v38  ;;  %3230 = vmatprep.subr.bf16.mxu1 %v6288_v12 }
 0xc9d   :  { %3190 = vmatpush1.bf16.msra.mxu0 %v6296_v1  ;;  %3231 = vmatpush1.bf16.msra.mxu1 %v6298_v0 }
 0xc9e   :  { %3286 = vmatprep.subr.bf16.mxu0 %v6618_v14  ;;  %3327 = vmatprep.subr.bf16.mxu1 %v6621_v53 }
 0xd40   :  { %v3098_v24 = vpop.f32.mrf.mxu0  ;;  %v3139_v36 = vpop.f32.mrf.mxu1 }
 0xd41   :  { %v3099_v54 = vadd.f32 %v3098_v24, %v7021_v2  ;;  %v3140_v62 = vadd.f32 %v3139_v36, %v7023_v44  ;;  %v6645_v24 = vld [vmem:[#allocation10 + $0xcc] ss:$16 sps:$4 sm:$0xff]   ;;  %v6650_v36 = vld [vmem:[#allocation10 + $0xc0] ss:$16 sps:$4 sm:$0xff]   ;;  %v6653_v2 = vld [vmem:[#allocation10 + $0xc8] ss:$16 sps:$4 sm:$0xff]  }
 0xd42   :  { %v3100_v39 = vpop.f32.mrf.mxu0  ;;  %v3141_v40 = vpop.f32.mrf.mxu1 }
 0xd43   :  { %v4334_v32 = vmul.f32 -1.442695, %v3099_v54  ;;  %v3101_v11 = vadd.f32 %v3100_v39, %v7022_v41  ;;  %v4336_v45 = vmul.f32 -1.442695, %v3140_v62  ;;  %v3142_v29 = vadd.f32 %v3141_v40, %v7024_v10  ;;  %v6656_v54 = vld [vmem:[#allocation10 + $0xa4] ss:$16 sps:$4 sm:$0xff]  }
 0xd44   :  { %v3102_v13 = vpop.f32.mrf.mxu0  ;;  %v3143_v30 = vpop.f32.mrf.mxu1  ;;  %v6659_v39 = vld [vmem:[#allocation10 + $0xac] ss:$16 sps:$4 sm:$0xff]   ;;  %v6662_v40 = vld [vmem:[#allocation10 + $0xa0] ss:$16 sps:$4 sm:$0xff]   ;;  %v6668_v41 = vld [vmem:[#allocation10 + $0x84] ss:$16 sps:$4 sm:$0xff]  }
 0xd45   :  { %5014 = vpow2.f32 %v4334_v32  ;;  %v4335_v27 = vmul.f32 -1.442695, %v3101_v11  ;;  %v6665_v32 = vld [vmem:[#allocation10 + $0xa8] ss:$16 sps:$4 sm:$0xff]   ;;  %v6671_v11 = vld [vmem:[#allocation10 + $0x8c] ss:$16 sps:$4 sm:$0xff]  }
 0xd46   :  { %v3103_v15 = vpop.f32.mrf.mxu0  ;;  %v3144_v9 = vpop.f32.mrf.mxu1 }
 0xd47   :  { %5016 = vpow2.f32 %v4335_v27 }
 0xd48   :  { %5018 = vpow2.f32 %v4336_v45 }
 0xd49   :  { %5020 = vtanh.f32 %v3142_v29 }
 0xd52   :  { %v5015_v19 = vpop.eup %5014 }
 0xd53   :  { %v3155_v46 = vadd.f32 1.0, %v5015_v19 }
 0xd54   :  { %v5017_v21 = vpop.eup %5016 }
 0xd55   :  { %5022 = vrcp.f32 %v3155_v46  ;;  %v3156_v33 = vadd.f32 1.0, %v5017_v21  ;;  %v5019_v26 = vpop.eup %5018 }
 0xd56   :  { %v5021_v22 = vpop.eup %5020  ;;  %v3157_v56 = vadd.f32 1.0, %v5019_v26 }
 0xd57   :  { %5024 = vrcp.f32 %v3156_v33 }
 0xd58   :  { %5026 = vrcp.f32 %v3157_v56  ;;  %v5163_v56 = vld [vmem:[#allocation10 + $0x68] ss:$16 sps:$4 sm:$0xff]  }
 0xd62   :  { %v5023_v25 = vpop.eup %5022 }
 0xd63   :  { %v3166_v55 = vmul.f32 %v5023_v25, %v5021_v22  ;;  %v5158_v22 = vld [vmem:[#allocation10 + $0x80] ss:$16 sps:$4 sm:$0xff]   ;;  %v5159_v25 = vld [vmem:[#allocation10 + $0x88] ss:$16 sps:$4 sm:$0xff]  }
 0xd64   :  { %v5025_v47 = vpop.eup %5024 }
 0xd65   :  { %v3165_v48 = vmul.f32 %v5025_v47, %v6579_v58  ;;  %v5027_v8 = vpop.eup %5026  ;;  %v6642_v58 = vld [vmem:[#allocation10 + $0xc4] ss:$16 sps:$4 sm:$0xff]   ;;  %v5162_v47 = vld [vmem:[#allocation10 + $0x60] ss:$16 sps:$4 sm:$0xff]  }
 0xd67   :  { %v6629_v17 = vadd.f32 %v3166_v55, %v3165_v48  ;;  %v5161_v55 = vld [vmem:[#allocation10 + $0x6c] ss:$16 sps:$4 sm:$0xff]   ;;  %v5164_v48 = vld [vmem:[#allocation10 + $0x44] ss:$16 sps:$4 sm:$0xff]  }
 0xd69   :  { %5028 = vtanh.f32 %v6629_v17 }
 0xd76   :  { %v5029_v61 = vpop.eup %5028 }
 0xd77   :  { %v6632_v3 = vmul.f32 %v5029_v61, %v5027_v8  ;;  %v5166_v8 = vld [vmem:[#allocation10 + $0x40] ss:$16 sps:$4 sm:$0xff]   ;;  %v5167_v61 = vld [vmem:[#allocation10 + $0x48] ss:$16 sps:$4 sm:$0xff]  }
 0xd79   :  { %v3170_v57 = vpack.c.bf16 %v6632_v3, %v6632_v3 }
 0xd7b   :  { %3208 = vmatmul.mubr.bf16.vlgmr.msra.gmra.mxu0 %v3170_v57  ;;  %3249 = vmatmul.mubr.bf16.vlgmr.msra.gmra.mxu1 %v3170_v57  ;;  %v5168_v57 = vld [vmem:[#allocation10 + $0x24] ss:$16 sps:$4 sm:$0xff]  }
 0xd7c   :  { %3287 = vmatpush1.bf16.msra.mxu0 %v6636_v34  ;;  %3328 = vmatpush1.bf16.msra.mxu1 %v6639_v51 }
 0xd7d   :  { %3288 = vmatprep.subr.bf16.mxu0 %v6642_v58  ;;  %3329 = vmatprep.subr.bf16.mxu1 %v6645_v24 }
 0xd7e   :  { %3318 = vmatprep.mubr.bf16.mxu0 %v6971_v7  ;;  %3359 = vmatprep.mubr.bf16.mxu1 %v6971_v7 }
 0xd80   :  { %3289 = vmatpush1.bf16.msra.mxu0 %v6650_v36  ;;  %3330 = vmatpush1.bf16.msra.mxu1 %v6653_v2 }
 0xd81   :  { %3290 = vmatprep.subr.bf16.mxu0 %v6656_v54  ;;  %3331 = vmatprep.subr.bf16.mxu1 %v6659_v39 }
 0xd84   :  { %3291 = vmatpush1.bf16.msra.mxu0 %v6662_v40  ;;  %3332 = vmatpush1.bf16.msra.mxu1 %v6665_v32 }
 0xd85   :  { %3292 = vmatprep.subr.bf16.mxu0 %v6668_v41  ;;  %3333 = vmatprep.subr.bf16.mxu1 %v6671_v11 }
 0xd88   :  { %3293 = vmatpush1.bf16.msra.mxu0 %v6242_v16  ;;  %3334 = vmatpush1.bf16.msra.mxu1 %v6244_v18 }
 0xd89   :  { %3294 = vmatprep.subr.bf16.mxu0 %v6248_v42  ;;  %3335 = vmatprep.subr.bf16.mxu1 %v6250_v20  ;;  %v7025_v42 = vld [vmem:[#allocation25_spill] sm:$0xff] }
 0xd8c   :  { %3295 = vmatpush1.bf16.msra.mxu0 %v6254_v37  ;;  %3336 = vmatpush1.bf16.msra.mxu1 %v6256_v23 }
 0xd8d   :  { %3296 = vmatprep.subr.bf16.mxu0 %v6260_v43  ;;  %3337 = vmatprep.subr.bf16.mxu1 %v6262_v5  ;;  %v7026_v5 = vld [vmem:[#allocation26_spill] sm:$0xff] }
 0xd90   :  { %3297 = vmatpush1.bf16.msra.mxu0 %v6268_v52  ;;  %3338 = vmatpush1.bf16.msra.mxu1 %v6270_v6 }
 0xd91   :  { %3298 = vmatprep.subr.bf16.mxu0 %v6274_v49  ;;  %3339 = vmatprep.subr.bf16.mxu1 %v6276_v63 }
 0xd94   :  { %3299 = vmatpush1.bf16.msra.mxu0 %v6280_v4  ;;  %3340 = vmatpush1.bf16.msra.mxu1 %v6282_v59 }
 0xd95   :  { %3300 = vmatprep.subr.bf16.mxu0 %v6286_v38  ;;  %3341 = vmatprep.subr.bf16.mxu1 %v6288_v12  ;;  %v7027_v38 = vld [vmem:[#allocation27_spill] sm:$0xff] }
 0xd98   :  { %3301 = vmatpush1.bf16.msra.mxu0 %v6296_v1  ;;  %3342 = vmatpush1.bf16.msra.mxu1 %v6298_v0  ;;  %v7028_v0 = vld [vmem:[#allocation28_spill] sm:$0xff] }
 0xd99   :  { %3397 = vmatprep.subr.bf16.mxu0 %v6618_v14  ;;  %3438 = vmatprep.subr.bf16.mxu1 %v6621_v53 }
 0xe3b   :  { %v3209_v16 = vpop.f32.mrf.mxu0  ;;  %v3250_v18 = vpop.f32.mrf.mxu1 }
 0xe3c   :  { %v3210_v20 = vadd.f32 %v3209_v16, %v7025_v42  ;;  %v3251_v12 = vadd.f32 %v3250_v18, %v7027_v38  ;;  %v7030_v42 = vld [vmem:[#allocation30_spill] sm:$0xff] }
 0xe3d   :  { %v3211_v37 = vpop.f32.mrf.mxu0  ;;  %v3252_v23 = vpop.f32.mrf.mxu1 }
 0xe3e   :  { %v4337_v43 = vmul.f32 -1.442695, %v3210_v20  ;;  %v3212_v52 = vadd.f32 %v3211_v37, %v7026_v5  ;;  %v4339_v1 = vmul.f32 -1.442695, %v3251_v12  ;;  %v3253_v14 = vadd.f32 %v3252_v23, %v7028_v0 }
 0xe3f   :  { %v3213_v6 = vpop.f32.mrf.mxu0  ;;  %v3254_v49 = vpop.f32.mrf.mxu1 }
 0xe40   :  { %5030 = vpow2.f32 %v4337_v43  ;;  %v4338_v63 = vmul.f32 -1.442695, %v3212_v52  ;;  %v7031_v6 = vld [vmem:[#allocation31_spill] sm:$0xff] }
 0xe41   :  { %v3214_v4 = vpop.f32.mrf.mxu0  ;;  %v3255_v59 = vpop.f32.mrf.mxu1 }
 0xe42   :  { %5032 = vpow2.f32 %v4338_v63  ;;  %v7032_v4 = vld [vmem:[#allocation32_spill] sm:$0xff] }
 0xe43   :  { %5034 = vpow2.f32 %v4339_v1 }
 0xe44   :  { %5036 = vtanh.f32 %v3253_v14 }
 0xe4d   :  { %v5031_v53 = vpop.eup %5030 }
 0xe4e   :  { %v3266_v13 = vadd.f32 1.0, %v5031_v53 }
 0xe4f   :  { %v5033_v30 = vpop.eup %5032 }
 0xe50   :  { %5038 = vrcp.f32 %v3266_v13  ;;  %v3267_v27 = vadd.f32 1.0, %v5033_v30  ;;  %v5035_v15 = vpop.eup %5034 }
 0xe51   :  { %v5037_v9 = vpop.eup %5036  ;;  %v3268_v10 = vadd.f32 1.0, %v5035_v15 }
 0xe52   :  { %5040 = vrcp.f32 %v3267_v27 }
 0xe53   :  { %5042 = vrcp.f32 %v3268_v10 }
 0xe5d   :  { %v5039_v44 = vpop.eup %5038 }
 0xe5e   :  { %v3277_v62 = vmul.f32 %v5039_v44, %v5037_v9 }
 0xe5f   :  { %v5041_v45 = vpop.eup %5040 }
 0xe60   :  { %v3276_v29 = vmul.f32 %v5041_v45, %v6629_v17  ;;  %v5043_v46 = vpop.eup %5042  ;;  %v5165_v17 = vld [vmem:[#allocation10 + $0x4c] ss:$16 sps:$4 sm:$0xff]  }
 0xe62   :  { %v6699_v19 = vadd.f32 %v3277_v62, %v3276_v29 }
 0xe64   :  { %5044 = vtanh.f32 %v6699_v19 }
 0xe71   :  { %v5045_v21 = vpop.eup %5044 }
 0xe72   :  { %v6702_v33 = vmul.f32 %v5045_v21, %v5043_v46  ;;  %v4798_v46 = vld [vmem:[%s6931_s7 + $0x38] sm:$0xff]   ;;  %v4800_v21 = vld [vmem:[%s6931_s7 + $0x28] sm:$0xff]  }
 0xe74   :  { %v3281_v26 = vpack.c.bf16 %v6702_v33, %v6702_v33 }
 0xe76   :  { %3319 = vmatmul.mubr.bf16.vlgmr.msra.gmra.mxu0 %v3281_v26  ;;  %3360 = vmatmul.mubr.bf16.vlgmr.msra.gmra.mxu1 %v3281_v26  ;;  %v4801_v26 = vld [vmem:[%s6931_s7 + $0x20] sm:$0xff]  }
 0xe77   :  { %3398 = vmatpush1.bf16.msra.mxu0 %v6636_v34  ;;  %3439 = vmatpush1.bf16.msra.mxu1 %v6639_v51  ;;  %v5169_v34 = vld [vmem:[#allocation10 + $0x2c] ss:$16 sps:$4 sm:$0xff]   ;;  %v5170_v51 = vld [vmem:[#allocation10 + $0x20] ss:$16 sps:$4 sm:$0xff]  }
 0xe78   :  { %3399 = vmatprep.subr.bf16.mxu0 %v6642_v58  ;;  %3440 = vmatprep.subr.bf16.mxu1 %v6645_v24  ;;  %v5171_v58 = vld [vmem:[#allocation10 + $0x28] ss:$16 sps:$4 sm:$0xff]   ;;  %v5172_v24 = vld [vmem:[#allocation10 + $0x4] ss:$16 sps:$4 sm:$0xff]  }
 0xe79   :  { %3429 = vmatprep.mubr.bf16.mxu0 %v6971_v7  ;;  %3470 = vmatprep.mubr.bf16.mxu1 %v6971_v7  ;;  %v5160_v7 = vld [vmem:[#allocation10 + $0x64] ss:$16 sps:$4 sm:$0xff]  }
 0xe7b   :  { %3400 = vmatpush1.bf16.msra.mxu0 %v6650_v36  ;;  %3441 = vmatpush1.bf16.msra.mxu1 %v6653_v2  ;;  %v5173_v36 = vld [vmem:[#allocation10 + $0xc] ss:$16 sps:$4 sm:$0xff]   ;;  %v5174_v2 = vld [vmem:[#allocation10] ss:$16 sps:$4 sm:$0xff]  }
 0xe7c   :  { %3401 = vmatprep.subr.bf16.mxu0 %v6656_v54  ;;  %3442 = vmatprep.subr.bf16.mxu1 %v6659_v39  ;;  %v5175_v54 = vld [vmem:[#allocation10 + $0x8] ss:$16 sps:$4 sm:$0xff]  }
 0xe7f   :  { %3402 = vmatpush1.bf16.msra.mxu0 %v6662_v40  ;;  %3443 = vmatpush1.bf16.msra.mxu1 %v6665_v32  ;;  %v7029_v32 = vld [vmem:[#allocation29_spill] sm:$0xff] }
 0xe80   :  { %3403 = vmatprep.subr.bf16.mxu0 %v6668_v41  ;;  %3444 = vmatprep.subr.bf16.mxu1 %v6671_v11 }
 0xe83   :  { %3404 = vmatpush1.bf16.msra.mxu0 %v5158_v22  ;;  %3445 = vmatpush1.bf16.msra.mxu1 %v5159_v25  ;;  %v4802_v22 = vld [vmem:[%s6931_s7 + $0x18] sm:$0xff]   ;;  %v4803_v25 = vld [vmem:[%s6931_s7 + $0x10] sm:$0xff]  }
 0xe84   :  { %3405 = vmatprep.subr.bf16.mxu0 %v5160_v7  ;;  %3446 = vmatprep.subr.bf16.mxu1 %v5161_v55  ;;  %v4804_v7 = vld [vmem:[%s6931_s7 + $0x8] sm:$0xff]   ;;  %v4805_v55 = vld [vmem:[%s6931_s7] sm:$0xff]  }
 0xe87   :  { %3406 = vmatpush1.bf16.msra.mxu0 %v5162_v47  ;;  %3447 = vmatpush1.bf16.msra.mxu1 %v5163_v56 }
 0xe88   :  { %3407 = vmatprep.subr.bf16.mxu0 %v5164_v48  ;;  %3448 = vmatprep.subr.bf16.mxu1 %v5165_v17  ;;  %v7033_v48 = vld [vmem:[#allocation33_spill] sm:$0xff] }
 0xe8b   :  { %3408 = vmatpush1.bf16.msra.mxu0 %v5166_v8  ;;  %3449 = vmatpush1.bf16.msra.mxu1 %v5167_v61 }
 0xe8c   :  { %3409 = vmatprep.subr.bf16.mxu0 %v5168_v57  ;;  %3450 = vmatprep.subr.bf16.mxu1 %v5169_v34  ;;  %v7034_v34 = vld [vmem:[#allocation15_spill] sm:$0xff] }
 0xe8f   :  { %3410 = vmatpush1.bf16.msra.mxu0 %v5170_v51  ;;  %3451 = vmatpush1.bf16.msra.mxu1 %v5171_v58 }
 0xe90   :  { %3411 = vmatprep.subr.bf16.mxu0 %v5172_v24  ;;  %3452 = vmatprep.subr.bf16.mxu1 %v5173_v36 }
 0xe93   :  { %3412 = vmatpush1.bf16.msra.mxu0 %v5174_v2  ;;  %3453 = vmatpush1.bf16.msra.mxu1 %v5175_v54 }
 0xe94   :  { %4413 = vmatprep.subr.bf16.mxu0 %v4798_v46 }
 0xf36   :  { %v3320_v39 = vpop.f32.mrf.mxu0  ;;  %v3361_v40 = vpop.f32.mrf.mxu1 }
 0xf37   :  { %v3321_v41 = vadd.f32 %v3320_v39, %v7029_v32  ;;  %v3362_v49 = vadd.f32 %v3361_v40, %v7031_v6  ;;  %v7035_v39 = vld [vmem:[#allocation34_spill] sm:$0xff] }
 0xf38   :  { %v3322_v11 = vpop.f32.mrf.mxu0  ;;  %v3363_v16 = vpop.f32.mrf.mxu1 }
 0xf39   :  { %v4340_v18 = vmul.f32 -1.442695, %v3321_v41  ;;  %v3323_v20 = vadd.f32 %v3322_v11, %v7030_v42  ;;  %v4342_v63 = vmul.f32 -1.442695, %v3362_v49  ;;  %v3364_v59 = vadd.f32 %v3363_v16, %v7032_v4 }
 0xf3a   :  { %v3324_v37 = vpop.f32.mrf.mxu0  ;;  %v3365_v23 = vpop.f32.mrf.mxu1 }
 0xf3b   :  { %5046 = vpow2.f32 %v4340_v18  ;;  %v4341_v43 = vmul.f32 -1.442695, %v3323_v20 }
 0xf3c   :  { %v3325_v5 = vpop.f32.mrf.mxu0  ;;  %v3366_v52 = vpop.f32.mrf.mxu1 }
 0xf3d   :  { %5048 = vpow2.f32 %v4341_v43 }
 0xf3e   :  { %5050 = vpow2.f32 %v4342_v63 }
 0xf3f   :  { %5052 = vtanh.f32 %v3364_v59  ;;  %v6764_v59 = vsel %vm1823_vm0, %v6536_v35, %v6702_v33 }
 0xf48   :  { %v5047_v38 = vpop.eup %5046 }
 0xf49   :  { %v3377_v12 = vadd.f32 1.0, %v5047_v38 }
 0xf4a   :  { %v5049_v1 = vpop.eup %5048 }
 0xf4b   :  { %5054 = vrcp.f32 %v3377_v12  ;;  %v3378_v0 = vadd.f32 1.0, %v5049_v1  ;;  %v5051_v14 = vpop.eup %5050  ;;  %v6778_v1 = vsel %vm1823_vm0, %v6702_v33, %v6536_v35 }
 0xf4c   :  { %v5053_v53 = vpop.eup %5052  ;;  %v3379_v15 = vadd.f32 1.0, %v5051_v14  ;;  %v6785_v14 = vsel %vm1823_vm0, %v6582_v31, %v6632_v3 }
 0xf4d   :  { %5056 = vrcp.f32 %v3378_v0 }
 0xf4e   :  { %5058 = vrcp.f32 %v3379_v15 }
 0xf58   :  { %v5055_v13 = vpop.eup %5054 }
 0xf59   :  { %v3388_v30 = vmul.f32 %v5055_v13, %v5053_v53  ;;  %v3512_v53 = vpack.c.bf16 %v6785_v14, %v6764_v59  ;;  %v6792_v13 = vsel %vm1823_vm0, %v6632_v3, %v6582_v31  ;;  %v4806_v31 = vld [vmem:[%s6933_s9 + $0x18] sm:$0xff]   ;;  %v4809_v3 = vld [vmem:[%s6933_s9] sm:$0xff]  }
 0xf5a   :  { %v5057_v27 = vpop.eup %5056  ;;  %v3513_v35 = vpack.c.bf16 %v6778_v1, %v6792_v13  ;;  %4437 = vmatprep.subr.bf16.mxu1 %v4806_v31 }
 0xf5b   :  { %v3387_v9 = vmul.f32 %v5057_v27, %v6699_v19  ;;  %v5059_v62 = vpop.eup %5058  ;;  %v4799_v19 = vld [vmem:[%s6931_s7 + $0x30] sm:$0xff]  }
 0xf5d   :  { %v6725_v44 = vadd.f32 %v3388_v30, %v3387_v9  ;;  %v4346_v9 = vld [vmem:[%s6932_s8] ss:$0 sm:$0xff] }
 0xf5f   :  { %5060 = vtanh.f32 %v6725_v44 }
 0xf6c   :  { %v5061_v45 = vpop.eup %5060 }
 0xf6d   :  { %v6728_v10 = vmul.f32 %v5061_v45, %v5059_v62 }
 0xf6f   :  { %v3392_v29 = vpack.c.bf16 %v6728_v10, %v6728_v10  ;;  %v6773_v12 = vsel %vm1823_vm0, %v6490_v60, %v6728_v10  ;;  %v6803_v30 = vsel %vm1823_vm0, %v6728_v10, %v6490_v60  ;;  %v4808_v60 = vld [vmem:[%s6933_s9 + $0x8] sm:$0xff]  }
 0xf71   :  { %3430 = vmatmul.mubr.bf16.vlgmr.msra.gmra.mxu0 %v3392_v29  ;;  %3471 = vmatmul.mubr.bf16.vlgmr.msra.gmra.mxu1 %v3392_v29 }
 0xf72   :  { %4414 = vmatpush3.bf16.msra.mxu0 %v4798_v46  ;;  %4438 = vmatpush3.bf16.msra.mxu1 %v4806_v31 }
 0xf73   :  { %4415 = vmatprep.subr.bf16.mxu0 %v4799_v19 }
 0xf76   :  { %4416 = vmatpush3.bf16.msra.mxu0 %v4799_v19 }
 0xf77   :  { %4417 = vmatprep.subr.bf16.mxu0 %v4800_v21 }
 0xf7a   :  { %4418 = vmatpush3.bf16.msra.mxu0 %v4800_v21 }
 0xf7b   :  { %4419 = vmatprep.subr.bf16.mxu0 %v4801_v26 }
 0xf7e   :  { %4420 = vmatpush3.bf16.msra.mxu0 %v4801_v26 }
 0xf7f   :  { %4421 = vmatprep.subr.bf16.mxu0 %v4802_v22 }
 0xf82   :  { %4422 = vmatpush3.bf16.msra.mxu0 %v4802_v22 }
 0xf83   :  { %4423 = vmatprep.subr.bf16.mxu0 %v4803_v25 }
 0xf86   :  { %4424 = vmatpush3.bf16.msra.mxu0 %v4803_v25 }
 0xf87   :  { %4425 = vmatprep.subr.bf16.mxu0 %v4804_v7 }
 0xf8a   :  { %4426 = vmatpush3.bf16.msra.mxu0 %v4804_v7 }
 0xf8b   :  { %4427 = vmatprep.subr.bf16.mxu0 %v4805_v55 }
 0xf8e   :  { %4428 = vmatpush3.bf16.msra.mxu0 %v4805_v55 }
0x1031   :  { %v3431_v47 = vpop.f32.mrf.mxu0  ;;  %v3472_v56 = vpop.f32.mrf.mxu1 }
0x1032   :  { %v3432_v17 = vadd.f32 %v3431_v47, %v7033_v48  ;;  %v3473_v40 = vadd.f32 %v3472_v56, %v7035_v39  ;;  %v4810_v39 = vld [vmem:[%s6935_s11 + $0x38] sm:$0xff]  }
0x1033   :  { %v3433_v8 = vpop.f32.mrf.mxu0  ;;  %v3474_v61 = vpop.f32.mrf.mxu1 }
0x1034   :  { %v4343_v57 = vmul.f32 -1.442695, %v3432_v17  ;;  %v3434_v51 = vadd.f32 %v3433_v8, %v7034_v34  ;;  %v4345_v32 = vmul.f32 -1.442695, %v3473_v40  ;;  %v3475_v41 = vadd.f32 %v3474_v61, %v6433_v28 }
0x1035   :  { %v3435_v58 = vpop.f32.mrf.mxu0  ;;  %v3476_v24 = vpop.f32.mrf.mxu1  ;;  %v5271_v40 = vmov 0.0  }
0x1036   :  { %5062 = vpow2.f32 %v4343_v57  ;;  %v4344_v36 = vmul.f32 -1.442695, %v3434_v51  ;;  %4473 = vmatprep.subr.bf16.mxu0 %v5271_v40 }
0x1037   :  { %v3436_v2 = vpop.f32.mrf.mxu0  ;;  %v3477_v54 = vpop.f32.mrf.mxu1 }
0x1038   :  { %5064 = vpow2.f32 %v4344_v36 }
0x1039   :  { %5066 = vpow2.f32 %v4345_v32  ;;  %v4811_v32 = vld [vmem:[%s6935_s11 + $0x30] sm:$0xff]  }
0x103a   :  { %5068 = vtanh.f32 %v3475_v41  ;;  %v4812_v41 = vld [vmem:[%s6935_s11 + $0x28] sm:$0xff]  }
0x1043   :  { %v5063_v11 = vpop.eup %5062 }
0x1044   :  { %v3488_v16 = vadd.f32 1.0, %v5063_v11 }
0x1045   :  { %v5065_v18 = vpop.eup %5064 }
0x1046   :  { %5070 = vrcp.f32 %v3488_v16  ;;  %v3489_v42 = vadd.f32 1.0, %v5065_v18  ;;  %v5067_v20 = vpop.eup %5066 }
0x1047   :  { %v5069_v37 = vpop.eup %5068  ;;  %v3490_v52 = vadd.f32 1.0, %v5067_v20 }
0x1048   :  { %5072 = vrcp.f32 %v3489_v42  ;;  %v4355_v42 = vld [vmem:[#allocation3] ss:$0 sm:$0xff] }
0x1049   :  { %5074 = vrcp.f32 %v3490_v52 }
0x1053   :  { %v5071_v23 = vpop.eup %5070 }
0x1054   :  { %v3499_v43 = vmul.f32 %v5071_v23, %v5069_v37 }
0x1055   :  { %v5073_v5 = vpop.eup %5072 }
0x1056   :  { %v3498_v6 = vmul.f32 %v5073_v5, %v6725_v44  ;;  %v5075_v28 = vpop.eup %5074 }
0x1058   :  { %v3500_v49 = vadd.f32 %v3499_v43, %v3498_v6 }
0x105a   :  { %5076 = vtanh.f32 %v3500_v49 }
0x1067   :  { %v5077_v63 = vpop.eup %5076 }
0x1068   :  { %v3502_v4 = vmul.f32 %v5077_v63, %v5075_v28 }
0x106a   :  { %v6768_v38 = vsel %vm1823_vm0, %v6444_v50, %v3502_v4  ;;  %v6798_v33 = vsel %vm1823_vm0, %v3502_v4, %v6444_v50  ;;  %v4807_v50 = vld [vmem:[%s6933_s9 + $0x10] sm:$0xff]  }
0x106b   :  { %v3511_v0 = vpack.c.bf16 %v6773_v12, %v6768_v38  ;;  %v3514_v27 = vpack.c.bf16 %v6798_v33, %v6803_v30  ;;  %4439 = vmatprep.subr.bf16.mxu1 %v4807_v50 }
0x106c   :  { %4440 = vmatpush3.bf16.msra.mxu1 %v4807_v50 }
0x106d   :  { %4429 = vmatprep.mubr.bf16.mxu0 %v3511_v0  ;;  %4441 = vmatprep.subr.bf16.mxu1 %v4808_v60 }
0x106e   :  { %4430 = vmatmul.mubr.bf16.vlgmr.msra.gmra.mxu0 %v3512_v53 }
0x106f   :  { %4433 = vmatprep.mubr.bf16.mxu0 %v3513_v35 }
0x1070   :  { %4442 = vmatpush3.bf16.msra.mxu1 %v4808_v60 }
0x1071   :  { %4443 = vmatprep.subr.bf16.mxu1 %v4809_v3 }
0x1074   :  { %4444 = vmatpush3.bf16.msra.mxu1 %v4809_v3 }
0x1075   :  { %4453 = vmatprep.subr.bf16.mxu1 %v5271_v40 }
0x1076   :  { %4434 = vmatmul.mubr.bf16.gmra.mxu0 %v3514_v27 }
0x1077   :  { %4481 = vmatprep.mubr.msk.bf16.mxu0 %vm5272_vm2, %v5271_v40 }
0x112e   :  { %v4431_v15 = vpop.f32.mrf.mxu0 }
0x112f   :  { %v3629_v29 = vadd.f32 %v4431_v15, %v4346_v9 }
0x1130   :  { %v3620_v44 = vpop.f32.mrf.mxu0 }
0x1131   :  { %v3621_v62 = vadd.f32 %v4346_v9, %v3620_v44 }
0x1132   :  { %v4432_v45 = vpop.f32.mrf.mxu0 }
0x1133   :  { %v3632_v10 = vadd.f32 %v4432_v45, %v4346_v9  ;;  %5078 = vtanh.f32 %v3621_v62 }
0x1134   :  { %v3623_v46 = vpop.f32.mrf.mxu0 }
0x1135   :  { %v3624_v19 = vadd.f32 %v4346_v9, %v3623_v46  ;;  %5080 = vtanh.f32 %v3632_v10 }
0x1136   :  { %v4435_v21 = vpop.f32.mrf.mxu0 }
0x1137   :  { %5082 = vtanh.f32 %v3624_v19  ;;  %v3645_v55 = vadd.f32 %v4435_v21, %v4346_v9 }
0x1138   :  { %5084 = vtanh.f32 %v3629_v29  ;;  %v3636_v26 = vpop.f32.mrf.mxu0 }
0x1139   :  { %v3637_v22 = vadd.f32 %v4346_v9, %v3636_v26 }
0x113a   :  { %v4436_v25 = vpop.f32.mrf.mxu0 }
0x113b   :  { %v3648_v7 = vadd.f32 %v4436_v25, %v4346_v9  ;;  %5086 = vtanh.f32 %v3637_v22 }
0x113c   :  { %v3639_v47 = vpop.f32.mrf.mxu0 }
0x113d   :  { %v3640_v56 = vadd.f32 %v4346_v9, %v3639_v47  ;;  %5088 = vtanh.f32 %v3648_v7 }
0x113f   :  { %5090 = vtanh.f32 %v3640_v56 }
0x1140   :  { %5092 = vtanh.f32 %v3645_v55  ;;  %v5079_v48 = vpop.eup %5078 }
0x1142   :  { %v5081_v17 = vpop.eup %5080 }
0x1144   :  { %v5083_v8 = vpop.eup %5082 }
0x1145   :  { %v5085_v61 = vpop.eup %5084  ;;  %v3659_v57 = vpack.c.bf16 %v5083_v8, %v5079_v48 }
0x1146   :  { %v3660_v34 = vpack.c.bf16 %v5081_v17, %v5085_v61 }
0x1147   :  { %4445 = vmatprep.mubr.msk.bf16.mxu1 %vm1823_vm0, %v3659_v57 }
0x1148   :  { %4446 = vmatmul.mubr.msk.bf16.vlgmr.msra.gmra.mxu1 %vm1823_vm0, %v3660_v34  ;;  %v5087_v51 = vpop.eup %5086 }
0x1149   :  { %4454 = vmatpush3.bf16.msra.mxu1 %v4810_v39 }
0x114a   :  { %v5089_v58 = vpop.eup %5088  ;;  %4455 = vmatprep.subr.bf16.mxu1 %v5271_v40 }
0x114c   :  { %v5091_v24 = vpop.eup %5090 }
0x114d   :  { %v5093_v36 = vpop.eup %5092  ;;  %v3661_v2 = vpack.c.bf16 %v5091_v24, %v5087_v51  ;;  %4456 = vmatpush3.bf16.msra.mxu1 %v4811_v32 }
0x114e   :  { %v3662_v54 = vpack.c.bf16 %v5089_v58, %v5093_v36  ;;  %4457 = vmatprep.subr.bf16.mxu1 %v5271_v40 }
0x114f   :  { %4449 = vmatprep.mubr.msk.bf16.mxu1 %vm1823_vm0, %v3661_v2 }
0x1150   :  { %4450 = vmatmul.mubr.msk.bf16.gmra.mxu1 %vm1823_vm0, %v3662_v54 }
0x1151   :  { %4458 = vmatpush3.bf16.msra.mxu1 %v4812_v41  ;;  %4469 = vmatprep.mubr.msk.bf16.mxu1 %vm5272_vm2, %v5271_v40 }
0x1152   :  { %4459 = vmatprep.subr.bf16.mxu1 %v5271_v40 }
0x1208   :  { %v4447_v11 = vpop.f32.mrf.mxu1 }
0x1209   :  { %v3757_v5 = vadd.f32 %v4447_v11, %v4355_v42  ;;  %v4813_v11 = vld [vmem:[%s6935_s11 + $0x20] sm:$0xff]  }
0x120a   :  { %v3748_v16 = vpop.f32.mrf.mxu1  ;;  %4460 = vmatpush3.bf16.msra.mxu1 %v4813_v11 }
0x120b   :  { %v3749_v37 = vadd.f32 %v4355_v42, %v3748_v16  ;;  %4461 = vmatprep.subr.bf16.mxu1 %v5271_v40 }
0x120c   :  { %v4448_v18 = vpop.f32.mrf.mxu1 }
0x120d   :  { %v3760_v49 = vadd.f32 %v4448_v18, %v4355_v42 }
0x120e   :  { %v3751_v20 = vpop.f32.mrf.mxu1 }
0x120f   :  { %v3752_v23 = vadd.f32 %v4355_v42, %v3751_v20 }
0x1210   :  { %v4451_v43 = vpop.f32.mrf.mxu1 }
0x1211   :  { %v3779_v52 = vmax.f32 %v3749_v37, %v3752_v23  ;;  %v3773_v31 = vadd.f32 %v4451_v43, %v4355_v42 }
0x1212   :  { %v3764_v6 = vpop.f32.mrf.mxu1 }
0x1213   :  { %v3780_v28 = vmax.f32 %v3779_v52, %v3757_v5  ;;  %v3765_v4 = vadd.f32 %v4355_v42, %v3764_v6  ;;  %v4814_v6 = vld [vmem:[%s6935_s11 + $0x18] sm:$0xff]  }
0x1214   :  { %v4452_v63 = vpop.f32.mrf.mxu1  ;;  %4462 = vmatpush3.bf16.msra.mxu1 %v4814_v6 }
0x1215   :  { %v3781_v0 = vmax.f32 %v3780_v28, %v3760_v49  ;;  %v3776_v60 = vadd.f32 %v4452_v63, %v4355_v42  ;;  %4463 = vmatprep.subr.bf16.mxu1 %v5271_v40  ;;  %v4816_v28 = vld [vmem:[%s6935_s11 + $0x8] sm:$0xff]   ;;  %v4817_v63 = vld [vmem:[%s6935_s11] sm:$0xff]  }
0x1216   :  { %v3767_v53 = vpop.f32.mrf.mxu1 }
0x1217   :  { %v3782_v35 = vmax.f32 %v3781_v0, %v3765_v4  ;;  %v3768_v27 = vadd.f32 %v4355_v42, %v3767_v53  ;;  %v4819_v0 = vld [vmem:[%s6937_s13 + $0x10] sm:$0xff]  }
0x1219   :  { %v3783_v50 = vmax.f32 %v3782_v35, %v3768_v27 }
0x121b   :  { %v3784_v3 = vmax.f32 %v3783_v50, %v3773_v31 }
0x121d   :  { %v3785_v15 = vmax.f32 %v3784_v3, %v3776_v60 }
0x121f   :  { %v3786_v9 = vsub.f32 %v3749_v37, %v3785_v15  ;;  %v3789_v44 = vsub.f32 %v3752_v23, %v3785_v15  ;;  %v3792_v10 = vsub.f32 %v3757_v5, %v3785_v15  ;;  %v3795_v29 = vsub.f32 %v3760_v49, %v3785_v15  ;;  %v4815_v49 = vld [vmem:[%s6935_s11 + $0x10] sm:$0xff]  }
0x1220   :  { %v3798_v46 = vsub.f32 %v3765_v4, %v3785_v15  ;;  %v3801_v26 = vsub.f32 %v3768_v27, %v3785_v15  ;;  %v3804_v25 = vsub.f32 %v3773_v31, %v3785_v15  ;;  %v3807_v55 = vsub.f32 %v3776_v60, %v3785_v15  ;;  %4464 = vmatpush3.bf16.msra.mxu1 %v4815_v49  ;;  %v4818_v4 = vld [vmem:[%s6937_s13 + $0x18] sm:$0xff]  }
0x1221   :  { %v3787_v62 = vmul.f32 1.442695, %v3786_v9  ;;  %v3790_v45 = vmul.f32 1.442695, %v3789_v44  ;;  %v3793_v19 = vmul.f32 1.442695, %v3792_v10  ;;  %4465 = vmatprep.subr.bf16.mxu1 %v5271_v40  ;;  %4474 = vmatpush3.bf16.msra.mxu0 %v4818_v4 }
0x1222   :  { %v3796_v21 = vmul.f32 1.442695, %v3795_v29  ;;  %v3799_v22 = vmul.f32 1.442695, %v3798_v46  ;;  %v3802_v7 = vmul.f32 1.442695, %v3801_v26  ;;  %4475 = vmatprep.subr.bf16.mxu0 %v5271_v40 }
0x1223   :  { %5094 = vpow2.f32 %v3787_v62  ;;  %v3805_v47 = vmul.f32 1.442695, %v3804_v25  ;;  %v3808_v48 = vmul.f32 1.442695, %v3807_v55 }
0x1224   :  { %5096 = vpow2.f32 %v3790_v45  ;;  %4466 = vmatpush3.bf16.msra.mxu1 %v4816_v28 }
0x1225   :  { %5098 = vpow2.f32 %v3793_v19  ;;  %4467 = vmatprep.subr.bf16.mxu1 %v5271_v40  ;;  %4476 = vmatpush3.bf16.msra.mxu0 %v4819_v0 }
0x1226   :  { %5100 = vpow2.f32 %v3796_v21  ;;  %4477 = vmatprep.subr.bf16.mxu0 %v5271_v40 }
0x1227   :  { %5102 = vpow2.f32 %v3799_v22 }
0x1228   :  { %5104 = vpow2.f32 %v3802_v7  ;;  %4468 = vmatpush3.bf16.msra.mxu1 %v4817_v63 }
0x1229   :  { %5106 = vpow2.f32 %v3805_v47 }
0x122a   :  { %5108 = vpow2.f32 %v3808_v48 }
0x1230   :  { %v5095_v56 = vpop.eup %5094 }
0x1231   :  { %v5097_v17 = vpop.eup %5096 }
0x1232   :  { %v3810_v8 = vadd.f32 %v5097_v17, %v5095_v56  ;;  %v5099_v61 = vpop.eup %5098 }
0x1233   :  { %v5101_v34 = vpop.eup %5100 }
0x1234   :  { %v3811_v57 = vadd.f32 %v5099_v61, %v3810_v8  ;;  %v5103_v58 = vpop.eup %5102  ;;  %v4373_v8 = vld [vmem:[#allocation4] ss:$0 sm:$0xff] }
0x1235   :  { %v5105_v36 = vpop.eup %5104 }
0x1236   :  { %v3812_v51 = vadd.f32 %v5101_v34, %v3811_v57  ;;  %v5107_v54 = vpop.eup %5106 }
0x1237   :  { %v5109_v32 = vpop.eup %5108 }
0x1238   :  { %v3813_v24 = vadd.f32 %v5103_v58, %v3812_v51 }
0x123a   :  { %v3814_v2 = vadd.f32 %v5105_v36, %v3813_v24 }
0x123c   :  { %v3815_v39 = vadd.f32 %v5107_v54, %v3814_v2 }
0x123e   :  { %v3816_v41 = vadd.f32 %v5109_v32, %v3815_v39 }
0x1240   :  { %5110 = vrcp.f32 %v3816_v41 }
0x124d   :  { %v5111_v16 = vpop.eup %5110 }
0x124e   :  { %v3820_v18 = vmul.f32 %v5111_v16, %v5099_v61  ;;  %v3818_v42 = vmul.f32 %v5111_v16, %v5095_v56  ;;  %v3821_v20 = vmul.f32 %v5111_v16, %v5101_v34  ;;  %v3819_v37 = vmul.f32 %v5111_v16, %v5097_v17 }
0x124f   :  { %v3823_v23 = vmul.f32 %v5111_v16, %v5105_v36  ;;  %v3822_v43 = vmul.f32 %v5111_v16, %v5103_v58  ;;  %v3825_v5 = vmul.f32 %v5111_v16, %v5109_v32  ;;  %v3824_v52 = vmul.f32 %v5111_v16, %v5107_v54 }
0x1250   :  { %3850 = vperm.xlu1 %4497, %v3820_v18   ;;  %3829 = vst.msk [vmem:[%s6939_s16 + $0x10] sm:$0xff] %vm3826_vm1, %v3820_v18  ;;  %3837 = vperm.xlu0 %4496, %v3818_v42   ;;  %3827 = vst.msk [vmem:[%s6939_s16] sm:$0xff] %vm3826_vm1, %v3818_v42 }
0x1251   :  { %3830 = vst.msk [vmem:[%s6939_s16 + $0x18] sm:$0xff] %vm3826_vm1, %v3821_v20  ;;  %3828 = vst.msk [vmem:[%s6939_s16 + $0x8] sm:$0xff] %vm3826_vm1, %v3819_v37 }
0x1252   :  { %3832 = vst.msk [vmem:[%s6939_s16 + $0x28] sm:$0xff] %vm3826_vm1, %v3823_v23  ;;  %3831 = vst.msk [vmem:[%s6939_s16 + $0x20] sm:$0xff] %vm3826_vm1, %v3822_v43 }
0x1253   :  { %3834 = vst.msk [vmem:[%s6939_s16 + $0x38] sm:$0xff] %vm3826_vm1, %v3825_v5  ;;  %3833 = vst.msk [vmem:[%s6939_s16 + $0x30] sm:$0xff] %vm3826_vm1, %v3824_v52 }
0x1254   :  { %3857 = vperm.xlu1 %4497, %v3821_v20   ;;  %3843 = vperm.xlu0 %4496, %v3819_v37  }
0x1258   :  { %3871 = vperm.xlu1 %4497, %v3823_v23   ;;  %3864 = vperm.xlu0 %4496, %v3822_v43  }
0x125c   :  { %3885 = vperm.xlu1 %4497, %v3825_v5   ;;  %3878 = vperm.xlu0 %4496, %v3824_v52  }
0x12cb   :  { %v3851_v53 = vpop.permute.xlu1 %3850  ;;  %v3838_v35 = vpop.permute.xlu0 %3837 }
0x12cc   :  { %v3840_v50 = vmul.f32 %v3838_v35, %v6768_v38  ;;  %v3853_v3 = vmul.f32 %v3851_v53, %v6764_v59 }
0x12cf   :  { %v3858_v27 = vpop.permute.xlu1 %3857  ;;  %v3844_v31 = vpop.permute.xlu0 %3843 }
0x12d0   :  { %v3846_v60 = vmul.f32 %v3844_v31, %v6773_v12  ;;  %v3860_v62 = vmul.f32 %v3858_v27, %v6785_v14  ;;  %v4820_v14 = vld [vmem:[%s6937_s13 + $0x8] sm:$0xff]  }
0x12d1   :  { %4478 = vmatpush3.bf16.msra.mxu0 %v4820_v14 }
0x12d2   :  { %v3847_v15 = vadd.f32 %v3846_v60, %v3840_v50  ;;  %4479 = vmatprep.subr.bf16.mxu0 %v5271_v40 }
0x12d3   :  { %v3872_v9 = vpop.permute.xlu1 %3871  ;;  %v3865_v44 = vpop.permute.xlu0 %3864 }
0x12d4   :  { %v3854_v45 = vadd.f32 %v3853_v3, %v3847_v15  ;;  %v3867_v29 = vmul.f32 %v3865_v44, %v6792_v13  ;;  %v3874_v19 = vmul.f32 %v3872_v9, %v6778_v1  ;;  %v4821_v1 = vld [vmem:[%s6937_s13] sm:$0xff]  }
0x12d5   :  { %4480 = vmatpush3.bf16.msra.mxu0 %v4821_v1  ;;  %v4364_v13 = vld [vmem:[%s6936_s12] ss:$0 sm:$0xff] }
0x12d6   :  { %v3861_v10 = vadd.f32 %v3860_v62, %v3854_v45 }
0x12d7   :  { %v3879_v46 = vpop.permute.xlu0 %3878  ;;  %v3886_v26 = vpop.permute.xlu1 %3885 }
0x12d8   :  { %v3868_v21 = vadd.f32 %v3867_v29, %v3861_v10  ;;  %v3881_v38 = vmul.f32 %v3879_v46, %v6803_v30  ;;  %v3888_v12 = vmul.f32 %v3886_v26, %v6798_v33 }
0x12da   :  { %v3875_v22 = vadd.f32 %v3874_v19, %v3868_v21 }
0x12dc   :  { %v3882_v59 = vadd.f32 %v3881_v38, %v3875_v22 }
0x12de   :  { %v3889_v25 = vadd.f32 %v3888_v12, %v3882_v59 }
0x12e0   :  { %v3890_v7 = vpack.c.bf16 %v3889_v25, %v3889_v25 }
0x12e2   :  { %4470 = vmatmul.mubr.bf16.vlgmr.msra.gmra.mxu1 %v3890_v7 }
0x13a2   :  { %v3996_v33 = vpop.f32.mrf.mxu1 }
0x13a3   :  { %v3997_v30 = vadd.f32 %v4364_v13, %v3996_v33 }
0x13a4   :  { %v4471_v55 = vpop.f32.mrf.mxu1 }
0x13a5   :  { %v4002_v47 = vmax.f32 %v3997_v30, 0.0 }
0x13a6   :  { %v3999_v56 = vpop.f32.mrf.mxu1 }
0x13a7   :  { %v4003_v48 = vpack.c.bf16 %v4002_v47, %v4002_v47 }
0x13a8   :  { %v4472_v17 = vpop.f32.mrf.mxu1 }
0x13a9   :  { %4482 = vmatmul.mubr.msk.bf16.vlgmr.msra.gmra.mxu0 %vm1823_vm0, %v4003_v48 }
0x1469   :  { %v4080_v40 = vpop.f32.mrf.mxu0 }
0x146a   :  { %v4081_v61 = vadd.f32 %v4373_v8, %v4080_v40 }
0x146b   :  { %v4483_v57 = vpop.f32.mrf.mxu0 }
0x146c   :  { %4086 = vst.msk [vmem:[%s6938_s15] sm:$0xff] %vm3826_vm1, %v4081_v61 }
0x146d   :  { %v4083_v34 = vpop.f32.mrf.mxu0 }
0x146f   :  { %v4484_v51 = vpop.f32.mrf.mxu0 }
0x1470   :  { %4095 = vsyncpa [#allocation6], 1 }
0x1471   :  { %4096 = vsyncpa [#allocation8], 1 }
0x1472   :  { %4097 = vsyncpa [#allocation11], 1 }

</bundles_post_ra>
